<compile_context>
chip_gen: v7x
topology: tpu7x:2x2x1
jax: 0.10.0
libtpu: 0.0.40
codegen_flags: <defaults>
</compile_context>

<pallas_src>
import functools

import jax
import jax.numpy as jnp
from jax import lax
from jax.experimental import pallas as pl
from jax.experimental.pallas import tpu as pltpu


# ---------------------------------------------------------------------------
# Pallas kernel: fused  (N,K) weights @ (K,T) patches  ->  activation -> store
# ---------------------------------------------------------------------------
def _fused_conv_kernel(w_ref, p_ref, o_ref, *, act):
    # w_ref: (N, K) bf16    p_ref: (K, T) bf16    o_ref: (N, T) bf16
    y = jnp.dot(w_ref[...], p_ref[...], preferred_element_type=jnp.float32)
    if act == "relu":
        y = jnp.maximum(y, 0.0)
    elif act == "leaky":
        y = jnp.where(y > 0.0, y, 0.2 * y)          # LeakyReLU(0.2)
    o_ref[...] = y.astype(o_ref.dtype)


def _pick_spatial_tile(K, Mo):
    """Output-column (spatial) tile.  Large tiles amortize the ~0.35us/step
    grid overhead; capped by K so the double-buffered bf16 patch block stays
    small enough for v5e/v6e/v7x VMEM alike."""
    if K <= 256:
        target = 2048
    elif K <= 1024:
        target = 1024
    else:
        target = 512
    # Either the full dim (always a legal block) or a multiple of 128.
    return Mo if Mo <= target else target


def fused_conv_matmul(patches, w_nk, act, out_dtype=jnp.bfloat16):
    """patches: (B, K, Mo) bf16,  w_nk: (N, K) bf16  ->  (B, N, Mo) out_dtype."""
    B, K, Mo = patches.shape
    N = w_nk.shape[0]
    T = _pick_spatial_tile(K, Mo)
    grid = (B, pl.cdiv(Mo, T))          # partial last tile handled by Pallas

    return pl.pallas_call(
        functools.partial(_fused_conv_kernel, act=act),
        out_shape=jax.ShapeDtypeStruct((B, N, Mo), out_dtype),
        grid=grid,
        in_specs=[
            # Weights stay resident in VMEM (constant block index).
            pl.BlockSpec((N, K), lambda b, j: (0, 0)),
            # Patch block: lanes = spatial columns (>=128 wide => dense loads).
            pl.BlockSpec((None, K, T), lambda b, j: (b, 0, j)),
        ],
        # Output block: lanes = spatial columns => dense (unmasked) stores.
        out_specs=pl.BlockSpec((None, N, T), lambda b, j: (b, 0, j)),
        compiler_params=pltpu.CompilerParams(
            dimension_semantics=("parallel", "parallel"),   # v7x megacore
            vmem_limit_bytes=48 << 20,                      # safe on 64MiB v7x
        ),
    )(w_nk, patches)


# ---------------------------------------------------------------------------
# Plain-JAX glue: single fused patch gather + weight folding
# ---------------------------------------------------------------------------
def extract_patches_nchw(x_bchw, k, stride, pad):
    """One fused patch gather (no 16-slice stack).  Output (B, C*k*k, Ho*Wo);
    feature index = c*k*k + i*k + j (input-channel major), which matches
    OIHW_weight.reshape(O, -1)."""
    p = lax.conv_general_dilated_patches(
        x_bchw, filter_shape=(k, k), window_strides=(stride, stride),
        padding=[(pad, pad), (pad, pad)],
        dimension_numbers=("NCHW", "OIHW", "NCHW"))
    B, F, Ho, Wo = p.shape
    return p.reshape(B, F, Ho * Wo), (Ho, Wo)


def conv2d_bn_act(x_bchw, w_oihw, *, k, stride, pad, act):
    """Conv2d (no bias) + folded BatchNorm + activation.  NCHW in / NCHW out."""
    cout, cin = w_oihw.shape[:2]
    assert x_bchw.shape[1] == cin
    patches, (Ho, Wo) = extract_patches_nchw(
        x_bchw.astype(jnp.bfloat16), k, stride, pad)
    w_nk = w_oihw.reshape(cout, cin * k * k).astype(jnp.bfloat16)
    y = fused_conv_matmul(patches, w_nk, act)
    return y.reshape(x_bchw.shape[0], cout, Ho, Wo)


def convtranspose_as_conv_weight(w_iohw, k):
    """ConvTranspose2d with stride=1, padding=0 == Conv2d with full padding
    (k-1) and a spatially flipped, (in,out)-swapped kernel.  (Only valid for
    stride=1 / pad=0 — asserted by construction in the caller.)"""
    assert w_iohw.shape[2] == w_iohw.shape[3] == k
    return jnp.transpose(w_iohw[:, :, ::-1, ::-1], (1, 0, 2, 3))   # -> OIHW


def fold_bn(w_oihw, eps=1e-5):
    """Fresh BatchNorm2d in eval mode: gamma=1, beta=0, mean=0, var=1 — the
    shift is exactly 0, so BN is just a per-output-channel scale folded into
    the conv weight (removes the scale/shift kernel operands entirely)."""
    c = w_oihw.shape[0]
    scale = jnp.ones((c,), jnp.float32) / jnp.sqrt(1.0 + eps)
    return w_oihw * scale[:, None, None, None]


# ---------------------------------------------------------------------------
# Parameters (deterministic, synthetic) and forward pass
# ---------------------------------------------------------------------------
def init_params(key, image_size, num_classes=2, image_channels=3):
    ks = jax.random.split(key, 7)
    p = {}
    p["embedding"] = jax.random.normal(
        ks[0], (num_classes, image_size * image_size), jnp.float32)
    # ConvTranspose2d weight: (Cin, Cout, kH, kW)
    p["w_embed"] = 0.05 * jax.random.normal(ks[1], (image_channels + 1, 8, 4, 4))
    # Conv2d weights: (Cout, Cin, kH, kW)
    p["w_in"] = 0.05 * jax.random.normal(ks[2], (16, 8, 4, 4))
    p["w_h1"] = 0.05 * jax.random.normal(ks[3], (32, 16, 4, 4))
    p["w_h2"] = 0.05 * jax.random.normal(ks[4], (64, 32, 4, 4))
    p["w_h3"] = 0.05 * jax.random.normal(ks[5], (128, 64, 4, 4))
    p["w_out"] = 0.05 * jax.random.normal(ks[6], (1, 128, 4, 4))
    return p


def discriminator_forward(params, x_nchw, labels, image_size):
    B = x_nchw.shape[0]
    # Embedding lookup -> (B, 1, S, S); concat on the channel axis (NCHW).
    emb = params["embedding"][labels].reshape(B, 1, image_size, image_size)
    x = jnp.concatenate([x_nchw, emb], axis=1)                      # (B, 4, S, S)

    # embed_layer: ConvTranspose2d(4,8,4,1,0) + BN + ReLU (+Dropout2d: eval id)
    w = fold_bn(convtranspose_as_conv_weight(params["w_embed"], 4))
    x = conv2d_bn_act(x, w, k=4, stride=1, pad=3, act="relu")

    # input_layer / hidden1..3: Conv2d(k=4, s=2, p=1) + BN + LeakyReLU(0.2)
    x = conv2d_bn_act(x, fold_bn(params["w_in"]), k=4, stride=2, pad=1, act="leaky")
    x = conv2d_bn_act(x, fold_bn(params["w_h1"]), k=4, stride=2, pad=1, act="leaky")
    x = conv2d_bn_act(x, fold_bn(params["w_h2"]), k=4, stride=2, pad=1, act="leaky")
    x = conv2d_bn_act(x, fold_bn(params["w_h3"]), k=4, stride=2, pad=1, act="leaky")

    # out: Conv2d(128,1,4,1,0) + Dropout2d (eval id) + Sigmoid.
    # Tiny layer: kept in plain JAX per the perf review (a dedicated
    # pallas_call + patch gather here is pure launch/DMA overhead), and
    # jax.nn.sigmoid is the numerically stable form.
    logits = lax.conv_general_dilated(
        x.astype(jnp.float32), params["w_out"].astype(jnp.float32),
        window_strides=(1, 1), padding="VALID",
        dimension_numbers=("NCHW", "OIHW", "NCHW"))
    return jax.nn.sigmoid(logits)


if __name__ == "__main__":
    # Original module uses image_size=299; the architecture is size-agnostic,
    # so run a SMALL but structurally-consistent size (61 -> 64 -> 32 -> 16 ->
    # 8 -> 4 -> final 1x1 map).
    IMAGE_SIZE = 61
    BATCH = 2

    key = jax.random.PRNGKey(0)
    k_params, k_x = jax.random.split(key)
    params = init_params(k_params, IMAGE_SIZE)

    x = jax.random.normal(k_x, (BATCH, 3, IMAGE_SIZE, IMAGE_SIZE), jnp.float32)
    labels = jnp.array([0, 1], dtype=jnp.int32)

    fwd = jax.jit(functools.partial(discriminator_forward, image_size=IMAGE_SIZE))
    out = jax.block_until_ready(fwd(params, x, labels))

    assert out.shape == (BATCH, 1, 1, 1), out.shape
    assert bool(jnp.all((out >= 0.0) & (out <= 1.0)))
    print("KERNEL_OK")
</pallas_src>

<mosaic_0001>
module attributes {stable_mosaic.version = 11 : i64} {
  func.func @_fused_conv_kernel(%arg0: i32, %arg1: i32, %arg2: memref<8x64xbf16, #tpu.memory_space<vmem>>, %arg3: memref<1x64x2048xbf16, #tpu.memory_space<vmem>>, %arg4: memref<1x8x2048xbf16, #tpu.memory_space<vmem>>) attributes {dimension_semantics = [#tpu.dimension_semantics<parallel>, #tpu.dimension_semantics<parallel>], iteration_bounds = array<i64: 2, 2>, scalar_prefetch = 0 : i64, scratch_operands = 0 : i64, tpu.core_type = #tpu.core_type<tc>, window_params = [{pipeline_mode = #tpu.pipeline_mode<synchronous>, transform_indices = @transform_0, window_bounds = array<i64: 8, 64>}, {transform_indices = @transform_1, window_bounds = array<i64: 1, 64, 2048>}, {transform_indices = @transform_2, window_bounds = array<i64: 1, 8, 2048>}]} {
    %c0 = arith.constant 0 : index
    %c0_0 = arith.constant 0 : index
    %0 = vector.load %arg2[%c0, %c0_0] : memref<8x64xbf16, #tpu.memory_space<vmem>>, vector<8x64xbf16>
    %c0_1 = arith.constant 0 : index
    %c0_2 = arith.constant 0 : index
    %c0_3 = arith.constant 0 : index
    %1 = vector.load %arg3[%c0_1, %c0_2, %c0_3] : memref<1x64x2048xbf16, #tpu.memory_space<vmem>>, vector<1x64x2048xbf16>
    %2 = vector.shape_cast %1 : vector<1x64x2048xbf16> to vector<64x2048xbf16>
    %cst = arith.constant dense<0.000000e+00> : vector<8x2048xf32>
    %3 = tpu.matmul %0, %2, %cst {dimension_numbers = #tpu.dot_dimension_numbers<[1], [0], [0], [1], [0, 0, 1, 1], [], []>} : vector<8x64xbf16>, vector<64x2048xbf16>, vector<8x2048xf32> -> vector<8x2048xf32>
    %cst_4 = arith.constant 0.000000e+00 : f32
    %4 = vector.broadcast %cst_4 : f32 to vector<8x2048xf32>
    %5 = arith.maximumf %3, %4 : vector<8x2048xf32>
    %6 = arith.truncf %5 : vector<8x2048xf32> to vector<8x2048xbf16>
    %c0_5 = arith.constant 0 : index
    %c0_6 = arith.constant 0 : index
    %c0_7 = arith.constant 0 : index
    %7 = vector.load %arg4[%c0_5, %c0_6, %c0_7] : memref<1x8x2048xbf16, #tpu.memory_space<vmem>>, vector<1x8x2048xbf16>
    %8 = vector.shape_cast %7 : vector<1x8x2048xbf16> to vector<8x2048xbf16>
    %9 = vector.shape_cast %6 : vector<8x2048xbf16> to vector<1x8x2048xbf16>
    tpu.vector_store %arg4[%c0_5, %c0_6, %c0_7], %9 {strides = array<i32>} : memref<1x8x2048xbf16, #tpu.memory_space<vmem>>, vector<1x8x2048xbf16>,
    return
  }
  func.func @transform_0(%arg0: i32, %arg1: i32) -> (i32, i32) {
    %c0_i32 = arith.constant 0 : i32
    %c0_i32_0 = arith.constant 0 : i32
    %c0_i32_1 = arith.constant 0 : i32
    return %c0_i32, %c0_i32_0 : i32, i32
  }
  func.func @transform_1(%arg0: i32, %arg1: i32) -> (i32, i32, i32) {
    %c0_i32 = arith.constant 0 : i32
    %c0_i32_0 = arith.constant 0 : i32
    return %arg0, %c0_i32, %arg1 : i32, i32, i32
  }
  func.func @transform_2(%arg0: i32, %arg1: i32) -> (i32, i32, i32) {
    %c0_i32 = arith.constant 0 : i32
    %c0_i32_0 = arith.constant 0 : i32
    return %arg0, %c0_i32, %arg1 : i32, i32, i32
  }
}

module attributes {stable_mosaic.version = 11 : i64} {
  func.func @_fused_conv_kernel(%arg0: i32, %arg1: i32, %arg2: memref<16x128xbf16, #tpu.memory_space<vmem>>, %arg3: memref<1x128x1024xbf16, #tpu.memory_space<vmem>>, %arg4: memref<1x16x1024xbf16, #tpu.memory_space<vmem>>) attributes {dimension_semantics = [#tpu.dimension_semantics<parallel>, #tpu.dimension_semantics<parallel>], iteration_bounds = array<i64: 2, 1>, scalar_prefetch = 0 : i64, scratch_operands = 0 : i64, tpu.core_type = #tpu.core_type<tc>, window_params = [{pipeline_mode = #tpu.pipeline_mode<synchronous>, transform_indices = @transform_0, window_bounds = array<i64: 16, 128>}, {transform_indices = @transform_1, window_bounds = array<i64: 1, 128, 1024>}, {transform_indices = @transform_2, window_bounds = array<i64: 1, 16, 1024>}]} {
    %c0 = arith.constant 0 : index
    %c0_0 = arith.constant 0 : index
    %0 = vector.load %arg2[%c0, %c0_0] : memref<16x128xbf16, #tpu.memory_space<vmem>>, vector<16x128xbf16>
    %c0_1 = arith.constant 0 : index
    %c0_2 = arith.constant 0 : index
    %c0_3 = arith.constant 0 : index
    %1 = vector.load %arg3[%c0_1, %c0_2, %c0_3] : memref<1x128x1024xbf16, #tpu.memory_space<vmem>>, vector<1x128x1024xbf16>
    %2 = vector.shape_cast %1 : vector<1x128x1024xbf16> to vector<128x1024xbf16>
    %cst = arith.constant dense<0.000000e+00> : vector<16x1024xf32>
    %3 = tpu.matmul %0, %2, %cst {dimension_numbers = #tpu.dot_dimension_numbers<[1], [0], [0], [1], [0, 0, 1, 1], [], []>} : vector<16x128xbf16>, vector<128x1024xbf16>, vector<16x1024xf32> -> vector<16x1024xf32>
    %cst_4 = arith.constant 0.000000e+00 : f32
    %4 = vector.broadcast %cst_4 : f32 to vector<16x1024xf32>
    %5 = arith.cmpf ogt, %3, %4 : vector<16x1024xf32>
    %cst_5 = arith.constant 2.000000e-01 : f32
    %6 = vector.broadcast %cst_5 : f32 to vector<16x1024xf32>
    %7 = arith.mulf %6, %3 : vector<16x1024xf32>
    %8 = arith.select %5, %3, %7 : vector<16x1024xi1>, vector<16x1024xf32>
    %9 = arith.truncf %8 : vector<16x1024xf32> to vector<16x1024xbf16>
    %c0_6 = arith.constant 0 : index
    %c0_7 = arith.constant 0 : index
    %c0_8 = arith.constant 0 : index
    %10 = vector.load %arg4[%c0_6, %c0_7, %c0_8] : memref<1x16x1024xbf16, #tpu.memory_space<vmem>>, vector<1x16x1024xbf16>
    %11 = vector.shape_cast %10 : vector<1x16x1024xbf16> to vector<16x1024xbf16>
    %12 = vector.shape_cast %9 : vector<16x1024xbf16> to vector<1x16x1024xbf16>
    tpu.vector_store %arg4[%c0_6, %c0_7, %c0_8], %12 {strides = array<i32>} : memref<1x16x1024xbf16, #tpu.memory_space<vmem>>, vector<1x16x1024xbf16>,
    return
  }
  func.func @transform_0(%arg0: i32, %arg1: i32) -> (i32, i32) {
    %c0_i32 = arith.constant 0 : i32
    %c0_i32_0 = arith.constant 0 : i32
    %c0_i32_1 = arith.constant 0 : i32
    return %c0_i32, %c0_i32_0 : i32, i32
  }
  func.func @transform_1(%arg0: i32, %arg1: i32) -> (i32, i32, i32) {
    %c0_i32 = arith.constant 0 : i32
    %c0_i32_0 = arith.constant 0 : i32
    return %arg0, %c0_i32, %arg1 : i32, i32, i32
  }
  func.func @transform_2(%arg0: i32, %arg1: i32) -> (i32, i32, i32) {
    %c0_i32 = arith.constant 0 : i32
    %c0_i32_0 = arith.constant 0 : i32
    return %arg0, %c0_i32, %arg1 : i32, i32, i32
  }
}

module attributes {stable_mosaic.version = 11 : i64} {
  func.func @_fused_conv_kernel(%arg0: i32, %arg1: i32, %arg2: memref<32x256xbf16, #tpu.memory_space<vmem>>, %arg3: memref<1x256x256xbf16, #tpu.memory_space<vmem>>, %arg4: memref<1x32x256xbf16, #tpu.memory_space<vmem>>) attributes {dimension_semantics = [#tpu.dimension_semantics<parallel>, #tpu.dimension_semantics<parallel>], iteration_bounds = array<i64: 2, 1>, scalar_prefetch = 0 : i64, scratch_operands = 0 : i64, tpu.core_type = #tpu.core_type<tc>, window_params = [{pipeline_mode = #tpu.pipeline_mode<synchronous>, transform_indices = @transform_0, window_bounds = array<i64: 32, 256>}, {transform_indices = @transform_1, window_bounds = array<i64: 1, 256, 256>}, {transform_indices = @transform_2, window_bounds = array<i64: 1, 32, 256>}]} {
    %c0 = arith.constant 0 : index
    %c0_0 = arith.constant 0 : index
    %0 = vector.load %arg2[%c0, %c0_0] : memref<32x256xbf16, #tpu.memory_space<vmem>>, vector<32x256xbf16>
    %c0_1 = arith.constant 0 : index
    %c0_2 = arith.constant 0 : index
    %c0_3 = arith.constant 0 : index
    %1 = vector.load %arg3[%c0_1, %c0_2, %c0_3] : memref<1x256x256xbf16, #tpu.memory_space<vmem>>, vector<1x256x256xbf16>
    %2 = vector.shape_cast %1 : vector<1x256x256xbf16> to vector<256x256xbf16>
    %cst = arith.constant dense<0.000000e+00> : vector<32x256xf32>
    %3 = tpu.matmul %0, %2, %cst {dimension_numbers = #tpu.dot_dimension_numbers<[1], [0], [0], [1], [0, 0, 1, 1], [], []>} : vector<32x256xbf16>, vector<256x256xbf16>, vector<32x256xf32> -> vector<32x256xf32>
    %cst_4 = arith.constant 0.000000e+00 : f32
    %4 = vector.broadcast %cst_4 : f32 to vector<32x256xf32>
    %5 = arith.cmpf ogt, %3, %4 : vector<32x256xf32>
    %cst_5 = arith.constant 2.000000e-01 : f32
    %6 = vector.broadcast %cst_5 : f32 to vector<32x256xf32>
    %7 = arith.mulf %6, %3 : vector<32x256xf32>
    %8 = arith.select %5, %3, %7 : vector<32x256xi1>, vector<32x256xf32>
    %9 = arith.truncf %8 : vector<32x256xf32> to vector<32x256xbf16>
    %c0_6 = arith.constant 0 : index
    %c0_7 = arith.constant 0 : index
    %c0_8 = arith.constant 0 : index
    %10 = vector.load %arg4[%c0_6, %c0_7, %c0_8] : memref<1x32x256xbf16, #tpu.memory_space<vmem>>, vector<1x32x256xbf16>
    %11 = vector.shape_cast %10 : vector<1x32x256xbf16> to vector<32x256xbf16>
    %12 = vector.shape_cast %9 : vector<32x256xbf16> to vector<1x32x256xbf16>
    tpu.vector_store %arg4[%c0_6, %c0_7, %c0_8], %12 {strides = array<i32>} : memref<1x32x256xbf16, #tpu.memory_space<vmem>>, vector<1x32x256xbf16>,
    return
  }
  func.func @transform_0(%arg0: i32, %arg1: i32) -> (i32, i32) {
    %c0_i32 = arith.constant 0 : i32
    %c0_i32_0 = arith.constant 0 : i32
    %c0_i32_1 = arith.constant 0 : i32
    return %c0_i32, %c0_i32_0 : i32, i32
  }
  func.func @transform_1(%arg0: i32, %arg1: i32) -> (i32, i32, i32) {
    %c0_i32 = arith.constant 0 : i32
    %c0_i32_0 = arith.constant 0 : i32
    return %arg0, %c0_i32, %arg1 : i32, i32, i32
  }
  func.func @transform_2(%arg0: i32, %arg1: i32) -> (i32, i32, i32) {
    %c0_i32 = arith.constant 0 : i32
    %c0_i32_0 = arith.constant 0 : i32
    return %arg0, %c0_i32, %arg1 : i32, i32, i32
  }
}

module attributes {stable_mosaic.version = 11 : i64} {
  func.func @_fused_conv_kernel(%arg0: i32, %arg1: i32, %arg2: memref<64x512xbf16, #tpu.memory_space<vmem>>, %arg3: memref<1x512x64xbf16, #tpu.memory_space<vmem>>, %arg4: memref<1x64x64xbf16, #tpu.memory_space<vmem>>) attributes {dimension_semantics = [#tpu.dimension_semantics<parallel>, #tpu.dimension_semantics<parallel>], iteration_bounds = array<i64: 2, 1>, scalar_prefetch = 0 : i64, scratch_operands = 0 : i64, tpu.core_type = #tpu.core_type<tc>, window_params = [{pipeline_mode = #tpu.pipeline_mode<synchronous>, transform_indices = @transform_0, window_bounds = array<i64: 64, 512>}, {transform_indices = @transform_1, window_bounds = array<i64: 1, 512, 64>}, {transform_indices = @transform_2, window_bounds = array<i64: 1, 64, 64>}]} {
    %c0 = arith.constant 0 : index
    %c0_0 = arith.constant 0 : index
    %0 = vector.load %arg2[%c0, %c0_0] : memref<64x512xbf16, #tpu.memory_space<vmem>>, vector<64x512xbf16>
    %c0_1 = arith.constant 0 : index
    %c0_2 = arith.constant 0 : index
    %c0_3 = arith.constant 0 : index
    %1 = vector.load %arg3[%c0_1, %c0_2, %c0_3] : memref<1x512x64xbf16, #tpu.memory_space<vmem>>, vector<1x512x64xbf16>
    %2 = vector.shape_cast %1 : vector<1x512x64xbf16> to vector<512x64xbf16>
    %cst = arith.constant dense<0.000000e+00> : vector<64x64xf32>
    %3 = tpu.matmul %0, %2, %cst {dimension_numbers = #tpu.dot_dimension_numbers<[1], [0], [0], [1], [0, 0, 1, 1], [], []>} : vector<64x512xbf16>, vector<512x64xbf16>, vector<64x64xf32> -> vector<64x64xf32>
    %cst_4 = arith.constant 0.000000e+00 : f32
    %4 = vector.broadcast %cst_4 : f32 to vector<64x64xf32>
    %5 = arith.cmpf ogt, %3, %4 : vector<64x64xf32>
    %cst_5 = arith.constant 2.000000e-01 : f32
    %6 = vector.broadcast %cst_5 : f32 to vector<64x64xf32>
    %7 = arith.mulf %6, %3 : vector<64x64xf32>
    %8 = arith.select %5, %3, %7 : vector<64x64xi1>, vector<64x64xf32>
    %9 = arith.truncf %8 : vector<64x64xf32> to vector<64x64xbf16>
    %c0_6 = arith.constant 0 : index
    %c0_7 = arith.constant 0 : index
    %c0_8 = arith.constant 0 : index
    %10 = vector.load %arg4[%c0_6, %c0_7, %c0_8] : memref<1x64x64xbf16, #tpu.memory_space<vmem>>, vector<1x64x64xbf16>
    %11 = vector.shape_cast %10 : vector<1x64x64xbf16> to vector<64x64xbf16>
    %12 = vector.shape_cast %9 : vector<64x64xbf16> to vector<1x64x64xbf16>
    tpu.vector_store %arg4[%c0_6, %c0_7, %c0_8], %12 {strides = array<i32>} : memref<1x64x64xbf16, #tpu.memory_space<vmem>>, vector<1x64x64xbf16>,
    return
  }
  func.func @transform_0(%arg0: i32, %arg1: i32) -> (i32, i32) {
    %c0_i32 = arith.constant 0 : i32
    %c0_i32_0 = arith.constant 0 : i32
    %c0_i32_1 = arith.constant 0 : i32
    return %c0_i32, %c0_i32_0 : i32, i32
  }
  func.func @transform_1(%arg0: i32, %arg1: i32) -> (i32, i32, i32) {
    %c0_i32 = arith.constant 0 : i32
    %c0_i32_0 = arith.constant 0 : i32
    return %arg0, %c0_i32, %arg1 : i32, i32, i32
  }
  func.func @transform_2(%arg0: i32, %arg1: i32) -> (i32, i32, i32) {
    %c0_i32 = arith.constant 0 : i32
    %c0_i32_0 = arith.constant 0 : i32
    return %arg0, %c0_i32, %arg1 : i32, i32, i32
  }
}

module attributes {stable_mosaic.version = 11 : i64} {
  func.func @_fused_conv_kernel(%arg0: i32, %arg1: i32, %arg2: memref<128x1024xbf16, #tpu.memory_space<vmem>>, %arg3: memref<1x1024x16xbf16, #tpu.memory_space<vmem>>, %arg4: memref<1x128x16xbf16, #tpu.memory_space<vmem>>) attributes {dimension_semantics = [#tpu.dimension_semantics<parallel>, #tpu.dimension_semantics<parallel>], iteration_bounds = array<i64: 2, 1>, scalar_prefetch = 0 : i64, scratch_operands = 0 : i64, tpu.core_type = #tpu.core_type<tc>, window_params = [{pipeline_mode = #tpu.pipeline_mode<synchronous>, transform_indices = @transform_0, window_bounds = array<i64: 128, 1024>}, {transform_indices = @transform_1, window_bounds = array<i64: 1, 1024, 16>}, {transform_indices = @transform_2, window_bounds = array<i64: 1, 128, 16>}]} {
    %c0 = arith.constant 0 : index
    %c0_0 = arith.constant 0 : index
    %0 = vector.load %arg2[%c0, %c0_0] : memref<128x1024xbf16, #tpu.memory_space<vmem>>, vector<128x1024xbf16>
    %c0_1 = arith.constant 0 : index
    %c0_2 = arith.constant 0 : index
    %c0_3 = arith.constant 0 : index
    %1 = vector.load %arg3[%c0_1, %c0_2, %c0_3] : memref<1x1024x16xbf16, #tpu.memory_space<vmem>>, vector<1x1024x16xbf16>
    %2 = vector.shape_cast %1 : vector<1x1024x16xbf16> to vector<1024x16xbf16>
    %cst = arith.constant dense<0.000000e+00> : vector<128x16xf32>
    %3 = tpu.matmul %0, %2, %cst {dimension_numbers = #tpu.dot_dimension_numbers<[1], [0], [0], [1], [0, 0, 1, 1], [], []>} : vector<128x1024xbf16>, vector<1024x16xbf16>, vector<128x16xf32> -> vector<128x16xf32>
    %cst_4 = arith.constant 0.000000e+00 : f32
    %4 = vector.broadcast %cst_4 : f32 to vector<128x16xf32>
    %5 = arith.cmpf ogt, %3, %4 : vector<128x16xf32>
    %cst_5 = arith.constant 2.000000e-01 : f32
    %6 = vector.broadcast %cst_5 : f32 to vector<128x16xf32>
    %7 = arith.mulf %6, %3 : vector<128x16xf32>
    %8 = arith.select %5, %3, %7 : vector<128x16xi1>, vector<128x16xf32>
    %9 = arith.truncf %8 : vector<128x16xf32> to vector<128x16xbf16>
    %c0_6 = arith.constant 0 : index
    %c0_7 = arith.constant 0 : index
    %c0_8 = arith.constant 0 : index
    %10 = vector.load %arg4[%c0_6, %c0_7, %c0_8] : memref<1x128x16xbf16, #tpu.memory_space<vmem>>, vector<1x128x16xbf16>
    %11 = vector.shape_cast %10 : vector<1x128x16xbf16> to vector<128x16xbf16>
    %12 = vector.shape_cast %9 : vector<128x16xbf16> to vector<1x128x16xbf16>
    tpu.vector_store %arg4[%c0_6, %c0_7, %c0_8], %12 {strides = array<i32>} : memref<1x128x16xbf16, #tpu.memory_space<vmem>>, vector<1x128x16xbf16>,
    return
  }
  func.func @transform_0(%arg0: i32, %arg1: i32) -> (i32, i32) {
    %c0_i32 = arith.constant 0 : i32
    %c0_i32_0 = arith.constant 0 : i32
    %c0_i32_1 = arith.constant 0 : i32
    return %c0_i32, %c0_i32_0 : i32, i32
  }
  func.func @transform_1(%arg0: i32, %arg1: i32) -> (i32, i32, i32) {
    %c0_i32 = arith.constant 0 : i32
    %c0_i32_0 = arith.constant 0 : i32
    return %arg0, %c0_i32, %arg1 : i32, i32, i32
  }
  func.func @transform_2(%arg0: i32, %arg1: i32) -> (i32, i32, i32) {
    %c0_i32 = arith.constant 0 : i32
    %c0_i32_0 = arith.constant 0 : i32
    return %arg0, %c0_i32, %arg1 : i32, i32, i32
  }
}

</mosaic_0001>

<bundles_post_ra>
// kernel: discriminator_forward.5
= control target key start
LH: loop header
LB: loop body
LE: loop exit
PB: predicated region body
PF: predicated region fallthrough
CT: control target
= control target key end

     0   :  { %s1449_s9 = smov 0   ;;  %s1451_s10 = smov 0   ;;  %s1776_s0 = inlined_call_operand.vmem [shape: bf16[8,64], index: 0, kind: input, shape index: {}]   ;;  %s1777_s1 = inlined_call_operand.vmem [shape: bf16[2,64,4096], index: 1, kind: input, shape index: {}]   ;;  %s1778_s2 = inlined_call_operand.vmem [shape: bf16[2,8,4096], index: 2, kind: output, shape index: {}]  }
   0x1   :  { %s1453_s11 = smov 0   ;;  %s1455_s12 = smov 0  }
   0x2   :  { %s1457_s13 = smov 0   ;;  %s1459_s14 = smov 0  }
   0x3   :  { %s1461_s15 = smov 0  }
   0x4 LB: > { %s21_s16 = sadd.s32 1, %s1423_s13  ;;  %s24_s17 = sadd.s32 1, %s1427_s14  ;;  %s1431_s15 = sphi %s1461_s15, %s12_s15   ;;  %s1427_s14 = sphi %s1459_s14, %s1784_s14   ;;  %s1423_s13 = sphi %s1457_s13, %s1783_s13   ;;  %s1419_s12 = sphi %s1455_s12, %s1782_s12   ;;  %s1415_s11 = sphi %s1453_s11, %s1781_s11   ;;  %s1411_s10 = sphi %s1451_s10, %s1780_s10   ;;  %s1407_s9 = sphi %s1449_s9, %s1779_s9  }
   0x5   : > { %p22_p0 = scmp.ge.s32.totalorder %s21_s16, 2  ;;  %p61_p1 = scmp.ne.s32.totalorder %s1411_s10, %s1407_s9 }
   0x6   : > { %p62_p2 = scmp.eq.s32.totalorder %s1431_s15, 0  ;;  %s54_s21 = sadd.s32 1, %s1411_s10 }
   0x7   : > { %s1786_s16 = smov (%p22_p0, %s21_s16), 0  ;;  %s1788_s17 = smov (!%p22_p0, %s24_s17), %s1427_s14 }
   0x8   : > { %p63_p3 = por %p62_p2, %p61_p1  ;;  %p26_p4 = scmp.ge.s32.totalorder %s1788_s17, 2 }
   0x9   : > { %s50_s18 = ssub.s32 %s1423_s13, %s1786_s16  ;;  %p1220_p6 = scmp.ge.s32.totalorder %s1431_s15, 4 }
   0xa   : > { %s1790_s17 = smov (%p26_p4, %s1788_s17), 0 }
   0xb   : > { %s49_s19 = ssub.s32 %s1427_s14, %s1790_s17  ;;  %118 = sbr.rel (%p1220_p6) target bundleno = 57 (0x39), region = 20 }
   0xc   : > { %s51_s20 = sor.u32 %s50_s18, %s49_s19 }
   0xd   : > { %p52_p5 = scmp.eq.s32.totalorder %s51_s20, 0 }
   0xf   : > { %s1500_s22 = scalar_select %p52_p5, %s1411_s10, %s54_s21  }
  0x12   : > { %121 = sbr.rel (!%p63_p3) target bundleno = 57 (0x39), region = 24  ;;  %s123_s23 = sand.u32 (%p63_p3), 1, %s1411_s10  }
  0x13   : > { %s1222_s24 = sshll.u32 (%p63_p3), %s1423_s13, 4  ;;  %s1221_s25 = sshll.u32 (%p63_p3), %s123_s23, 9 }
  0x14   : > { %s1223_s26 = sshll.u32 (%p63_p3), %s1427_s14, 8  ;;  %s1514_s4 = scalar_lea.vmem (%p63_p3), [#allocation2], %s1221_s25 }
  0x15   : > { %s128_s27 = sadd.s32 (%p63_p3), %s1223_s26, %s1222_s24 }
  0x16   : > { %s1224_s28 = sshll.u32 (%p63_p3), %s128_s27, 2 }
  0x17   : > { %s1509_s3 = scalar_lea.vmem (%p63_p3), %s1777_s1, %s1224_s28 }
  0x18   : > { %v143_v0 = vld [vmem:[%s1509_s3] sm:$0xff] (%p63_p3)  ;;  %v145_v1 = vld [vmem:[%s1509_s3 + $0x8] sm:$0xff] (%p63_p3)  ;;  %v147_v2 = vld [vmem:[%s1509_s3 + $0x10] sm:$0xff] (%p63_p3) }
  0x19   : > { %144 = vst [vmem:[%s1514_s4] sm:$0xff] %v143_v0  ;;  %146 = vst [vmem:[%s1514_s4 + $0x8] sm:$0xff] %v145_v1  ;;  %v149_v3 = vld [vmem:[%s1509_s3 + $0x18] sm:$0xff]  ;;  %v151_v4 = vld [vmem:[%s1509_s3 + $0x20] sm:$0xff] }
  0x1a   : > { %148 = vst [vmem:[%s1514_s4 + $0x10] sm:$0xff] %v147_v2  ;;  %v153_v5 = vld [vmem:[%s1509_s3 + $0x28] sm:$0xff]  ;;  %150 = vst [vmem:[%s1514_s4 + $0x18] sm:$0xff] %v149_v3  ;;  %v155_v6 = vld [vmem:[%s1509_s3 + $0x30] sm:$0xff] }
  0x1b   : > { %152 = vst [vmem:[%s1514_s4 + $0x20] sm:$0xff] %v151_v4  ;;  %154 = vst [vmem:[%s1514_s4 + $0x28] sm:$0xff] %v153_v5  ;;  %v157_v7 = vld [vmem:[%s1509_s3 + $0x38] sm:$0xff]  ;;  %v159_v8 = vld [vmem:[%s1509_s3 + $0x80] sm:$0xff] }
  0x1c   : > { %156 = vst [vmem:[%s1514_s4 + $0x30] sm:$0xff] %v155_v6  ;;  %158 = vst [vmem:[%s1514_s4 + $0x38] sm:$0xff] %v157_v7  ;;  %v161_v9 = vld [vmem:[%s1509_s3 + $0x88] sm:$0xff]  ;;  %v163_v10 = vld [vmem:[%s1509_s3 + $0x90] sm:$0xff] }
  0x1d   : > { %160 = vst [vmem:[%s1514_s4 + $0x40] sm:$0xff] %v159_v8  ;;  %v165_v11 = vld [vmem:[%s1509_s3 + $0x98] sm:$0xff]  ;;  %162 = vst [vmem:[%s1514_s4 + $0x48] sm:$0xff] %v161_v9  ;;  %v167_v12 = vld [vmem:[%s1509_s3 + $0xa0] sm:$0xff] }
  0x1e   : > { %164 = vst [vmem:[%s1514_s4 + $0x50] sm:$0xff] %v163_v10  ;;  %166 = vst [vmem:[%s1514_s4 + $0x58] sm:$0xff] %v165_v11  ;;  %v169_v13 = vld [vmem:[%s1509_s3 + $0xa8] sm:$0xff]  ;;  %v171_v14 = vld [vmem:[%s1509_s3 + $0xb0] sm:$0xff] }
  0x1f   : > { %168 = vst [vmem:[%s1514_s4 + $0x60] sm:$0xff] %v167_v12  ;;  %170 = vst [vmem:[%s1514_s4 + $0x68] sm:$0xff] %v169_v13  ;;  %v173_v15 = vld [vmem:[%s1509_s3 + $0xb8] sm:$0xff]  ;;  %v175_v16 = vld [vmem:[%s1509_s3 + $0x100] sm:$0xff] }
  0x20   : > { %172 = vst [vmem:[%s1514_s4 + $0x70] sm:$0xff] %v171_v14  ;;  %v177_v17 = vld [vmem:[%s1509_s3 + $0x108] sm:$0xff]  ;;  %174 = vst [vmem:[%s1514_s4 + $0x78] sm:$0xff] %v173_v15  ;;  %v179_v18 = vld [vmem:[%s1509_s3 + $0x110] sm:$0xff] }
  0x21   : > { %176 = vst [vmem:[%s1514_s4 + $0x80] sm:$0xff] %v175_v16  ;;  %178 = vst [vmem:[%s1514_s4 + $0x88] sm:$0xff] %v177_v17  ;;  %v181_v19 = vld [vmem:[%s1509_s3 + $0x118] sm:$0xff]  ;;  %v183_v20 = vld [vmem:[%s1509_s3 + $0x120] sm:$0xff] }
  0x22   : > { %180 = vst [vmem:[%s1514_s4 + $0x90] sm:$0xff] %v179_v18  ;;  %182 = vst [vmem:[%s1514_s4 + $0x98] sm:$0xff] %v181_v19  ;;  %v185_v21 = vld [vmem:[%s1509_s3 + $0x128] sm:$0xff]  ;;  %v187_v22 = vld [vmem:[%s1509_s3 + $0x130] sm:$0xff] }
  0x23   : > { %184 = vst [vmem:[%s1514_s4 + $0xa0] sm:$0xff] %v183_v20  ;;  %v189_v23 = vld [vmem:[%s1509_s3 + $0x138] sm:$0xff]  ;;  %186 = vst [vmem:[%s1514_s4 + $0xa8] sm:$0xff] %v185_v21  ;;  %v191_v24 = vld [vmem:[%s1509_s3 + $0x180] sm:$0xff] }
  0x24   : > { %188 = vst [vmem:[%s1514_s4 + $0xb0] sm:$0xff] %v187_v22  ;;  %190 = vst [vmem:[%s1514_s4 + $0xb8] sm:$0xff] %v189_v23  ;;  %v193_v25 = vld [vmem:[%s1509_s3 + $0x188] sm:$0xff]  ;;  %v195_v26 = vld [vmem:[%s1509_s3 + $0x190] sm:$0xff] }
  0x25   : > { %192 = vst [vmem:[%s1514_s4 + $0xc0] sm:$0xff] %v191_v24  ;;  %194 = vst [vmem:[%s1514_s4 + $0xc8] sm:$0xff] %v193_v25  ;;  %v197_v27 = vld [vmem:[%s1509_s3 + $0x198] sm:$0xff]  ;;  %v199_v28 = vld [vmem:[%s1509_s3 + $0x1a0] sm:$0xff] }
  0x26   : > { %196 = vst [vmem:[%s1514_s4 + $0xd0] sm:$0xff] %v195_v26  ;;  %v201_v29 = vld [vmem:[%s1509_s3 + $0x1a8] sm:$0xff]  ;;  %198 = vst [vmem:[%s1514_s4 + $0xd8] sm:$0xff] %v197_v27  ;;  %v203_v30 = vld [vmem:[%s1509_s3 + $0x1b0] sm:$0xff] }
  0x27   : > { %200 = vst [vmem:[%s1514_s4 + $0xe0] sm:$0xff] %v199_v28  ;;  %202 = vst [vmem:[%s1514_s4 + $0xe8] sm:$0xff] %v201_v29  ;;  %v205_v31 = vld [vmem:[%s1509_s3 + $0x1b8] sm:$0xff]  ;;  %v207_v32 = vld [vmem:[%s1509_s3 + $0x200] sm:$0xff] }
  0x28   : > { %204 = vst [vmem:[%s1514_s4 + $0xf0] sm:$0xff] %v203_v30  ;;  %206 = vst [vmem:[%s1514_s4 + $0xf8] sm:$0xff] %v205_v31  ;;  %v209_v33 = vld [vmem:[%s1509_s3 + $0x208] sm:$0xff]  ;;  %v211_v34 = vld [vmem:[%s1509_s3 + $0x210] sm:$0xff] }
  0x29   : > { %208 = vst [vmem:[%s1514_s4 + $0x100] sm:$0xff] %v207_v32  ;;  %v213_v35 = vld [vmem:[%s1509_s3 + $0x218] sm:$0xff]  ;;  %210 = vst [vmem:[%s1514_s4 + $0x108] sm:$0xff] %v209_v33  ;;  %v215_v36 = vld [vmem:[%s1509_s3 + $0x220] sm:$0xff] }
  0x2a   : > { %212 = vst [vmem:[%s1514_s4 + $0x110] sm:$0xff] %v211_v34  ;;  %214 = vst [vmem:[%s1514_s4 + $0x118] sm:$0xff] %v213_v35  ;;  %v217_v37 = vld [vmem:[%s1509_s3 + $0x228] sm:$0xff]  ;;  %v219_v38 = vld [vmem:[%s1509_s3 + $0x230] sm:$0xff] }
  0x2b   : > { %216 = vst [vmem:[%s1514_s4 + $0x120] sm:$0xff] %v215_v36  ;;  %218 = vst [vmem:[%s1514_s4 + $0x128] sm:$0xff] %v217_v37  ;;  %v221_v39 = vld [vmem:[%s1509_s3 + $0x238] sm:$0xff]  ;;  %v223_v40 = vld [vmem:[%s1509_s3 + $0x280] sm:$0xff] }
  0x2c   : > { %220 = vst [vmem:[%s1514_s4 + $0x130] sm:$0xff] %v219_v38  ;;  %v225_v41 = vld [vmem:[%s1509_s3 + $0x288] sm:$0xff]  ;;  %222 = vst [vmem:[%s1514_s4 + $0x138] sm:$0xff] %v221_v39  ;;  %v227_v42 = vld [vmem:[%s1509_s3 + $0x290] sm:$0xff] }
  0x2d   : > { %224 = vst [vmem:[%s1514_s4 + $0x140] sm:$0xff] %v223_v40  ;;  %226 = vst [vmem:[%s1514_s4 + $0x148] sm:$0xff] %v225_v41  ;;  %v229_v43 = vld [vmem:[%s1509_s3 + $0x298] sm:$0xff]  ;;  %v231_v44 = vld [vmem:[%s1509_s3 + $0x2a0] sm:$0xff] }
  0x2e   : > { %228 = vst [vmem:[%s1514_s4 + $0x150] sm:$0xff] %v227_v42  ;;  %230 = vst [vmem:[%s1514_s4 + $0x158] sm:$0xff] %v229_v43  ;;  %v233_v45 = vld [vmem:[%s1509_s3 + $0x2a8] sm:$0xff]  ;;  %v235_v46 = vld [vmem:[%s1509_s3 + $0x2b0] sm:$0xff] }
  0x2f   : > { %232 = vst [vmem:[%s1514_s4 + $0x160] sm:$0xff] %v231_v44  ;;  %v237_v47 = vld [vmem:[%s1509_s3 + $0x2b8] sm:$0xff]  ;;  %234 = vst [vmem:[%s1514_s4 + $0x168] sm:$0xff] %v233_v45  ;;  %v239_v48 = vld [vmem:[%s1509_s3 + $0x300] sm:$0xff] }
  0x30   : > { %236 = vst [vmem:[%s1514_s4 + $0x170] sm:$0xff] %v235_v46  ;;  %238 = vst [vmem:[%s1514_s4 + $0x178] sm:$0xff] %v237_v47  ;;  %v241_v49 = vld [vmem:[%s1509_s3 + $0x308] sm:$0xff]  ;;  %v243_v50 = vld [vmem:[%s1509_s3 + $0x310] sm:$0xff] }
  0x31   : > { %240 = vst [vmem:[%s1514_s4 + $0x180] sm:$0xff] %v239_v48  ;;  %242 = vst [vmem:[%s1514_s4 + $0x188] sm:$0xff] %v241_v49  ;;  %v245_v51 = vld [vmem:[%s1509_s3 + $0x318] sm:$0xff]  ;;  %v247_v52 = vld [vmem:[%s1509_s3 + $0x320] sm:$0xff] }
  0x32   : > { %244 = vst [vmem:[%s1514_s4 + $0x190] sm:$0xff] %v243_v50  ;;  %v249_v53 = vld [vmem:[%s1509_s3 + $0x328] sm:$0xff]  ;;  %246 = vst [vmem:[%s1514_s4 + $0x198] sm:$0xff] %v245_v51  ;;  %v251_v54 = vld [vmem:[%s1509_s3 + $0x330] sm:$0xff] }
  0x33   : > { %248 = vst [vmem:[%s1514_s4 + $0x1a0] sm:$0xff] %v247_v52  ;;  %250 = vst [vmem:[%s1514_s4 + $0x1a8] sm:$0xff] %v249_v53  ;;  %v253_v55 = vld [vmem:[%s1509_s3 + $0x338] sm:$0xff]  ;;  %v255_v56 = vld [vmem:[%s1509_s3 + $0x380] sm:$0xff] }
  0x34   : > { %252 = vst [vmem:[%s1514_s4 + $0x1b0] sm:$0xff] %v251_v54  ;;  %254 = vst [vmem:[%s1514_s4 + $0x1b8] sm:$0xff] %v253_v55  ;;  %v257_v57 = vld [vmem:[%s1509_s3 + $0x388] sm:$0xff]  ;;  %v259_v58 = vld [vmem:[%s1509_s3 + $0x390] sm:$0xff] }
  0x35   : > { %256 = vst [vmem:[%s1514_s4 + $0x1c0] sm:$0xff] %v255_v56  ;;  %v261_v59 = vld [vmem:[%s1509_s3 + $0x398] sm:$0xff]  ;;  %258 = vst [vmem:[%s1514_s4 + $0x1c8] sm:$0xff] %v257_v57  ;;  %v263_v60 = vld [vmem:[%s1509_s3 + $0x3a0] sm:$0xff] }
  0x36   : > { %260 = vst [vmem:[%s1514_s4 + $0x1d0] sm:$0xff] %v259_v58  ;;  %262 = vst [vmem:[%s1514_s4 + $0x1d8] sm:$0xff] %v261_v59  ;;  %v265_v61 = vld [vmem:[%s1509_s3 + $0x3a8] sm:$0xff]  ;;  %v267_v62 = vld [vmem:[%s1509_s3 + $0x3b0] sm:$0xff] }
  0x37   : > { %264 = vst [vmem:[%s1514_s4 + $0x1e0] sm:$0xff] %v263_v60  ;;  %266 = vst [vmem:[%s1514_s4 + $0x1e8] sm:$0xff] %v265_v61  ;;  %v269_v63 = vld [vmem:[%s1509_s3 + $0x3b8] sm:$0xff] }
  0x38   : > { %268 = vst [vmem:[%s1514_s4 + $0x1f0] sm:$0xff] %v267_v62  ;;  %270 = vst [vmem:[%s1514_s4 + $0x1f8] sm:$0xff] %v269_v63 }
  0x39 PF: > { %p1225_p7 = scmp.ge.s32.totalorder %s1431_s15, 1  ;;  %p275_p8 = scmp.lt.s32.totalorder %s1431_s15, 5 }
  0x3b   : > { %p276_p9 = pnand %p1225_p7, %p275_p8 }
  0x3c   : > { %s282_s5 = sand.u32 (!%p276_p9), 1, %s1407_s9   ;;  %v1433_v0 = vmov (!%p276_p9), 0   ;;  %v1675_v43 = vld [vmem:[%s1776_s0] sm:$0xf] (!%p276_p9)  ;;  %vm704_vm0 = vcmask (!%p276_p9), 523264   ;;  %s1227_s18 = sshll.u32 (!%p276_p9), %s1415_s11, 4 }
  0x3d   : > { %279 = sbr.rel (%p276_p9) target bundleno = 349 (0x15d), region = 47  ;;  %s1226_s6 = sshll.u32 (!%p276_p9), %s282_s5, 9  ;;  %740 = vmatprep.mubr.bf16.mxu0 (!%p276_p9), %v1433_v0  ;;  %781 = vmatprep.mubr.bf16.mxu1 (!%p276_p9), %v1433_v0 }
  0x3e   : > { %s1646_s7 = scalar_lea.vmem (!%p276_p9), [#allocation2], %s1226_s6  ;;  %p309_p10 = scmp.lt.s32.totalorder (!%p276_p9), %s1419_s12, 1 }
  0x3f   : > { %v320_v1 = vld [vmem:[%s1646_s7] sm:$0xff] (!%p276_p9)  ;;  %v321_v3 = vld [vmem:[%s1646_s7 + $0x8] sm:$0xff] (!%p276_p9)  ;;  %v322_v31 = vld [vmem:[%s1646_s7 + $0x10] sm:$0xff] (!%p276_p9)  ;;  %p311_p11 = scmp.lt.s32.totalorder (!%p276_p9), %s1227_s18, 31 }
  0x40   : > { %v328_v2 = vld [vmem:[%s1646_s7 + $0x40] sm:$0xff] (!%p276_p9)  ;;  %v329_v5 = vld [vmem:[%s1646_s7 + $0x48] sm:$0xff] (!%p276_p9)  ;;  %v330_v32 = vld [vmem:[%s1646_s7 + $0x50] sm:$0xff] (!%p276_p9) }
  0x41   : > { %v1231_v4 = vcombine.high (!%p276_p9), %v320_v1, %v328_v2  ;;  %v1230_v6 = vcombine.low (!%p276_p9), %v320_v1, %v328_v2  ;;  %v336_v7 = vld [vmem:[%s1646_s7 + $0x80] sm:$0xff] (!%p276_p9)  ;;  %v1233_v9 = vcombine.high (!%p276_p9), %v321_v3, %v329_v5  ;;  %v1232_v10 = vcombine.low (!%p276_p9), %v321_v3, %v329_v5  ;;  %v337_v12 = vld [vmem:[%s1646_s7 + $0x88] sm:$0xff] (!%p276_p9)  ;;  %v323_v33 = vld [vmem:[%s1646_s7 + $0x18] sm:$0xff] (!%p276_p9) }
  0x42   : > { %v344_v8 = vld [vmem:[%s1646_s7 + $0xc0] sm:$0xff] (!%p276_p9)  ;;  %v345_v13 = vld [vmem:[%s1646_s7 + $0xc8] sm:$0xff] (!%p276_p9)  ;;  %v331_v34 = vld [vmem:[%s1646_s7 + $0x58] sm:$0xff] (!%p276_p9)  ;;  %v1235_v37 = vcombine.high (!%p276_p9), %v322_v31, %v330_v32  ;;  %v1234_v44 = vcombine.low (!%p276_p9), %v322_v31, %v330_v32 }
  0x43   : > { %v1247_v11 = vcombine.high (!%p276_p9), %v336_v7, %v344_v8  ;;  %v352_v14 = vld [vmem:[%s1646_s7 + $0x100] sm:$0xff] (!%p276_p9)  ;;  %708 = vmatprep.subr.bf16.mxu0 (!%p276_p9), %v1231_v4  ;;  %v1249_v15 = vcombine.high (!%p276_p9), %v337_v12, %v345_v13  ;;  %v353_v17 = vld [vmem:[%s1646_s7 + $0x108] sm:$0xff] (!%p276_p9)  ;;  %749 = vmatprep.subr.bf16.mxu1 (!%p276_p9), %v1233_v9  ;;  %v1246_v19 = vcombine.low (!%p276_p9), %v336_v7, %v344_v8  ;;  %v338_v39 = vld [vmem:[%s1646_s7 + $0x90] sm:$0xff] (!%p276_p9) }
  0x44   : > { %v360_v16 = vld [vmem:[%s1646_s7 + $0x140] sm:$0xff]  ;;  %v361_v18 = vld [vmem:[%s1646_s7 + $0x148] sm:$0xff]  ;;  %709 = vmatpush1.bf16.msra.mxu0 %v1230_v6  ;;  %750 = vmatpush1.bf16.msra.mxu1 %v1232_v10  ;;  %v1248_v20 = vcombine.low %v337_v12, %v345_v13  ;;  %v1237_v38 = vcombine.high %v323_v33, %v331_v34  ;;  %v346_v40 = vld [vmem:[%s1646_s7 + $0xd0] sm:$0xff]  ;;  %v1236_v45 = vcombine.low %v323_v33, %v331_v34  ;;  %s1792_s12 = smov (!%p309_p10, %s1419_s12), 1  ;;  %s1794_s18 = smov (!%p311_p11, %s1227_s18), 31 }
  0x45   : > { %710 = vmatprep.subr.bf16.mxu0 %v1247_v11  ;;  %v1263_v21 = vcombine.high %v352_v14, %v360_v16  ;;  %751 = vmatprep.subr.bf16.mxu1 %v1249_v15  ;;  %v1265_v22 = vcombine.high %v353_v17, %v361_v18  ;;  %v368_v23 = vld [vmem:[%s1646_s7 + $0x180] sm:$0xff]  ;;  %v369_v25 = vld [vmem:[%s1646_s7 + $0x188] sm:$0xff]  ;;  %v1262_v27 = vcombine.low %v352_v14, %v360_v16  ;;  %v339_v41 = vld [vmem:[%s1646_s7 + $0x98] sm:$0xff]  ;;  %s1228_s19 = sshll.u32 %s1792_s12, 5 }
  0x46   : > { %v376_v24 = vld [vmem:[%s1646_s7 + $0x1c0] sm:$0xff]  ;;  %v377_v26 = vld [vmem:[%s1646_s7 + $0x1c8] sm:$0xff]  ;;  %v1264_v28 = vcombine.low %v353_v17, %v361_v18  ;;  %v347_v42 = vld [vmem:[%s1646_s7 + $0xd8] sm:$0xff]  ;;  %v1251_v46 = vcombine.high %v338_v39, %v346_v40  ;;  %v1250_v52 = vcombine.low %v338_v39, %v346_v40  ;;  %s314_s20 = sadd.s32 %s1228_s19, %s1794_s18 }
  0x47   : > { %v1279_v29 = vcombine.high %v368_v23, %v376_v24  ;;  %v1281_v30 = vcombine.high %v369_v25, %v377_v26  ;;  %v1278_v35 = vcombine.low %v368_v23, %v376_v24  ;;  %v1280_v36 = vcombine.low %v369_v25, %v377_v26  ;;  %v354_v48 = vld [vmem:[%s1646_s7 + $0x110] sm:$0xff]  ;;  %v355_v50 = vld [vmem:[%s1646_s7 + $0x118] sm:$0xff]  ;;  %v324_v1 = vld [vmem:[%s1646_s7 + $0x20] sm:$0xff]  ;;  %s1229_s21 = sshll.u32 %s314_s20, 2 }
  0x48   : > { %711 = vmatpush1.bf16.msra.mxu0 %v1246_v19  ;;  %752 = vmatpush1.bf16.msra.mxu1 %v1248_v20  ;;  %v1253_v47 = vcombine.high %v339_v41, %v347_v42  ;;  %v362_v49 = vld [vmem:[%s1646_s7 + $0x150] sm:$0xff]  ;;  %v363_v51 = vld [vmem:[%s1646_s7 + $0x158] sm:$0xff]  ;;  %v1252_v53 = vcombine.low %v339_v41, %v347_v42  ;;  %v332_v2 = vld [vmem:[%s1646_s7 + $0x60] sm:$0xff]  ;;  %s1745_s25 = scalar_lea.vmem %s1778_s2, %s1229_s21 }
  0x49   : > { %712 = vmatprep.subr.bf16.mxu0 %v1263_v21  ;;  %753 = vmatprep.subr.bf16.mxu1 %v1265_v22  ;;  %v1267_v54 = vcombine.high %v354_v48, %v362_v49  ;;  %v1269_v55 = vcombine.high %v355_v50, %v363_v51  ;;  %v370_v56 = vld [vmem:[%s1646_s7 + $0x190] sm:$0xff]  ;;  %v371_v58 = vld [vmem:[%s1646_s7 + $0x198] sm:$0xff]  ;;  %v1266_v60 = vcombine.low %v354_v48, %v362_v49  ;;  %v325_v3 = vld [vmem:[%s1646_s7 + $0x28] sm:$0xff] }
  0x4a   : > { %v378_v57 = vld [vmem:[%s1646_s7 + $0x1d0] sm:$0xff]  ;;  %v379_v59 = vld [vmem:[%s1646_s7 + $0x1d8] sm:$0xff]  ;;  %v1268_v61 = vcombine.low %v355_v50, %v363_v51  ;;  %v333_v4 = vld [vmem:[%s1646_s7 + $0x68] sm:$0xff]  ;;  %v1239_v7 = vcombine.high %v324_v1, %v332_v2  ;;  %v1238_v13 = vcombine.low %v324_v1, %v332_v2 }
  0x4b   : > { %v1283_v62 = vcombine.high %v370_v56, %v378_v57  ;;  %v1285_v63 = vcombine.high %v371_v58, %v379_v59  ;;  %v1282_v5 = vcombine.low %v370_v56, %v378_v57  ;;  %v1284_v6 = vcombine.low %v371_v58, %v379_v59  ;;  %v340_v9 = vld [vmem:[%s1646_s7 + $0xa0] sm:$0xff]  ;;  %v341_v11 = vld [vmem:[%s1646_s7 + $0xa8] sm:$0xff]  ;;  %v326_v33 = vld [vmem:[%s1646_s7 + $0x30] sm:$0xff] }
  0x4c   : > { %713 = vmatpush1.bf16.msra.mxu0 %v1262_v27  ;;  %754 = vmatpush1.bf16.msra.mxu1 %v1264_v28  ;;  %v1241_v8 = vcombine.high %v325_v3, %v333_v4  ;;  %v348_v10 = vld [vmem:[%s1646_s7 + $0xe0] sm:$0xff]  ;;  %v349_v12 = vld [vmem:[%s1646_s7 + $0xe8] sm:$0xff]  ;;  %v1240_v14 = vcombine.low %v325_v3, %v333_v4  ;;  %v334_v34 = vld [vmem:[%s1646_s7 + $0x70] sm:$0xff] }
  0x4d   : > { %714 = vmatprep.subr.bf16.mxu0 %v1279_v29  ;;  %755 = vmatprep.subr.bf16.mxu1 %v1281_v30  ;;  %v1255_v15 = vcombine.high %v340_v9, %v348_v10  ;;  %v1257_v16 = vcombine.high %v341_v11, %v349_v12  ;;  %v356_v17 = vld [vmem:[%s1646_s7 + $0x120] sm:$0xff]  ;;  %v357_v19 = vld [vmem:[%s1646_s7 + $0x128] sm:$0xff]  ;;  %v1254_v21 = vcombine.low %v340_v9, %v348_v10  ;;  %v342_v41 = vld [vmem:[%s1646_s7 + $0xb0] sm:$0xff] }
  0x4e   : > { %v364_v18 = vld [vmem:[%s1646_s7 + $0x160] sm:$0xff]  ;;  %v365_v20 = vld [vmem:[%s1646_s7 + $0x168] sm:$0xff]  ;;  %v1256_v22 = vcombine.low %v341_v11, %v349_v12  ;;  %v1243_v39 = vcombine.high %v326_v33, %v334_v34  ;;  %v350_v42 = vld [vmem:[%s1646_s7 + $0xf0] sm:$0xff] }
  0x4f   : > { %v1271_v23 = vcombine.high %v356_v17, %v364_v18  ;;  %v1273_v24 = vcombine.high %v357_v19, %v365_v20  ;;  %v372_v25 = vld [vmem:[%s1646_s7 + $0x1a0] sm:$0xff]  ;;  %v373_v27 = vld [vmem:[%s1646_s7 + $0x1a8] sm:$0xff]  ;;  %v1270_v29 = vcombine.low %v356_v17, %v364_v18  ;;  %v1272_v30 = vcombine.low %v357_v19, %v365_v20  ;;  %v358_v50 = vld [vmem:[%s1646_s7 + $0x130] sm:$0xff] }
  0x50   : > { %715 = vmatpush1.bf16.msra.mxu0 %v1278_v35  ;;  %756 = vmatpush1.bf16.msra.mxu1 %v1280_v36  ;;  %v380_v26 = vld [vmem:[%s1646_s7 + $0x1e0] sm:$0xff]  ;;  %v381_v28 = vld [vmem:[%s1646_s7 + $0x1e8] sm:$0xff]  ;;  %v327_v35 = vld [vmem:[%s1646_s7 + $0x38] sm:$0xff]  ;;  %v1259_v48 = vcombine.high %v342_v41, %v350_v42 }
  0x51   : > { %790 = vmatprep.subr.bf16.mxu0 %v1235_v37  ;;  %831 = vmatprep.subr.bf16.mxu1 %v1237_v38  ;;  %v1287_v31 = vcombine.high %v372_v25, %v380_v26  ;;  %v1289_v32 = vcombine.high %v373_v27, %v381_v28  ;;  %v335_v36 = vld [vmem:[%s1646_s7 + $0x78] sm:$0xff]  ;;  %v1286_v37 = vcombine.low %v372_v25, %v380_v26  ;;  %v366_v51 = vld [vmem:[%s1646_s7 + $0x170] sm:$0xff] }
  0x52   : > { %v1288_v38 = vcombine.low %v373_v27, %v381_v28  ;;  %v1245_v40 = vcombine.high %v327_v35, %v335_v36  ;;  %v1275_v56 = vcombine.high %v358_v50, %v366_v51  ;;  %v374_v58 = vld [vmem:[%s1646_s7 + $0x1b0] sm:$0xff] }
  0x53   : > { %1294 = vmatmul.mubr.msk.bf16.vlgmr.msra.gmra.mrb[0].mxu0 %vm704_vm0, %v1675_v43  ;;  %1295 = vmatmul.mubr.msk.bf16.vlgmr.msra.gmra.mrb[0].mxu1 %vm704_vm0, %v1675_v43  ;;  %v382_v59 = vld [vmem:[%s1646_s7 + $0x1f0] sm:$0xff] }
  0x54   : > { %791 = vmatpush1.bf16.msra.mxu0 %v1234_v44  ;;  %832 = vmatpush1.bf16.msra.mxu1 %v1236_v45  ;;  %v343_v44 = vld [vmem:[%s1646_s7 + $0xb8] sm:$0xff]  ;;  %v1291_v1 = vcombine.high %v374_v58, %v382_v59  ;;  %v1290_v3 = vcombine.low %v374_v58, %v382_v59 }
  0x55   : > { %792 = vmatprep.subr.bf16.mxu0 %v1251_v46  ;;  %833 = vmatprep.subr.bf16.mxu1 %v1253_v47  ;;  %v351_v45 = vld [vmem:[%s1646_s7 + $0xf8] sm:$0xff]  ;;  %v1242_v46 = vcombine.low %v326_v33, %v334_v34  ;;  %v1244_v47 = vcombine.low %v327_v35, %v335_v36 }
  0x56   : > { %822 = vmatprep.mubr.bf16.mxu0 %v1433_v0  ;;  %863 = vmatprep.mubr.bf16.mxu1 %v1433_v0  ;;  %v1261_v49 = vcombine.high %v343_v44, %v351_v45 }
  0x58   : > { %793 = vmatpush1.bf16.msra.mxu0 %v1250_v52  ;;  %834 = vmatpush1.bf16.msra.mxu1 %v1252_v53  ;;  %v359_v52 = vld [vmem:[%s1646_s7 + $0x138] sm:$0xff] }
  0x59   : > { %794 = vmatprep.subr.bf16.mxu0 %v1267_v54  ;;  %835 = vmatprep.subr.bf16.mxu1 %v1269_v55  ;;  %v367_v53 = vld [vmem:[%s1646_s7 + $0x178] sm:$0xff]  ;;  %v1258_v54 = vcombine.low %v342_v41, %v350_v42  ;;  %v1260_v55 = vcombine.low %v343_v44, %v351_v45 }
  0x5a   : > { %v1277_v57 = vcombine.high %v359_v52, %v367_v53 }
  0x5c   : > { %795 = vmatpush1.bf16.msra.mxu0 %v1266_v60  ;;  %836 = vmatpush1.bf16.msra.mxu1 %v1268_v61  ;;  %v375_v60 = vld [vmem:[%s1646_s7 + $0x1b8] sm:$0xff] }
  0x5d   : > { %796 = vmatprep.subr.bf16.mxu0 %v1283_v62  ;;  %837 = vmatprep.subr.bf16.mxu1 %v1285_v63  ;;  %v383_v61 = vld [vmem:[%s1646_s7 + $0x1f8] sm:$0xff]  ;;  %v1274_v62 = vcombine.low %v358_v50, %v366_v51  ;;  %v1276_v63 = vcombine.low %v359_v52, %v367_v53 }
  0x5e   : > { %v1293_v2 = vcombine.high %v375_v60, %v383_v61  ;;  %v1292_v4 = vcombine.low %v375_v60, %v383_v61 }
  0x60   : > { %797 = vmatpush1.bf16.msra.mxu0 %v1282_v5  ;;  %838 = vmatpush1.bf16.msra.mxu1 %v1284_v6 }
  0x61   : > { %872 = vmatprep.subr.bf16.mxu0 %v1239_v7  ;;  %913 = vmatprep.subr.bf16.mxu1 %v1241_v8 }
  0x63   : > { %1296 = vmatmul.mubr.msk.bf16.vlgmr.msra.gmra.mrb[4].mxu0 %vm704_vm0, %v1675_v43  ;;  %1297 = vmatmul.mubr.msk.bf16.vlgmr.msra.gmra.mrb[4].mxu1 %vm704_vm0, %v1675_v43 }
  0x64   : > { %873 = vmatpush1.bf16.msra.mxu0 %v1238_v13  ;;  %914 = vmatpush1.bf16.msra.mxu1 %v1240_v14 }
  0x65   : > { %874 = vmatprep.subr.bf16.mxu0 %v1255_v15  ;;  %915 = vmatprep.subr.bf16.mxu1 %v1257_v16 }
  0x66   : > { %904 = vmatprep.mubr.bf16.mxu0 %v1433_v0  ;;  %945 = vmatprep.mubr.bf16.mxu1 %v1433_v0 }
  0x68   : > { %875 = vmatpush1.bf16.msra.mxu0 %v1254_v21  ;;  %916 = vmatpush1.bf16.msra.mxu1 %v1256_v22 }
  0x69   : > { %876 = vmatprep.subr.bf16.mxu0 %v1271_v23  ;;  %917 = vmatprep.subr.bf16.mxu1 %v1273_v24 }
  0x6c   : > { %877 = vmatpush1.bf16.msra.mxu0 %v1270_v29  ;;  %918 = vmatpush1.bf16.msra.mxu1 %v1272_v30 }
  0x6d   : > { %878 = vmatprep.subr.bf16.mxu0 %v1287_v31  ;;  %919 = vmatprep.subr.bf16.mxu1 %v1289_v32 }
  0x70   : > { %879 = vmatpush1.bf16.msra.mxu0 %v1286_v37  ;;  %920 = vmatpush1.bf16.msra.mxu1 %v1288_v38 }
  0x71   : > { %954 = vmatprep.subr.bf16.mxu0 %v1243_v39  ;;  %995 = vmatprep.subr.bf16.mxu1 %v1245_v40 }
  0x73   : > { %1298 = vmatmul.mubr.msk.bf16.vlgmr.msra.gmra.mrb[8].mxu0 %vm704_vm0, %v1675_v43  ;;  %1299 = vmatmul.mubr.msk.bf16.vlgmr.msra.gmra.mrb[8].mxu1 %vm704_vm0, %v1675_v43 }
  0x74   : > { %955 = vmatpush1.bf16.msra.mxu0 %v1242_v46  ;;  %996 = vmatpush1.bf16.msra.mxu1 %v1244_v47 }
  0x75   : > { %956 = vmatprep.subr.bf16.mxu0 %v1259_v48  ;;  %997 = vmatprep.subr.bf16.mxu1 %v1261_v49 }
  0x76   : > { %986 = vmatprep.mubr.bf16.mxu0 %v1433_v0  ;;  %1027 = vmatprep.mubr.bf16.mxu1 %v1433_v0 }
  0x78   : > { %957 = vmatpush1.bf16.msra.mxu0 %v1258_v54  ;;  %998 = vmatpush1.bf16.msra.mxu1 %v1260_v55 }
  0x79   : > { %958 = vmatprep.subr.bf16.mxu0 %v1275_v56  ;;  %999 = vmatprep.subr.bf16.mxu1 %v1277_v57 }
  0x7c   : > { %959 = vmatpush1.bf16.msra.mxu0 %v1274_v62  ;;  %1000 = vmatpush1.bf16.msra.mxu1 %v1276_v63 }
  0x7d   : > { %960 = vmatprep.subr.bf16.mxu0 %v1291_v1  ;;  %1001 = vmatprep.subr.bf16.mxu1 %v1293_v2 }
  0x80   : > { %961 = vmatpush1.bf16.msra.mxu0 %v1290_v3  ;;  %1002 = vmatpush1.bf16.msra.mxu1 %v1292_v4 }
  0x83   : > { %1300 = vmatmul.mubr.msk.bf16.vlgmr.msra.gmra.mrb[12].mxu0 %vm704_vm0, %v1675_v43  ;;  %1301 = vmatmul.mubr.msk.bf16.vlgmr.msra.gmra.mrb[12].mxu1 %vm704_vm0, %v1675_v43 }
 0x126   : > { %v742_v0 = vpop.f32.mrb[0].mxu0  ;;  %v783_v6 = vpop.f32.mrb[0].mxu1 }
 0x127   : > { %v1036_v5 = vmax.f32 %v742_v0, 0.0  ;;  %v744_v7 = vpop.f32.mrb[1].mxu0  ;;  %v1038_v8 = vmax.f32 %v783_v6, 0.0  ;;  %v785_v10 = vpop.f32.mrb[1].mxu1 }
 0x128   : > { %v1037_v9 = vmax.f32 %v744_v7, 0.0  ;;  %v746_v11 = vpop.f32.mrb[2].mxu0  ;;  %v1039_v43 = vmax.f32 %v785_v10, 0.0  ;;  %v787_v12 = vpop.f32.mrb[2].mxu1 }
 0x129   : > { %v747_v13 = vpop.f32.mrb[3].mxu0  ;;  %v788_v15 = vpop.f32.mrb[3].mxu1 }
 0x12a   : > { %v1312_v14 = vpack.c.bf16 %v1037_v9, %v1036_v5  ;;  %v1313_v16 = vpack.c.bf16 %v1039_v43, %v1038_v8 }
 0x12c   : > { %1116 = vst [vmem:[%s1745_s25] sm:$0xff] %v1312_v14  ;;  %1117 = vst [vmem:[%s1745_s25 + $0x8] sm:$0xff] %v1313_v16 }
 0x136   : > { %v824_v17 = vpop.f32.mrb[4].mxu0  ;;  %v865_v19 = vpop.f32.mrb[4].mxu1 }
 0x137   : > { %v1040_v18 = vmax.f32 %v824_v17, 0.0  ;;  %v826_v20 = vpop.f32.mrb[5].mxu0  ;;  %v1042_v21 = vmax.f32 %v865_v19, 0.0  ;;  %v867_v23 = vpop.f32.mrb[5].mxu1 }
 0x138   : > { %v1041_v22 = vmax.f32 %v826_v20, 0.0  ;;  %v828_v24 = vpop.f32.mrb[6].mxu0  ;;  %v1043_v25 = vmax.f32 %v867_v23, 0.0  ;;  %v869_v26 = vpop.f32.mrb[6].mxu1 }
 0x139   : > { %v829_v27 = vpop.f32.mrb[7].mxu0  ;;  %v870_v29 = vpop.f32.mrb[7].mxu1 }
 0x13a   : > { %v1314_v28 = vpack.c.bf16 %v1041_v22, %v1040_v18  ;;  %v1315_v30 = vpack.c.bf16 %v1043_v25, %v1042_v21 }
 0x13c   : > { %1118 = vst [vmem:[%s1745_s25 + $0x10] sm:$0xff] %v1314_v28  ;;  %1119 = vst [vmem:[%s1745_s25 + $0x18] sm:$0xff] %v1315_v30 }
 0x146   : > { %v906_v31 = vpop.f32.mrb[8].mxu0  ;;  %v947_v33 = vpop.f32.mrb[8].mxu1 }
 0x147   : > { %v1044_v32 = vmax.f32 %v906_v31, 0.0  ;;  %v908_v34 = vpop.f32.mrb[9].mxu0  ;;  %v1046_v35 = vmax.f32 %v947_v33, 0.0  ;;  %v949_v37 = vpop.f32.mrb[9].mxu1 }
 0x148   : > { %v1045_v36 = vmax.f32 %v908_v34, 0.0  ;;  %v910_v38 = vpop.f32.mrb[10].mxu0  ;;  %v1047_v39 = vmax.f32 %v949_v37, 0.0  ;;  %v951_v40 = vpop.f32.mrb[10].mxu1 }
 0x149   : > { %v911_v41 = vpop.f32.mrb[11].mxu0  ;;  %v952_v44 = vpop.f32.mrb[11].mxu1 }
 0x14a   : > { %v1316_v42 = vpack.c.bf16 %v1045_v36, %v1044_v32  ;;  %v1317_v45 = vpack.c.bf16 %v1047_v39, %v1046_v35 }
 0x14c   : > { %1120 = vst [vmem:[%s1745_s25 + $0x20] sm:$0xff] %v1316_v42  ;;  %1121 = vst [vmem:[%s1745_s25 + $0x28] sm:$0xff] %v1317_v45 }
 0x156   : > { %v988_v46 = vpop.f32.mrb[12].mxu0  ;;  %v1029_v48 = vpop.f32.mrb[12].mxu1 }
 0x157   : > { %v1048_v47 = vmax.f32 %v988_v46, 0.0  ;;  %v990_v49 = vpop.f32.mrb[13].mxu0  ;;  %v1050_v50 = vmax.f32 %v1029_v48, 0.0  ;;  %v1031_v52 = vpop.f32.mrb[13].mxu1 }
 0x158   : > { %v1049_v51 = vmax.f32 %v990_v49, 0.0  ;;  %v992_v53 = vpop.f32.mrb[14].mxu0  ;;  %v1051_v54 = vmax.f32 %v1031_v52, 0.0  ;;  %v1033_v55 = vpop.f32.mrb[14].mxu1 }
 0x159   : > { %v993_v56 = vpop.f32.mrb[15].mxu0  ;;  %v1034_v58 = vpop.f32.mrb[15].mxu1 }
 0x15a   : > { %v1318_v57 = vpack.c.bf16 %v1049_v51, %v1048_v47  ;;  %v1319_v59 = vpack.c.bf16 %v1051_v54, %v1050_v50 }
 0x15c   : > { %1122 = vst [vmem:[%s1745_s25 + $0x30] sm:$0xff] %v1318_v57  ;;  %1123 = vst [vmem:[%s1745_s25 + $0x38] sm:$0xff] %v1319_v59 }
 0x15d PF: > { %s12_s15 = sadd.s32 1, %s1431_s15   ;;  %s1779_s9 = smov %s1411_s10 }
 0x15e   : > { %p9_p12 = scmp.ge.s32.totalorder %s12_s15, 6   ;;  %s1780_s10 = smov %s1500_s22 }
 0x15f   : > { %s1781_s11 = smov %s1423_s13  ;;  %s1782_s12 = smov %s1427_s14 }
 0x160   : > { %s1783_s13 = smov %s1786_s16  ;;  %s1784_s14 = smov %s1790_s17 }
 0x161   :  { %11 = sbr.rel (!%p9_p12) target bundleno = 4 (0x4), region = 86 }

// kernel: discriminator_forward.6
= control target key start
LH: loop header
LB: loop body
LE: loop exit
PB: predicated region body
PF: predicated region fallthrough
CT: control target
= control target key end

     0   :  { %s1099_s9 = smov 0   ;;  %s1101_s10 = smov 0   ;;  %s1225_s0 = inlined_call_operand.vmem [shape: bf16[16,128], index: 0, kind: input, shape index: {}]   ;;  %s1226_s1 = inlined_call_operand.vmem [shape: bf16[2,128,1024], index: 1, kind: input, shape index: {}]   ;;  %s1227_s2 = inlined_call_operand.vmem [shape: bf16[2,16,1024], index: 2, kind: output, shape index: {}]  }
   0x1   :  { %s1103_s11 = smov 0  }
   0x2 LB: > { %s24_s12 = sadd.s32 1, %s1077_s10  ;;  %p943_p0 = scmp.ge.s32.totalorder %s1081_s11, 1  ;;  %s1081_s11 = sphi %s1103_s11, %s12_s11   ;;  %s1077_s10 = sphi %s1101_s10, %s1229_s10   ;;  %s1073_s9 = sphi %s1099_s9, %s1228_s9  }
   0x3   : > { %p26_p1 = scmp.ge.s32.totalorder %s24_s12, 2  ;;  %p133_p2 = scmp.lt.s32.totalorder %s1081_s11, 3 }
   0x5   : > { %s1231_s12 = smov (%p26_p1, %s24_s12), 0  ;;  %p134_p3 = pnand %p943_p0, %p133_p2 }
   0x6   : > { %p164_p4 = scmp.lt.s32.totalorder (!%p134_p3), %s1073_s9, 1  ;;  %v1083_v0 = vmov (!%p134_p3), 0  }
   0x7   : > { %137 = sbr.rel (%p134_p3) target bundleno = 309 (0x135), region = 28  ;;  %608 = vmatprep.mubr.bf16.mxu0 (!%p134_p3), %v1083_v0  ;;  %651 = vmatprep.mubr.bf16.mxu1 (!%p134_p3), %v1083_v0 }
   0xe   : > { %s1233_s9 = smov (!%p164_p4, %s1073_s9), 1 }
   0xf   : > { %s1023_s13 = sshll.u32 %s1233_s9, 9  ;;  %s1024_s19 = sshll.u32 %s1233_s9, 6 }
  0x10   : > { %s1125_s16 = scalar_lea.vmem %s1226_s1, %s1023_s13  ;;  %s1206_s22 = scalar_lea.vmem %s1227_s2, %s1024_s19 }
  0x11   : > { %v186_v1 = vld [vmem:[%s1125_s16] sm:$0xff]  ;;  %v187_v3 = vld [vmem:[%s1125_s16 + $0x8] sm:$0xff]  ;;  %v188_v63 = vld [vmem:[%s1125_s16 + $0x10] sm:$0xff] }
  0x12   : > { %v190_v2 = vld [vmem:[%s1125_s16 + $0x20] sm:$0xff]  ;;  %v191_v5 = vld [vmem:[%s1125_s16 + $0x28] sm:$0xff] }
  0x13   : > { %v950_v4 = vcombine.high %v186_v1, %v190_v2  ;;  %v949_v6 = vcombine.low %v186_v1, %v190_v2  ;;  %v194_v7 = vld [vmem:[%s1125_s16 + $0x40] sm:$0xff]  ;;  %v952_v9 = vcombine.high %v187_v3, %v191_v5  ;;  %v951_v10 = vcombine.low %v187_v3, %v191_v5  ;;  %v195_v12 = vld [vmem:[%s1125_s16 + $0x48] sm:$0xff]  ;;  %v192_v1 = vld [vmem:[%s1125_s16 + $0x30] sm:$0xff] }
  0x14   : > { %v198_v8 = vld [vmem:[%s1125_s16 + $0x60] sm:$0xff]  ;;  %v199_v13 = vld [vmem:[%s1125_s16 + $0x68] sm:$0xff]  ;;  %v189_v2 = vld [vmem:[%s1125_s16 + $0x18] sm:$0xff] }
  0x15   : > { %v958_v11 = vcombine.high %v194_v7, %v198_v8  ;;  %v202_v14 = vld [vmem:[%s1125_s16 + $0x80] sm:$0xff]  ;;  %576 = vmatprep.subr.bf16.mxu0 %v950_v4  ;;  %v960_v15 = vcombine.high %v195_v12, %v199_v13  ;;  %v203_v17 = vld [vmem:[%s1125_s16 + $0x88] sm:$0xff]  ;;  %619 = vmatprep.subr.bf16.mxu1 %v952_v9  ;;  %v957_v19 = vcombine.low %v194_v7, %v198_v8  ;;  %v193_v3 = vld [vmem:[%s1125_s16 + $0x38] sm:$0xff] }
  0x16   : > { %v206_v16 = vld [vmem:[%s1125_s16 + $0xa0] sm:$0xff]  ;;  %v207_v18 = vld [vmem:[%s1125_s16 + $0xa8] sm:$0xff]  ;;  %577 = vmatpush1.bf16.msra.mxu0 %v949_v6  ;;  %620 = vmatpush1.bf16.msra.mxu1 %v951_v10  ;;  %v959_v20 = vcombine.low %v195_v12, %v199_v13  ;;  %v954_v6 = vcombine.high %v188_v63, %v192_v1  ;;  %v956_v7 = vcombine.high %v189_v2, %v193_v3  ;;  %v196_v8 = vld [vmem:[%s1125_s16 + $0x50] sm:$0xff] }
  0x17   : > { %578 = vmatprep.subr.bf16.mxu0 %v958_v11  ;;  %v966_v21 = vcombine.high %v202_v14, %v206_v16  ;;  %621 = vmatprep.subr.bf16.mxu1 %v960_v15  ;;  %v968_v22 = vcombine.high %v203_v17, %v207_v18  ;;  %v210_v23 = vld [vmem:[%s1125_s16 + $0xc0] sm:$0xff]  ;;  %v211_v25 = vld [vmem:[%s1125_s16 + $0xc8] sm:$0xff]  ;;  %v965_v27 = vcombine.low %v202_v14, %v206_v16  ;;  %v200_v9 = vld [vmem:[%s1125_s16 + $0x70] sm:$0xff] }
  0x18   : > { %v214_v24 = vld [vmem:[%s1125_s16 + $0xe0] sm:$0xff]  ;;  %v215_v26 = vld [vmem:[%s1125_s16 + $0xe8] sm:$0xff]  ;;  %v967_v28 = vcombine.low %v203_v17, %v207_v18  ;;  %v197_v11 = vld [vmem:[%s1125_s16 + $0x58] sm:$0xff]  ;;  %v953_v13 = vcombine.low %v188_v63, %v192_v1  ;;  %v955_v14 = vcombine.low %v189_v2, %v193_v3  ;;  %v962_v15 = vcombine.high %v196_v8, %v200_v9 }
  0x19   : > { %v974_v29 = vcombine.high %v210_v23, %v214_v24  ;;  %v976_v30 = vcombine.high %v211_v25, %v215_v26  ;;  %v218_v31 = vld [vmem:[%s1125_s16 + $0x100] sm:$0xff]  ;;  %v219_v33 = vld [vmem:[%s1125_s16 + $0x108] sm:$0xff]  ;;  %v973_v35 = vcombine.low %v210_v23, %v214_v24  ;;  %v975_v36 = vcombine.low %v211_v25, %v215_v26  ;;  %v201_v12 = vld [vmem:[%s1125_s16 + $0x78] sm:$0xff] }
  0x1a   : > { %579 = vmatpush1.bf16.msra.mxu0 %v957_v19  ;;  %622 = vmatpush1.bf16.msra.mxu1 %v959_v20  ;;  %v222_v32 = vld [vmem:[%s1125_s16 + $0x120] sm:$0xff]  ;;  %v223_v34 = vld [vmem:[%s1125_s16 + $0x128] sm:$0xff]  ;;  %v964_v16 = vcombine.high %v197_v11, %v201_v12  ;;  %v204_v17 = vld [vmem:[%s1125_s16 + $0x90] sm:$0xff] }
  0x1b   : > { %580 = vmatprep.subr.bf16.mxu0 %v966_v21  ;;  %623 = vmatprep.subr.bf16.mxu1 %v968_v22  ;;  %v982_v37 = vcombine.high %v218_v31, %v222_v32  ;;  %v984_v38 = vcombine.high %v219_v33, %v223_v34  ;;  %v226_v39 = vld [vmem:[%s1125_s16 + $0x140] sm:$0xff]  ;;  %v227_v41 = vld [vmem:[%s1125_s16 + $0x148] sm:$0xff]  ;;  %v981_v43 = vcombine.low %v218_v31, %v222_v32  ;;  %v208_v18 = vld [vmem:[%s1125_s16 + $0xb0] sm:$0xff] }
  0x1c   : > { %v230_v40 = vld [vmem:[%s1125_s16 + $0x160] sm:$0xff]  ;;  %v231_v42 = vld [vmem:[%s1125_s16 + $0x168] sm:$0xff]  ;;  %v983_v44 = vcombine.low %v219_v33, %v223_v34  ;;  %v205_v19 = vld [vmem:[%s1125_s16 + $0x98] sm:$0xff]  ;;  %v961_v21 = vcombine.low %v196_v8, %v200_v9  ;;  %v963_v22 = vcombine.low %v197_v11, %v201_v12  ;;  %v970_v23 = vcombine.high %v204_v17, %v208_v18 }
  0x1d   : > { %v990_v45 = vcombine.high %v226_v39, %v230_v40  ;;  %v992_v46 = vcombine.high %v227_v41, %v231_v42  ;;  %v234_v47 = vld [vmem:[%s1125_s16 + $0x180] sm:$0xff]  ;;  %v235_v49 = vld [vmem:[%s1125_s16 + $0x188] sm:$0xff]  ;;  %v989_v51 = vcombine.low %v226_v39, %v230_v40  ;;  %v991_v52 = vcombine.low %v227_v41, %v231_v42  ;;  %v209_v20 = vld [vmem:[%s1125_s16 + $0xb8] sm:$0xff] }
  0x1e   : > { %581 = vmatpush1.bf16.msra.mxu0 %v965_v27  ;;  %624 = vmatpush1.bf16.msra.mxu1 %v967_v28  ;;  %v238_v48 = vld [vmem:[%s1125_s16 + $0x1a0] sm:$0xff]  ;;  %v239_v50 = vld [vmem:[%s1125_s16 + $0x1a8] sm:$0xff]  ;;  %v972_v24 = vcombine.high %v205_v19, %v209_v20  ;;  %v212_v25 = vld [vmem:[%s1125_s16 + $0xd0] sm:$0xff] }
  0x1f   : > { %582 = vmatprep.subr.bf16.mxu0 %v974_v29  ;;  %625 = vmatprep.subr.bf16.mxu1 %v976_v30  ;;  %v998_v53 = vcombine.high %v234_v47, %v238_v48  ;;  %v1000_v54 = vcombine.high %v235_v49, %v239_v50  ;;  %v242_v55 = vld [vmem:[%s1125_s16 + $0x1c0] sm:$0xff]  ;;  %v243_v57 = vld [vmem:[%s1125_s16 + $0x1c8] sm:$0xff]  ;;  %v997_v59 = vcombine.low %v234_v47, %v238_v48  ;;  %v216_v26 = vld [vmem:[%s1125_s16 + $0xf0] sm:$0xff] }
  0x20   : > { %v246_v56 = vld [vmem:[%s1125_s16 + $0x1e0] sm:$0xff]  ;;  %v247_v58 = vld [vmem:[%s1125_s16 + $0x1e8] sm:$0xff]  ;;  %v999_v60 = vcombine.low %v235_v49, %v239_v50  ;;  %v213_v27 = vld [vmem:[%s1125_s16 + $0xd8] sm:$0xff]  ;;  %v969_v29 = vcombine.low %v204_v17, %v208_v18  ;;  %v971_v30 = vcombine.low %v205_v19, %v209_v20  ;;  %v978_v31 = vcombine.high %v212_v25, %v216_v26 }
  0x21   : > { %v1006_v61 = vcombine.high %v242_v55, %v246_v56  ;;  %v1008_v62 = vcombine.high %v243_v57, %v247_v58  ;;  %v1005_v4 = vcombine.low %v242_v55, %v246_v56  ;;  %v1007_v5 = vcombine.low %v243_v57, %v247_v58  ;;  %v1168_v10 = vld [vmem:[%s1225_s0] sm:$0xff]   ;;  %v217_v28 = vld [vmem:[%s1125_s16 + $0xf8] sm:$0xff]  ;;  %v220_v33 = vld [vmem:[%s1125_s16 + $0x110] sm:$0xff] }
  0x22   : > { %583 = vmatpush1.bf16.msra.mxu0 %v973_v35  ;;  %626 = vmatpush1.bf16.msra.mxu1 %v975_v36  ;;  %v980_v32 = vcombine.high %v213_v27, %v217_v28  ;;  %v224_v34 = vld [vmem:[%s1125_s16 + $0x130] sm:$0xff]  ;;  %v221_v35 = vld [vmem:[%s1125_s16 + $0x118] sm:$0xff] }
  0x23   : > { %584 = vmatprep.subr.bf16.mxu0 %v982_v37  ;;  %627 = vmatprep.subr.bf16.mxu1 %v984_v38  ;;  %v225_v36 = vld [vmem:[%s1125_s16 + $0x138] sm:$0xff]  ;;  %v977_v37 = vcombine.low %v212_v25, %v216_v26  ;;  %v986_v38 = vcombine.high %v220_v33, %v224_v34  ;;  %v228_v40 = vld [vmem:[%s1125_s16 + $0x150] sm:$0xff] }
  0x24   : > { %v988_v39 = vcombine.high %v221_v35, %v225_v36  ;;  %v232_v41 = vld [vmem:[%s1125_s16 + $0x170] sm:$0xff]  ;;  %v229_v42 = vld [vmem:[%s1125_s16 + $0x158] sm:$0xff] }
  0x25   : > { %v236_v48 = vld [vmem:[%s1125_s16 + $0x190] sm:$0xff]  ;;  %v237_v50 = vld [vmem:[%s1125_s16 + $0x198] sm:$0xff] }
  0x26   : > { %585 = vmatpush1.bf16.msra.mxu0 %v981_v43  ;;  %628 = vmatpush1.bf16.msra.mxu1 %v983_v44  ;;  %v233_v43 = vld [vmem:[%s1125_s16 + $0x178] sm:$0xff]  ;;  %v985_v44 = vcombine.low %v220_v33, %v224_v34  ;;  %v240_v49 = vld [vmem:[%s1125_s16 + $0x1b0] sm:$0xff] }
  0x27   : > { %586 = vmatprep.subr.bf16.mxu0 %v990_v45  ;;  %629 = vmatprep.subr.bf16.mxu1 %v992_v46  ;;  %v987_v45 = vcombine.low %v221_v35, %v225_v36  ;;  %v994_v46 = vcombine.high %v228_v40, %v232_v41  ;;  %v996_v47 = vcombine.high %v229_v42, %v233_v43  ;;  %v244_v56 = vld [vmem:[%s1125_s16 + $0x1d0] sm:$0xff]  ;;  %v245_v58 = vld [vmem:[%s1125_s16 + $0x1d8] sm:$0xff] }
  0x28   : > { %v248_v57 = vld [vmem:[%s1125_s16 + $0x1f0] sm:$0xff] }
  0x29   : > { %v1009_v1 = vcombine.low %v244_v56, %v248_v57 }
  0x2a   : > { %587 = vmatpush1.bf16.msra.mxu0 %v989_v51  ;;  %630 = vmatpush1.bf16.msra.mxu1 %v991_v52  ;;  %v241_v51 = vld [vmem:[%s1125_s16 + $0x1b8] sm:$0xff]  ;;  %v993_v52 = vcombine.low %v228_v40, %v232_v41 }
  0x2b   : > { %588 = vmatprep.subr.bf16.mxu0 %v998_v53  ;;  %631 = vmatprep.subr.bf16.mxu1 %v1000_v54  ;;  %v995_v53 = vcombine.low %v229_v42, %v233_v43  ;;  %v1002_v54 = vcombine.high %v236_v48, %v240_v49  ;;  %v1004_v55 = vcombine.high %v237_v50, %v241_v51 }
  0x2e   : > { %589 = vmatpush1.bf16.msra.mxu0 %v997_v59  ;;  %632 = vmatpush1.bf16.msra.mxu1 %v999_v60  ;;  %v249_v59 = vld [vmem:[%s1125_s16 + $0x1f8] sm:$0xff]  ;;  %v1001_v60 = vcombine.low %v236_v48, %v240_v49 }
  0x2f   : > { %590 = vmatprep.subr.bf16.mxu0 %v1006_v61  ;;  %633 = vmatprep.subr.bf16.mxu1 %v1008_v62  ;;  %v1003_v61 = vcombine.low %v237_v50, %v241_v51  ;;  %v1010_v62 = vcombine.high %v244_v56, %v248_v57  ;;  %v1012_v63 = vcombine.high %v245_v58, %v249_v59 }
  0x30   : > { %v1011_v2 = vcombine.low %v245_v58, %v249_v59 }
  0x32   : > { %591 = vmatpush1.bf16.msra.mxu0 %v1005_v4  ;;  %634 = vmatpush1.bf16.msra.mxu1 %v1007_v5 }
  0x33   : > { %662 = vmatprep.subr.bf16.mxu0 %v954_v6  ;;  %705 = vmatprep.subr.bf16.mxu1 %v956_v7 }
  0x35   : > { %609 = vmatmul.mubr.bf16.vlgmr.msra.gmra.mrb[0].mxu0 %v1168_v10  ;;  %652 = vmatmul.mubr.bf16.vlgmr.msra.gmra.mrb[0].mxu1 %v1168_v10 }
  0x36   : > { %663 = vmatpush1.bf16.msra.mxu0 %v953_v13  ;;  %706 = vmatpush1.bf16.msra.mxu1 %v955_v14 }
  0x37   : > { %664 = vmatprep.subr.bf16.mxu0 %v962_v15  ;;  %707 = vmatprep.subr.bf16.mxu1 %v964_v16 }
  0x38   : > { %694 = vmatprep.mubr.bf16.mxu0 %v1083_v0  ;;  %737 = vmatprep.mubr.bf16.mxu1 %v1083_v0  ;;  %v979_v0 = vcombine.low %v213_v27, %v217_v28 }
  0x3a   : > { %665 = vmatpush1.bf16.msra.mxu0 %v961_v21  ;;  %708 = vmatpush1.bf16.msra.mxu1 %v963_v22 }
  0x3b   : > { %666 = vmatprep.subr.bf16.mxu0 %v970_v23  ;;  %709 = vmatprep.subr.bf16.mxu1 %v972_v24 }
  0x3e   : > { %667 = vmatpush1.bf16.msra.mxu0 %v969_v29  ;;  %710 = vmatpush1.bf16.msra.mxu1 %v971_v30 }
  0x3f   : > { %668 = vmatprep.subr.bf16.mxu0 %v978_v31  ;;  %711 = vmatprep.subr.bf16.mxu1 %v980_v32 }
  0x42   : > { %669 = vmatpush1.bf16.msra.mxu0 %v977_v37  ;;  %712 = vmatpush1.bf16.msra.mxu1 %v979_v0 }
  0x43   : > { %670 = vmatprep.subr.bf16.mxu0 %v986_v38  ;;  %713 = vmatprep.subr.bf16.mxu1 %v988_v39 }
  0x46   : > { %671 = vmatpush1.bf16.msra.mxu0 %v985_v44  ;;  %714 = vmatpush1.bf16.msra.mxu1 %v987_v45 }
  0x47   : > { %672 = vmatprep.subr.bf16.mxu0 %v994_v46  ;;  %715 = vmatprep.subr.bf16.mxu1 %v996_v47 }
  0x4a   : > { %673 = vmatpush1.bf16.msra.mxu0 %v993_v52  ;;  %716 = vmatpush1.bf16.msra.mxu1 %v995_v53 }
  0x4b   : > { %674 = vmatprep.subr.bf16.mxu0 %v1002_v54  ;;  %717 = vmatprep.subr.bf16.mxu1 %v1004_v55 }
  0x4e   : > { %675 = vmatpush1.bf16.msra.mxu0 %v1001_v60  ;;  %718 = vmatpush1.bf16.msra.mxu1 %v1003_v61 }
  0x4f   : > { %676 = vmatprep.subr.bf16.mxu0 %v1010_v62  ;;  %719 = vmatprep.subr.bf16.mxu1 %v1012_v63 }
  0x52   : > { %677 = vmatpush1.bf16.msra.mxu0 %v1009_v1  ;;  %720 = vmatpush1.bf16.msra.mxu1 %v1011_v2 }
  0x55   : > { %695 = vmatmul.mubr.bf16.vlgmr.msra.gmra.mrb[4].mxu0 %v1168_v10  ;;  %738 = vmatmul.mubr.bf16.vlgmr.msra.gmra.mrb[4].mxu1 %v1168_v10 }
 0x108   : > { %v610_v3 = vpop.f32.mrb[0].mxu0  ;;  %v653_v5 = vpop.f32.mrb[0].mxu1 }
 0x109   : > { %vm748_vm0 = vcmp.gt.f32.partialorder %v610_v3, 0.0  ;;  %v764_v4 = vmul.f32 0.2, %v610_v3  ;;  %v612_v6 = vpop.f32.mrb[1].mxu0  ;;  %vm750_vm1 = vcmp.gt.f32.partialorder %v653_v5, 0.0  ;;  %v655_v11 = vpop.f32.mrb[1].mxu1 }
 0x10a   : > { %v766_v7 = vmul.f32 0.2, %v653_v5  ;;  %vm749_vm2 = vcmp.gt.f32.partialorder %v612_v6, 0.0  ;;  %v765_v8 = vmul.f32 0.2, %v612_v6  ;;  %v614_v12 = vpop.f32.mrb[2].mxu0 }
 0x10b   : > { %v780_v9 = vsel %vm748_vm0, %v610_v3, %v764_v4  ;;  %vm751_vm3 = vcmp.gt.f32.partialorder %v655_v11, 0.0  ;;  %v767_v14 = vmul.f32 0.2, %v655_v11  ;;  %v657_v15 = vpop.f32.mrb[2].mxu1  ;;  %v616_v16 = vpop.f32.mrb[3].mxu0  ;;  %vm756_vm4 = vcmp.gt.f32.partialorder %v614_v12, 0.0 }
 0x10c   : > { %v782_v13 = vsel %vm750_vm1, %v653_v5, %v766_v7  ;;  %v781_v10 = vsel %vm749_vm2, %v612_v6, %v765_v8  ;;  %v772_v18 = vmul.f32 0.2, %v614_v12  ;;  %vm758_vm5 = vcmp.gt.f32.partialorder %v657_v15, 0.0  ;;  %v659_v19 = vpop.f32.mrb[3].mxu1 }
 0x10d   : > { %v1025_v17 = vpack.c.bf16 %v781_v10, %v780_v9  ;;  %v783_v20 = vsel %vm751_vm3, %v655_v11, %v767_v14  ;;  %v774_v21 = vmul.f32 0.2, %v657_v15  ;;  %vm757_vm6 = vcmp.gt.f32.partialorder %v616_v16, 0.0 }
 0x10e   : > { %v773_v22 = vmul.f32 0.2, %v616_v16  ;;  %v1026_v23 = vpack.c.bf16 %v783_v20, %v782_v13  ;;  %v788_v24 = vsel %vm756_vm4, %v614_v12, %v772_v18  ;;  %vm759_vm7 = vcmp.gt.f32.partialorder %v659_v19, 0.0 }
 0x10f   : > { %844 = vst [vmem:[%s1206_s22] sm:$0xff] %v1025_v17  ;;  %v775_v25 = vmul.f32 0.2, %v659_v19  ;;  %v790_v26 = vsel %vm758_vm5, %v657_v15, %v774_v21 }
 0x110   : > { %v789_v27 = vsel %vm757_vm6, %v616_v16, %v773_v22  ;;  %845 = vst [vmem:[%s1206_s22 + $0x8] sm:$0xff] %v1026_v23 }
 0x111   : > { %v1029_v28 = vpack.c.bf16 %v789_v27, %v788_v24  ;;  %v791_v29 = vsel %vm759_vm7, %v659_v19, %v775_v25 }
 0x112   : > { %v1030_v30 = vpack.c.bf16 %v791_v29, %v790_v26 }
 0x113   : > { %848 = vst [vmem:[%s1206_s22 + $0x20] sm:$0xff] %v1029_v28 }
 0x114   : > { %849 = vst [vmem:[%s1206_s22 + $0x28] sm:$0xff] %v1030_v30 }
 0x128   : > { %v696_v31 = vpop.f32.mrb[4].mxu0  ;;  %v739_v33 = vpop.f32.mrb[4].mxu1 }
 0x129   : > { %vm752_vm8 = vcmp.gt.f32.partialorder %v696_v31, 0.0  ;;  %v768_v32 = vmul.f32 0.2, %v696_v31  ;;  %v698_v34 = vpop.f32.mrb[5].mxu0  ;;  %vm754_vm9 = vcmp.gt.f32.partialorder %v739_v33, 0.0  ;;  %v741_v0 = vpop.f32.mrb[5].mxu1 }
 0x12a   : > { %v770_v35 = vmul.f32 0.2, %v739_v33  ;;  %vm753_vm10 = vcmp.gt.f32.partialorder %v698_v34, 0.0  ;;  %v769_v36 = vmul.f32 0.2, %v698_v34  ;;  %v700_v38 = vpop.f32.mrb[6].mxu0 }
 0x12b   : > { %v784_v37 = vsel %vm752_vm8, %v696_v31, %v768_v32  ;;  %vm755_vm11 = vcmp.gt.f32.partialorder %v741_v0, 0.0  ;;  %v771_v41 = vmul.f32 0.2, %v741_v0  ;;  %v743_v42 = vpop.f32.mrb[6].mxu1  ;;  %v702_v43 = vpop.f32.mrb[7].mxu0  ;;  %vm760_vm12 = vcmp.gt.f32.partialorder %v700_v38, 0.0 }
 0x12c   : > { %v786_v39 = vsel %vm754_vm9, %v739_v33, %v770_v35  ;;  %v785_v40 = vsel %vm753_vm10, %v698_v34, %v769_v36  ;;  %v776_v45 = vmul.f32 0.2, %v700_v38  ;;  %vm762_vm13 = vcmp.gt.f32.partialorder %v743_v42, 0.0  ;;  %v745_v46 = vpop.f32.mrb[7].mxu1 }
 0x12d   : > { %v1027_v44 = vpack.c.bf16 %v785_v40, %v784_v37  ;;  %v787_v47 = vsel %vm755_vm11, %v741_v0, %v771_v41  ;;  %v778_v48 = vmul.f32 0.2, %v743_v42  ;;  %vm761_vm14 = vcmp.gt.f32.partialorder %v702_v43, 0.0 }
 0x12e   : > { %v777_v49 = vmul.f32 0.2, %v702_v43  ;;  %v1028_v50 = vpack.c.bf16 %v787_v47, %v786_v39  ;;  %v792_v51 = vsel %vm760_vm12, %v700_v38, %v776_v45  ;;  %vm763_vm15 = vcmp.gt.f32.partialorder %v745_v46, 0.0 }
 0x12f   : > { %846 = vst [vmem:[%s1206_s22 + $0x10] sm:$0xff] %v1027_v44  ;;  %v779_v52 = vmul.f32 0.2, %v745_v46  ;;  %v794_v53 = vsel %vm762_vm13, %v743_v42, %v778_v48 }
 0x130   : > { %v793_v54 = vsel %vm761_vm14, %v702_v43, %v777_v49  ;;  %847 = vst [vmem:[%s1206_s22 + $0x18] sm:$0xff] %v1028_v50 }
 0x131   : > { %v1031_v55 = vpack.c.bf16 %v793_v54, %v792_v51  ;;  %v795_v56 = vsel %vm763_vm15, %v745_v46, %v779_v52 }
 0x132   : > { %v1032_v57 = vpack.c.bf16 %v795_v56, %v794_v53 }
 0x133   : > { %850 = vst [vmem:[%s1206_s22 + $0x30] sm:$0xff] %v1031_v55 }
 0x134   : > { %851 = vst [vmem:[%s1206_s22 + $0x38] sm:$0xff] %v1032_v57 }
 0x135 PF: > { %s12_s11 = sadd.s32 1, %s1081_s11   ;;  %s1228_s9 = smov %s1077_s10 }
 0x136   : > { %p9_p5 = scmp.ge.s32.totalorder %s12_s11, 4   ;;  %s1229_s10 = smov %s1231_s12 }
 0x138   :  { %11 = sbr.rel (!%p9_p5) target bundleno = 2 (0x2), region = 58 }

// kernel: discriminator_forward.7
= control target key start
LH: loop header
LB: loop body
LE: loop exit
PB: predicated region body
PF: predicated region fallthrough
CT: control target
= control target key end

     0   :  { %s797_s9 = smov 0   ;;  %s799_s10 = smov 0   ;;  %s880_s0 = inlined_call_operand.vmem [shape: bf16[32,256], index: 0, kind: input, shape index: {}]   ;;  %s881_s1 = inlined_call_operand.vmem [shape: bf16[2,256,256], index: 1, kind: input, shape index: {}]   ;;  %s882_s2 = inlined_call_operand.vmem [shape: bf16[2,32,256], index: 2, kind: output, shape index: {}]  }
   0x1   :  { %s801_s11 = smov 0  }
   0x2 LB: > { %s24_s12 = sadd.s32 1, %s776_s10  ;;  %p595_p0 = scmp.ge.s32.totalorder %s780_s11, 1  ;;  %s780_s11 = sphi %s801_s11, %s12_s11   ;;  %s776_s10 = sphi %s799_s10, %s884_s10   ;;  %s772_s9 = sphi %s797_s9, %s883_s9  }
   0x3   : > { %p26_p1 = scmp.ge.s32.totalorder %s24_s12, 2  ;;  %p133_p2 = scmp.lt.s32.totalorder %s780_s11, 3 }
   0x5   : > { %s886_s12 = smov (%p26_p1, %s24_s12), 0  ;;  %p134_p3 = pnand %p595_p0, %p133_p2 }
   0x6   : > { %p164_p4 = scmp.lt.s32.totalorder (!%p134_p3), %s772_s9, 1  ;;  %v754_v0 = vld [vmem:[%s880_s0 + $0x4] ss:$8 sps:$4 sm:$0xff] (!%p134_p3)   ;;  %v757_v1 = vld [vmem:[%s880_s0 + $0x14] ss:$8 sps:$4 sm:$0xff] (!%p134_p3)  }
   0x7   : > { %137 = sbr.rel (%p134_p3) target bundleno = 307 (0x133), region = 28  ;;  %431 = vmatprep.mubr.bf16.mxu0 (!%p134_p3), %v754_v0  ;;  %441 = vmatprep.mubr.bf16.mxu1 (!%p134_p3), %v757_v1  ;;  %v752_v34 = vld [vmem:[%s880_s0] ss:$8 sps:$4 sm:$0xff] (!%p134_p3)   ;;  %v755_v35 = vld [vmem:[%s880_s0 + $0x10] ss:$8 sps:$4 sm:$0xff] (!%p134_p3)  }
   0xe   : > { %s888_s9 = smov (!%p164_p4, %s772_s9), 1 }
   0xf   : > { %s642_s17 = sshll.u32 %s888_s9, 8  ;;  %s643_s25 = sshll.u32 %s888_s9, 5 }
  0x10   : > { %s827_s20 = scalar_lea.vmem %s881_s1, %s642_s17  ;;  %s181_s28 = scalar_lea.vmem %s882_s2, %s643_s25 }
  0x11   : > { %v704_v2 = vld [vmem:[%s827_s20 + $0x4] ss:$8 sps:$4 sm:$0xff]   ;;  %v706_v3 = vld [vmem:[%s827_s20] ss:$8 sps:$4 sm:$0xff]   ;;  %v707_v4 = vld [vmem:[%s827_s20 + $0x14] ss:$8 sps:$4 sm:$0xff]  }
  0x12   : > { %399 = vmatprep.subr.bf16.mxu0 %v704_v2  ;;  %648 = vmatprep.subr.bf16.mxu1 %v704_v2  ;;  %v709_v5 = vld [vmem:[%s827_s20 + $0x10] ss:$8 sps:$4 sm:$0xff]   ;;  %v710_v6 = vld [vmem:[%s827_s20 + $0x24] ss:$8 sps:$4 sm:$0xff]   ;;  %v712_v7 = vld [vmem:[%s827_s20 + $0x20] ss:$8 sps:$4 sm:$0xff]  }
  0x13   : > { %400 = vmatpush1.bf16.msra.mxu0 %v706_v3  ;;  %664 = vmatpush1.bf16.msra.mxu1 %v706_v3  ;;  %v713_v8 = vld [vmem:[%s827_s20 + $0x34] ss:$8 sps:$4 sm:$0xff]   ;;  %v715_v9 = vld [vmem:[%s827_s20 + $0x30] ss:$8 sps:$4 sm:$0xff]   ;;  %v716_v10 = vld [vmem:[%s827_s20 + $0x44] ss:$8 sps:$4 sm:$0xff]  }
  0x14   : > { %401 = vmatprep.subr.bf16.mxu0 %v707_v4  ;;  %649 = vmatprep.subr.bf16.mxu1 %v707_v4  ;;  %v718_v11 = vld [vmem:[%s827_s20 + $0x40] ss:$8 sps:$4 sm:$0xff]   ;;  %v719_v12 = vld [vmem:[%s827_s20 + $0x54] ss:$8 sps:$4 sm:$0xff]   ;;  %v721_v13 = vld [vmem:[%s827_s20 + $0x50] ss:$8 sps:$4 sm:$0xff]  }
  0x15   : > { %v722_v14 = vld [vmem:[%s827_s20 + $0x64] ss:$8 sps:$4 sm:$0xff]   ;;  %v724_v15 = vld [vmem:[%s827_s20 + $0x60] ss:$8 sps:$4 sm:$0xff]   ;;  %v725_v16 = vld [vmem:[%s827_s20 + $0x74] ss:$8 sps:$4 sm:$0xff]  }
  0x16   : > { %v727_v17 = vld [vmem:[%s827_s20 + $0x70] ss:$8 sps:$4 sm:$0xff]   ;;  %v728_v18 = vld [vmem:[%s827_s20 + $0x84] ss:$8 sps:$4 sm:$0xff]   ;;  %v730_v19 = vld [vmem:[%s827_s20 + $0x80] ss:$8 sps:$4 sm:$0xff]  }
  0x17   : > { %402 = vmatpush1.bf16.msra.mxu0 %v709_v5  ;;  %665 = vmatpush1.bf16.msra.mxu1 %v709_v5  ;;  %v731_v20 = vld [vmem:[%s827_s20 + $0x94] ss:$8 sps:$4 sm:$0xff]   ;;  %v733_v21 = vld [vmem:[%s827_s20 + $0x90] ss:$8 sps:$4 sm:$0xff]   ;;  %v734_v22 = vld [vmem:[%s827_s20 + $0xa4] ss:$8 sps:$4 sm:$0xff]  }
  0x18   : > { %403 = vmatprep.subr.bf16.mxu0 %v710_v6  ;;  %650 = vmatprep.subr.bf16.mxu1 %v710_v6  ;;  %v736_v23 = vld [vmem:[%s827_s20 + $0xa0] ss:$8 sps:$4 sm:$0xff]   ;;  %v737_v24 = vld [vmem:[%s827_s20 + $0xb4] ss:$8 sps:$4 sm:$0xff]   ;;  %v739_v25 = vld [vmem:[%s827_s20 + $0xb0] ss:$8 sps:$4 sm:$0xff]  }
  0x19   : > { %v740_v26 = vld [vmem:[%s827_s20 + $0xc4] ss:$8 sps:$4 sm:$0xff]   ;;  %v742_v27 = vld [vmem:[%s827_s20 + $0xc0] ss:$8 sps:$4 sm:$0xff]   ;;  %v743_v28 = vld [vmem:[%s827_s20 + $0xd4] ss:$8 sps:$4 sm:$0xff]  }
  0x1a   : > { %v745_v29 = vld [vmem:[%s827_s20 + $0xd0] ss:$8 sps:$4 sm:$0xff]   ;;  %v746_v30 = vld [vmem:[%s827_s20 + $0xe4] ss:$8 sps:$4 sm:$0xff]   ;;  %v748_v31 = vld [vmem:[%s827_s20 + $0xe0] ss:$8 sps:$4 sm:$0xff]  }
  0x1b   : > { %404 = vmatpush1.bf16.msra.mxu0 %v712_v7  ;;  %666 = vmatpush1.bf16.msra.mxu1 %v712_v7  ;;  %v749_v32 = vld [vmem:[%s827_s20 + $0xf4] ss:$8 sps:$4 sm:$0xff]   ;;  %v751_v33 = vld [vmem:[%s827_s20 + $0xf0] ss:$8 sps:$4 sm:$0xff]  }
  0x1c   : > { %405 = vmatprep.subr.bf16.mxu0 %v713_v8  ;;  %651 = vmatprep.subr.bf16.mxu1 %v713_v8 }
  0x1f   : > { %406 = vmatpush1.bf16.msra.mxu0 %v715_v9  ;;  %667 = vmatpush1.bf16.msra.mxu1 %v715_v9 }
  0x20   : > { %407 = vmatprep.subr.bf16.mxu0 %v716_v10  ;;  %652 = vmatprep.subr.bf16.mxu1 %v716_v10 }
  0x23   : > { %408 = vmatpush1.bf16.msra.mxu0 %v718_v11  ;;  %668 = vmatpush1.bf16.msra.mxu1 %v718_v11 }
  0x24   : > { %409 = vmatprep.subr.bf16.mxu0 %v719_v12  ;;  %653 = vmatprep.subr.bf16.mxu1 %v719_v12 }
  0x27   : > { %410 = vmatpush1.bf16.msra.mxu0 %v721_v13  ;;  %669 = vmatpush1.bf16.msra.mxu1 %v721_v13 }
  0x28   : > { %411 = vmatprep.subr.bf16.mxu0 %v722_v14  ;;  %654 = vmatprep.subr.bf16.mxu1 %v722_v14 }
  0x2b   : > { %412 = vmatpush1.bf16.msra.mxu0 %v724_v15  ;;  %670 = vmatpush1.bf16.msra.mxu1 %v724_v15 }
  0x2c   : > { %413 = vmatprep.subr.bf16.mxu0 %v725_v16  ;;  %655 = vmatprep.subr.bf16.mxu1 %v725_v16 }
  0x2f   : > { %414 = vmatpush1.bf16.msra.mxu0 %v727_v17  ;;  %671 = vmatpush1.bf16.msra.mxu1 %v727_v17 }
  0x30   : > { %415 = vmatprep.subr.bf16.mxu0 %v728_v18  ;;  %656 = vmatprep.subr.bf16.mxu1 %v728_v18 }
  0x33   : > { %416 = vmatpush1.bf16.msra.mxu0 %v730_v19  ;;  %672 = vmatpush1.bf16.msra.mxu1 %v730_v19 }
  0x34   : > { %417 = vmatprep.subr.bf16.mxu0 %v731_v20  ;;  %657 = vmatprep.subr.bf16.mxu1 %v731_v20 }
  0x37   : > { %418 = vmatpush1.bf16.msra.mxu0 %v733_v21  ;;  %673 = vmatpush1.bf16.msra.mxu1 %v733_v21 }
  0x38   : > { %419 = vmatprep.subr.bf16.mxu0 %v734_v22  ;;  %658 = vmatprep.subr.bf16.mxu1 %v734_v22 }
  0x3b   : > { %420 = vmatpush1.bf16.msra.mxu0 %v736_v23  ;;  %674 = vmatpush1.bf16.msra.mxu1 %v736_v23 }
  0x3c   : > { %421 = vmatprep.subr.bf16.mxu0 %v737_v24  ;;  %659 = vmatprep.subr.bf16.mxu1 %v737_v24 }
  0x3f   : > { %422 = vmatpush1.bf16.msra.mxu0 %v739_v25  ;;  %675 = vmatpush1.bf16.msra.mxu1 %v739_v25 }
  0x40   : > { %423 = vmatprep.subr.bf16.mxu0 %v740_v26  ;;  %660 = vmatprep.subr.bf16.mxu1 %v740_v26 }
  0x43   : > { %424 = vmatpush1.bf16.msra.mxu0 %v742_v27  ;;  %676 = vmatpush1.bf16.msra.mxu1 %v742_v27 }
  0x44   : > { %425 = vmatprep.subr.bf16.mxu0 %v743_v28  ;;  %661 = vmatprep.subr.bf16.mxu1 %v743_v28 }
  0x47   : > { %426 = vmatpush1.bf16.msra.mxu0 %v745_v29  ;;  %677 = vmatpush1.bf16.msra.mxu1 %v745_v29 }
  0x48   : > { %427 = vmatprep.subr.bf16.mxu0 %v746_v30  ;;  %662 = vmatprep.subr.bf16.mxu1 %v746_v30 }
  0x4b   : > { %428 = vmatpush1.bf16.msra.mxu0 %v748_v31  ;;  %678 = vmatpush1.bf16.msra.mxu1 %v748_v31 }
  0x4c   : > { %429 = vmatprep.subr.bf16.mxu0 %v749_v32  ;;  %663 = vmatprep.subr.bf16.mxu1 %v749_v32 }
  0x4f   : > { %430 = vmatpush1.bf16.msra.mxu0 %v751_v33  ;;  %679 = vmatpush1.bf16.msra.mxu1 %v751_v33 }
  0x52   : > { %432 = vmatmul.mubr.bf16.vlgmr.msra.gmra.mrb[0].mxu0 %v752_v34  ;;  %442 = vmatmul.mubr.bf16.vlgmr.msra.gmra.mrb[0].mxu1 %v755_v35 }
 0x125   : > { %v433_v36 = vpop.f32.mrb[0].mxu0  ;;  %v443_v37 = vpop.f32.mrb[0].mxu1 }
 0x126   : > { %vm452_vm0 = vcmp.gt.f32.partialorder %v433_v36, 0.0  ;;  %v460_v38 = vmul.f32 0.2, %v433_v36  ;;  %vm456_vm1 = vcmp.gt.f32.partialorder %v443_v37, 0.0  ;;  %v464_v39 = vmul.f32 0.2, %v443_v37 }
 0x127   : > { %v435_v40 = vpop.f32.mrb[1].mxu0  ;;  %v445_v41 = vpop.f32.mrb[1].mxu1 }
 0x128   : > { %v468_v42 = vsel %vm452_vm0, %v433_v36, %v460_v38  ;;  %v472_v43 = vsel %vm456_vm1, %v443_v37, %v464_v39  ;;  %vm453_vm2 = vcmp.gt.f32.partialorder %v435_v40, 0.0  ;;  %v461_v44 = vmul.f32 0.2, %v435_v40  ;;  %v437_v45 = vpop.f32.mrb[2].mxu0  ;;  %v447_v46 = vpop.f32.mrb[2].mxu1 }
 0x129   : > { %vm457_vm3 = vcmp.gt.f32.partialorder %v445_v41, 0.0  ;;  %v465_v47 = vmul.f32 0.2, %v445_v41  ;;  %vm454_vm4 = vcmp.gt.f32.partialorder %v437_v45, 0.0  ;;  %v462_v48 = vmul.f32 0.2, %v437_v45 }
 0x12a   : > { %v469_v49 = vsel %vm453_vm2, %v435_v40, %v461_v44  ;;  %vm458_vm5 = vcmp.gt.f32.partialorder %v447_v46, 0.0  ;;  %v466_v50 = vmul.f32 0.2, %v447_v46  ;;  %v439_v51 = vpop.f32.mrb[3].mxu0  ;;  %v449_v52 = vpop.f32.mrb[3].mxu1 }
 0x12b   : > { %v644_v53 = vpack.c.bf16 %v469_v49, %v468_v42  ;;  %v473_v54 = vsel %vm457_vm3, %v445_v41, %v465_v47  ;;  %vm455_vm6 = vcmp.gt.f32.partialorder %v439_v51, 0.0  ;;  %v470_v56 = vsel %vm454_vm4, %v437_v45, %v462_v48 }
 0x12c   : > { %v646_v55 = vpack.c.bf16 %v473_v54, %v472_v43  ;;  %v463_v57 = vmul.f32 0.2, %v439_v51  ;;  %vm459_vm7 = vcmp.gt.f32.partialorder %v449_v52, 0.0  ;;  %v474_v58 = vsel %vm458_vm5, %v447_v46, %v466_v50 }
 0x12d   : > { %500 = vst [vmem:[%s181_s28] sm:$0xff] %v644_v53  ;;  %v467_v59 = vmul.f32 0.2, %v449_v52 }
 0x12e   : > { %502 = vst [vmem:[%s181_s28 + $0x10] sm:$0xff] %v646_v55  ;;  %v471_v60 = vsel %vm455_vm6, %v439_v51, %v463_v57 }
 0x12f   : > { %v645_v61 = vpack.c.bf16 %v471_v60, %v470_v56  ;;  %v475_v62 = vsel %vm459_vm7, %v449_v52, %v467_v59 }
 0x130   : > { %v647_v63 = vpack.c.bf16 %v475_v62, %v474_v58 }
 0x131   : > { %501 = vst [vmem:[%s181_s28 + $0x8] sm:$0xff] %v645_v61 }
 0x132   : > { %503 = vst [vmem:[%s181_s28 + $0x18] sm:$0xff] %v647_v63 }
 0x133 PF: > { %s12_s11 = sadd.s32 1, %s780_s11   ;;  %s883_s9 = smov %s776_s10 }
 0x134   : > { %p9_p5 = scmp.ge.s32.totalorder %s12_s11, 4   ;;  %s884_s10 = smov %s886_s12 }
 0x136   :  { %11 = sbr.rel (!%p9_p5) target bundleno = 2 (0x2), region = 58 }

// kernel: discriminator_forward.8
= control target key start
LH: loop header
LB: loop body
LE: loop exit
PB: predicated region body
PF: predicated region fallthrough
CT: control target
= control target key end

     0   :  { %s1082_s9 = smov 0   ;;  %s1084_s10 = smov 0   ;;  %s1219_s0 = inlined_call_operand.vmem [shape: bf16[64,512], index: 0, kind: input, shape index: {}]   ;;  %s1220_s1 = inlined_call_operand.vmem [shape: bf16[2,512,64], index: 1, kind: input, shape index: {}]   ;;  %s1221_s2 = inlined_call_operand.vmem [shape: bf16[2,64,64], index: 2, kind: output, shape index: {}]  }
   0x1   :  { %s1086_s11 = smov 0  }
   0x2 LB: > { %s24_s12 = sadd.s32 1, %s1061_s10  ;;  %p810_p0 = scmp.ge.s32.totalorder %s1065_s11, 1  ;;  %s1065_s11 = sphi %s1086_s11, %s12_s11   ;;  %s1061_s10 = sphi %s1084_s10, %s1223_s10   ;;  %s1057_s9 = sphi %s1082_s9, %s1222_s9  }
   0x3   : > { %p26_p1 = scmp.ge.s32.totalorder %s24_s12, 2  ;;  %p131_p2 = scmp.lt.s32.totalorder %s1065_s11, 3 }
   0x5   : > { %s1225_s12 = smov (%p26_p1, %s24_s12), 0  ;;  %p132_p3 = pnand %p810_p0, %p131_p2 }
   0x6   : > { %p159_p4 = scmp.lt.s32.totalorder (!%p132_p3), %s1057_s9, 1  ;;  %v1021_v0 = vld [vmem:[%s1219_s0 + $0x4] ss:$16 sps:$4 sm:$0xff] (!%p132_p3)   ;;  %v1024_v1 = vld [vmem:[%s1219_s0 + $0xc] ss:$16 sps:$4 sm:$0xff] (!%p132_p3)   ;;  %vm714_vm1 = vcmask (!%p132_p3), 519168  }
   0x7   : > { %135 = sbr.rel (%p132_p3) target bundleno = 301 (0x12d), region = 28  ;;  %560 = vmatprep.mubr.bf16.mxu0 (!%p132_p3), %v1021_v0  ;;  %625 = vmatprep.mubr.bf16.mxu1 (!%p132_p3), %v1024_v1  ;;  %v1019_v32 = vld [vmem:[%s1219_s0] ss:$16 sps:$4 sm:$0xff] (!%p132_p3)   ;;  %v1022_v34 = vld [vmem:[%s1219_s0 + $0x8] ss:$16 sps:$4 sm:$0xff] (!%p132_p3)  }
   0x8   : > { %v1025_v36 = vld [vmem:[%s1219_s0 + $0x24] ss:$16 sps:$4 sm:$0xff] (!%p132_p3)   ;;  %v1027_v37 = vld [vmem:[%s1219_s0 + $0x2c] ss:$16 sps:$4 sm:$0xff] (!%p132_p3)   ;;  %v1029_v38 = vld [vmem:[%s1219_s0 + $0x20] ss:$16 sps:$4 sm:$0xff] (!%p132_p3)  }
   0x9   : > { %v1030_v39 = vld [vmem:[%s1219_s0 + $0x28] ss:$16 sps:$4 sm:$0xff] (!%p132_p3)   ;;  %v1031_v40 = vld [vmem:[%s1219_s0 + $0x44] ss:$16 sps:$4 sm:$0xff] (!%p132_p3)   ;;  %v1033_v41 = vld [vmem:[%s1219_s0 + $0x4c] ss:$16 sps:$4 sm:$0xff] (!%p132_p3)  }
   0xa   : > { %v1035_v42 = vld [vmem:[%s1219_s0 + $0x40] ss:$16 sps:$4 sm:$0xff] (!%p132_p3)   ;;  %v1036_v43 = vld [vmem:[%s1219_s0 + $0x48] ss:$16 sps:$4 sm:$0xff] (!%p132_p3)   ;;  %v1037_v44 = vld [vmem:[%s1219_s0 + $0x64] ss:$16 sps:$4 sm:$0xff] (!%p132_p3)  }
   0xb   : > { %v1039_v45 = vld [vmem:[%s1219_s0 + $0x6c] ss:$16 sps:$4 sm:$0xff] (!%p132_p3)   ;;  %v1041_v46 = vld [vmem:[%s1219_s0 + $0x60] ss:$16 sps:$4 sm:$0xff] (!%p132_p3)   ;;  %v1042_v47 = vld [vmem:[%s1219_s0 + $0x68] ss:$16 sps:$4 sm:$0xff] (!%p132_p3)  }
   0xe   : > { %s1227_s9 = smov (!%p159_p4, %s1057_s9), 1 }
   0xf   : > { %s873_s17 = sshll.u32 %s1227_s9, 8  ;;  %s874_s25 = sshll.u32 %s1227_s9, 5 }
  0x10   : > { %s1112_s20 = scalar_lea.vmem %s1220_s1, %s873_s17  ;;  %s1192_s28 = scalar_lea.vmem %s1221_s2, %s874_s25 }
  0x11   : > { %v987_v2 = vld [vmem:[%s1112_s20 + $0x40] sm:$0xff]   ;;  %v991_v6 = vld [vmem:[%s1112_s20 + $0x48] sm:$0xff]   ;;  %v995_v10 = vld [vmem:[%s1112_s20 + $0x50] sm:$0xff]  }
  0x12   : > { %v988_v3 = vld [vmem:[%s1112_s20 + $0xc0] sm:$0xff]   ;;  %883 = vmatprep.subr.bf16.mxu0 %v987_v2  ;;  %v992_v7 = vld [vmem:[%s1112_s20 + $0xc8] sm:$0xff]   ;;  %v996_v11 = vld [vmem:[%s1112_s20 + $0xd0] sm:$0xff]  }
  0x13   : > { %v989_v4 = vld [vmem:[%s1112_s20] sm:$0xff]   ;;  %923 = vmatprep.subr.bf16.mxu1 %v988_v3  ;;  %v993_v8 = vld [vmem:[%s1112_s20 + $0x8] sm:$0xff]   ;;  %v997_v12 = vld [vmem:[%s1112_s20 + $0x10] sm:$0xff]  }
  0x14   : > { %v990_v5 = vld [vmem:[%s1112_s20 + $0x80] sm:$0xff]   ;;  %884 = vmatpush3.bf16.msra.mxu0 %v989_v4  ;;  %v994_v9 = vld [vmem:[%s1112_s20 + $0x88] sm:$0xff]   ;;  %v998_v13 = vld [vmem:[%s1112_s20 + $0x90] sm:$0xff]  }
  0x15   : > { %924 = vmatpush3.bf16.msra.mxu1 %v990_v5  ;;  %885 = vmatprep.subr.bf16.mxu0 %v991_v6  ;;  %v999_v14 = vld [vmem:[%s1112_s20 + $0x58] sm:$0xff]   ;;  %v1003_v18 = vld [vmem:[%s1112_s20 + $0x60] sm:$0xff]   ;;  %v1007_v22 = vld [vmem:[%s1112_s20 + $0x68] sm:$0xff]  }
  0x16   : > { %925 = vmatprep.subr.bf16.mxu1 %v992_v7  ;;  %v1000_v15 = vld [vmem:[%s1112_s20 + $0xd8] sm:$0xff]   ;;  %v1004_v19 = vld [vmem:[%s1112_s20 + $0xe0] sm:$0xff]   ;;  %v1008_v23 = vld [vmem:[%s1112_s20 + $0xe8] sm:$0xff]  }
  0x17   : > { %v1001_v16 = vld [vmem:[%s1112_s20 + $0x18] sm:$0xff]   ;;  %v1005_v20 = vld [vmem:[%s1112_s20 + $0x20] sm:$0xff]   ;;  %v1009_v24 = vld [vmem:[%s1112_s20 + $0x28] sm:$0xff]  }
  0x18   : > { %886 = vmatpush3.bf16.msra.mxu0 %v993_v8  ;;  %v1002_v17 = vld [vmem:[%s1112_s20 + $0x98] sm:$0xff]   ;;  %v1006_v21 = vld [vmem:[%s1112_s20 + $0xa0] sm:$0xff]   ;;  %v1010_v25 = vld [vmem:[%s1112_s20 + $0xa8] sm:$0xff]  }
  0x19   : > { %926 = vmatpush3.bf16.msra.mxu1 %v994_v9  ;;  %887 = vmatprep.subr.bf16.mxu0 %v995_v10  ;;  %v1011_v26 = vld [vmem:[%s1112_s20 + $0x70] sm:$0xff]   ;;  %v1015_v30 = vld [vmem:[%s1112_s20 + $0x78] sm:$0xff]  }
  0x1a   : > { %927 = vmatprep.subr.bf16.mxu1 %v996_v11  ;;  %v1012_v27 = vld [vmem:[%s1112_s20 + $0xf0] sm:$0xff]   ;;  %v1016_v31 = vld [vmem:[%s1112_s20 + $0xf8] sm:$0xff]  }
  0x1b   : > { %v1013_v28 = vld [vmem:[%s1112_s20 + $0x30] sm:$0xff]   ;;  %v1017_v33 = vld [vmem:[%s1112_s20 + $0x38] sm:$0xff]  }
  0x1c   : > { %888 = vmatpush3.bf16.msra.mxu0 %v997_v12  ;;  %v1014_v29 = vld [vmem:[%s1112_s20 + $0xb0] sm:$0xff]   ;;  %v1018_v35 = vld [vmem:[%s1112_s20 + $0xb8] sm:$0xff]  }
  0x1d   : > { %928 = vmatpush3.bf16.msra.mxu1 %v998_v13  ;;  %889 = vmatprep.subr.bf16.mxu0 %v999_v14 }
  0x1e   : > { %929 = vmatprep.subr.bf16.mxu1 %v1000_v15 }
  0x20   : > { %890 = vmatpush3.bf16.msra.mxu0 %v1001_v16 }
  0x21   : > { %930 = vmatpush3.bf16.msra.mxu1 %v1002_v17  ;;  %891 = vmatprep.subr.bf16.mxu0 %v1003_v18 }
  0x22   : > { %931 = vmatprep.subr.bf16.mxu1 %v1004_v19 }
  0x24   : > { %892 = vmatpush3.bf16.msra.mxu0 %v1005_v20 }
  0x25   : > { %932 = vmatpush3.bf16.msra.mxu1 %v1006_v21  ;;  %893 = vmatprep.subr.bf16.mxu0 %v1007_v22 }
  0x26   : > { %933 = vmatprep.subr.bf16.mxu1 %v1008_v23 }
  0x28   : > { %894 = vmatpush3.bf16.msra.mxu0 %v1009_v24 }
  0x29   : > { %934 = vmatpush3.bf16.msra.mxu1 %v1010_v25  ;;  %895 = vmatprep.subr.bf16.mxu0 %v1011_v26 }
  0x2a   : > { %935 = vmatprep.subr.bf16.mxu1 %v1012_v27 }
  0x2c   : > { %896 = vmatpush3.bf16.msra.mxu0 %v1013_v28 }
  0x2d   : > { %936 = vmatpush3.bf16.msra.mxu1 %v1014_v29  ;;  %897 = vmatprep.subr.bf16.mxu0 %v1015_v30 }
  0x2e   : > { %937 = vmatprep.subr.bf16.mxu1 %v1016_v31 }
  0x30   : > { %898 = vmatpush3.bf16.msra.mxu0 %v1017_v33 }
  0x31   : > { %938 = vmatpush3.bf16.msra.mxu1 %v1018_v35 }
  0x33   : > { %561 = vmatmul.mubr.bf16.vlgmr.msra.gmra.mrb[0].mxu0 %v1019_v32 }
  0x34   : > { %626 = vmatmul.mubr.bf16.vlgmr.msra.gmra.mrb[0].mxu1 %v1022_v34  ;;  %568 = vmatprep.mubr.bf16.mxu0 %v1025_v36 }
  0x35   : > { %633 = vmatprep.mubr.bf16.mxu1 %v1027_v37 }
  0x3b   : > { %569 = vmatmul.mubr.bf16.gmra.mrb[4].mxu0 %v1029_v38 }
  0x3c   : > { %634 = vmatmul.mubr.bf16.gmra.mrb[4].mxu1 %v1030_v39  ;;  %576 = vmatprep.mubr.bf16.mxu0 %v1031_v40 }
  0x3d   : > { %641 = vmatprep.mubr.bf16.mxu1 %v1033_v41 }
  0x43   : > { %577 = vmatmul.mubr.bf16.gmra.mrb[8].mxu0 %v1035_v42 }
  0x44   : > { %642 = vmatmul.mubr.bf16.gmra.mrb[8].mxu1 %v1036_v43  ;;  %584 = vmatprep.mubr.bf16.mxu0 %v1037_v44 }
  0x45   : > { %649 = vmatprep.mubr.bf16.mxu1 %v1039_v45 }
  0x4b   : > { %585 = vmatmul.mubr.bf16.gmra.mrb[12].mxu0 %v1041_v46 }
  0x4c   : > { %650 = vmatmul.mubr.bf16.gmra.mrb[12].mxu1 %v1042_v47 }
 0x106   : > { %v899_v48 = vpop.f32.mrb[0].mxu0 }
 0x107   : > { %v939_v49 = vpop.f32.mrb[0].mxu1  ;;  %v900_v50 = vpop.f32.mrb[1].mxu0 }
 0x108   : > { %v901_v51 = vadd.f32 %v900_v50, %v899_v48  ;;  %v940_v52 = vpop.f32.mrb[1].mxu1  ;;  %v902_v53 = vpop.f32.mrb[2].mxu0 }
 0x109   : > { %v941_v54 = vadd.f32 %v940_v52, %v939_v49  ;;  %v942_v55 = vpop.f32.mrb[2].mxu1  ;;  %v903_v56 = vpop.f32.mrb[3].mxu0 }
 0x10a   : > { %v904_v57 = vadd.f32 %v903_v56, %v902_v53  ;;  %v943_v58 = vpop.f32.mrb[3].mxu1 }
 0x10b   : > { %v628_v59 = vadd.f32 %v941_v54, %v901_v51  ;;  %v944_v60 = vadd.f32 %v943_v58, %v942_v55 }
 0x10d   : > { %vm658_vm0 = vcmp.gt.f32.partialorder %v628_v59, 0.0  ;;  %v666_v61 = vmul.f32 0.2, %v628_v59  ;;  %v631_v62 = vadd.f32 %v944_v60, %v904_v57 }
 0x10e   : > { %v905_v63 = vpop.f32.mrb[4].mxu0 }
 0x10f   : > { %v674_v0 = vsel %vm658_vm0, %v628_v59, %v666_v61  ;;  %vm659_vm2 = vcmp.gt.f32.partialorder %v631_v62, 0.0  ;;  %v667_v1 = vmul.f32 0.2, %v631_v62  ;;  %v945_v2 = vpop.f32.mrb[4].mxu1  ;;  %v906_v3 = vpop.f32.mrb[5].mxu0 }
 0x110   : > { %v875_v4 = vpack.c.bf16 %v674_v0, %v674_v0  ;;  %v907_v5 = vadd.f32 %v906_v3, %v905_v63  ;;  %v946_v6 = vpop.f32.mrb[5].mxu1  ;;  %v908_v7 = vpop.f32.mrb[6].mxu0 }
 0x111   : > { %v675_v8 = vsel %vm659_vm2, %v631_v62, %v667_v1  ;;  %v947_v9 = vadd.f32 %v946_v6, %v945_v2  ;;  %v948_v10 = vpop.f32.mrb[6].mxu1  ;;  %v909_v11 = vpop.f32.mrb[7].mxu0 }
 0x112   : > { %715 = vst.msk [vmem:[%s1192_s28] sm:$0xf] %vm714_vm1, %v875_v4  ;;  %v876_v12 = vpack.c.bf16 %v675_v8, %v675_v8  ;;  %v910_v13 = vadd.f32 %v909_v11, %v908_v7  ;;  %v949_v14 = vpop.f32.mrb[7].mxu1 }
 0x113   : > { %v636_v15 = vadd.f32 %v947_v9, %v907_v5  ;;  %v950_v16 = vadd.f32 %v949_v14, %v948_v10 }
 0x114   : > { %716 = vst.msk [vmem:[%s1192_s28 + $0x4] sm:$0xf] %vm714_vm1, %v876_v12 }
 0x115   : > { %vm660_vm3 = vcmp.gt.f32.partialorder %v636_v15, 0.0  ;;  %v668_v17 = vmul.f32 0.2, %v636_v15  ;;  %v639_v18 = vadd.f32 %v950_v16, %v910_v13 }
 0x116   : > { %v911_v19 = vpop.f32.mrb[8].mxu0 }
 0x117   : > { %v676_v20 = vsel %vm660_vm3, %v636_v15, %v668_v17  ;;  %vm661_vm4 = vcmp.gt.f32.partialorder %v639_v18, 0.0  ;;  %v669_v21 = vmul.f32 0.2, %v639_v18  ;;  %v951_v22 = vpop.f32.mrb[8].mxu1  ;;  %v912_v23 = vpop.f32.mrb[9].mxu0 }
 0x118   : > { %v877_v24 = vpack.c.bf16 %v676_v20, %v676_v20  ;;  %v913_v25 = vadd.f32 %v912_v23, %v911_v19  ;;  %v952_v26 = vpop.f32.mrb[9].mxu1  ;;  %v914_v27 = vpop.f32.mrb[10].mxu0 }
 0x119   : > { %v677_v28 = vsel %vm661_vm4, %v639_v18, %v669_v21  ;;  %v953_v29 = vadd.f32 %v952_v26, %v951_v22  ;;  %v954_v30 = vpop.f32.mrb[10].mxu1  ;;  %v915_v31 = vpop.f32.mrb[11].mxu0 }
 0x11a   : > { %717 = vst.msk [vmem:[%s1192_s28 + $0x8] sm:$0xf] %vm714_vm1, %v877_v24  ;;  %v878_v32 = vpack.c.bf16 %v677_v28, %v677_v28  ;;  %v916_v33 = vadd.f32 %v915_v31, %v914_v27  ;;  %v955_v34 = vpop.f32.mrb[11].mxu1 }
 0x11b   : > { %v644_v35 = vadd.f32 %v953_v29, %v913_v25  ;;  %v956_v36 = vadd.f32 %v955_v34, %v954_v30 }
 0x11c   : > { %718 = vst.msk [vmem:[%s1192_s28 + $0xc] sm:$0xf] %vm714_vm1, %v878_v32 }
 0x11d   : > { %vm662_vm5 = vcmp.gt.f32.partialorder %v644_v35, 0.0  ;;  %v670_v37 = vmul.f32 0.2, %v644_v35  ;;  %v647_v38 = vadd.f32 %v956_v36, %v916_v33 }
 0x11e   : > { %v917_v39 = vpop.f32.mrb[12].mxu0 }
 0x11f   : > { %v678_v40 = vsel %vm662_vm5, %v644_v35, %v670_v37  ;;  %vm663_vm6 = vcmp.gt.f32.partialorder %v647_v38, 0.0  ;;  %v671_v41 = vmul.f32 0.2, %v647_v38  ;;  %v957_v42 = vpop.f32.mrb[12].mxu1  ;;  %v918_v43 = vpop.f32.mrb[13].mxu0 }
 0x120   : > { %v879_v44 = vpack.c.bf16 %v678_v40, %v678_v40  ;;  %v919_v45 = vadd.f32 %v918_v43, %v917_v39  ;;  %v958_v46 = vpop.f32.mrb[13].mxu1  ;;  %v920_v47 = vpop.f32.mrb[14].mxu0 }
 0x121   : > { %v679_v48 = vsel %vm663_vm6, %v647_v38, %v671_v41  ;;  %v959_v49 = vadd.f32 %v958_v46, %v957_v42  ;;  %v960_v50 = vpop.f32.mrb[14].mxu1  ;;  %v921_v51 = vpop.f32.mrb[15].mxu0 }
 0x122   : > { %719 = vst.msk [vmem:[%s1192_s28 + $0x10] sm:$0xf] %vm714_vm1, %v879_v44  ;;  %v880_v52 = vpack.c.bf16 %v679_v48, %v679_v48  ;;  %v922_v53 = vadd.f32 %v921_v51, %v920_v47  ;;  %v961_v54 = vpop.f32.mrb[15].mxu1 }
 0x123   : > { %v652_v55 = vadd.f32 %v959_v49, %v919_v45  ;;  %v962_v56 = vadd.f32 %v961_v54, %v960_v50 }
 0x124   : > { %720 = vst.msk [vmem:[%s1192_s28 + $0x14] sm:$0xf] %vm714_vm1, %v880_v52 }
 0x125   : > { %vm664_vm7 = vcmp.gt.f32.partialorder %v652_v55, 0.0  ;;  %v672_v57 = vmul.f32 0.2, %v652_v55  ;;  %v655_v58 = vadd.f32 %v962_v56, %v922_v53 }
 0x127   : > { %v680_v59 = vsel %vm664_vm7, %v652_v55, %v672_v57  ;;  %vm665_vm8 = vcmp.gt.f32.partialorder %v655_v58, 0.0  ;;  %v673_v60 = vmul.f32 0.2, %v655_v58 }
 0x128   : > { %v881_v61 = vpack.c.bf16 %v680_v59, %v680_v59 }
 0x129   : > { %v681_v62 = vsel %vm665_vm8, %v655_v58, %v673_v60 }
 0x12a   : > { %721 = vst.msk [vmem:[%s1192_s28 + $0x18] sm:$0xf] %vm714_vm1, %v881_v61  ;;  %v882_v63 = vpack.c.bf16 %v681_v62, %v681_v62 }
 0x12c   : > { %722 = vst.msk [vmem:[%s1192_s28 + $0x1c] sm:$0xf] %vm714_vm1, %v882_v63 }
 0x12d PF: > { %s12_s11 = sadd.s32 1, %s1065_s11   ;;  %s1222_s9 = smov %s1061_s10 }
 0x12e   : > { %p9_p5 = scmp.ge.s32.totalorder %s12_s11, 4   ;;  %s1223_s10 = smov %s1225_s12 }
 0x130   :  { %11 = sbr.rel (!%p9_p5) target bundleno = 2 (0x2), region = 58 }

// kernel: discriminator_forward.9
= control target key start
LH: loop header
LB: loop body
LE: loop exit
PB: predicated region body
PF: predicated region fallthrough
CT: control target
= control target key end

     0   :  { %s2228_s9 = smov 0   ;;  %s2230_s10 = smov 0   ;;  %s2621_s0 = inlined_call_operand.vmem [shape: bf16[128,1024], index: 0, kind: input, shape index: {}]   ;;  %s2622_s1 = inlined_call_operand.vmem [shape: bf16[2,1024,16], index: 1, kind: input, shape index: {}]   ;;  %s2623_s2 = inlined_call_operand.vmem [shape: bf16[2,128,16], index: 2, kind: output, shape index: {}]  }
   0x1   :  { %s2232_s11 = smov 0  }
   0x2 LB: > { %s24_s12 = sadd.s32 1, %s2207_s10  ;;  %p1676_p0 = scmp.ge.s32.totalorder %s2211_s11, 1  ;;  %s2211_s11 = sphi %s2232_s11, %s12_s11   ;;  %s2207_s10 = sphi %s2230_s10, %s2625_s10   ;;  %s2203_s9 = sphi %s2228_s9, %s2624_s9  }
   0x3   : > { %p26_p1 = scmp.ge.s32.totalorder %s24_s12, 2  ;;  %p131_p2 = scmp.lt.s32.totalorder %s2211_s11, 3 }
   0x5   : > { %s2627_s12 = smov (%p26_p1, %s24_s12), 0  ;;  %p132_p3 = pnand %p1676_p0, %p131_p2 }
   0x6   : > { %p159_p4 = scmp.lt.s32.totalorder (!%p132_p3), %s2203_s9, 1  ;;  %v2249_v0 = vld [vmem:[%s2621_s0] sm:$0xff] (!%p132_p3)  ;;  %v2259_v2 = vld [vmem:[%s2621_s0 + $0x8] sm:$0xff] (!%p132_p3)  ;;  %vm1572_vm1 = vcmask (!%p132_p3), 125952  }
   0x7   : > { %135 = sbr.rel (%p132_p3) target bundleno = 398 (0x18e), region = 28  ;;  %v2254_v1 = vld [vmem:[%s2621_s0 + $0x20] sm:$0xff] (!%p132_p3)  ;;  %v2266_v4 = vld [vmem:[%s2621_s0 + $0x28] sm:$0xff] (!%p132_p3) }
   0x8   : > { %v1682_v3 = vcombine.high (!%p132_p3), %v2249_v0, %v2254_v1  ;;  %v1684_v5 = vcombine.high (!%p132_p3), %v2259_v2, %v2266_v4  ;;  %v184_v35 = vld [vmem:[%s2621_s0 + $0x40] sm:$0xff] (!%p132_p3)  ;;  %v185_v38 = vld [vmem:[%s2621_s0 + $0x48] sm:$0xff] (!%p132_p3)  ;;  %v1681_v42 = vcombine.low (!%p132_p3), %v2249_v0, %v2254_v1  ;;  %v1683_v43 = vcombine.low (!%p132_p3), %v2259_v2, %v2266_v4 }
   0x9   : > { %v188_v36 = vld [vmem:[%s2621_s0 + $0x60] sm:$0xff] (!%p132_p3)  ;;  %v189_v39 = vld [vmem:[%s2621_s0 + $0x68] sm:$0xff] (!%p132_p3) }
   0xa   : > { %1104 = vmatprep.mubr.bf16.mxu0 (!%p132_p3), %v1682_v3  ;;  %1201 = vmatprep.mubr.bf16.mxu1 (!%p132_p3), %v1684_v5  ;;  %v1690_v46 = vcombine.high (!%p132_p3), %v184_v35, %v188_v36  ;;  %v1692_v48 = vcombine.high (!%p132_p3), %v185_v38, %v189_v39  ;;  %v192_v50 = vld [vmem:[%s2621_s0 + $0x80] sm:$0xff] (!%p132_p3)  ;;  %v193_v53 = vld [vmem:[%s2621_s0 + $0x88] sm:$0xff] (!%p132_p3)  ;;  %v1689_v57 = vcombine.low (!%p132_p3), %v184_v35, %v188_v36 }
   0xb   : > { %v196_v51 = vld [vmem:[%s2621_s0 + $0xa0] sm:$0xff] (!%p132_p3)  ;;  %v197_v54 = vld [vmem:[%s2621_s0 + $0xa8] sm:$0xff] (!%p132_p3)  ;;  %v1691_v59 = vcombine.low (!%p132_p3), %v185_v38, %v189_v39 }
   0xc   : > { %v1698_v60 = vcombine.high (!%p132_p3), %v192_v50, %v196_v51  ;;  %v1700_v62 = vcombine.high (!%p132_p3), %v193_v53, %v197_v54  ;;  %v200_v2 = vld [vmem:[%s2621_s0 + $0xc0] sm:$0xff] (!%p132_p3)  ;;  %v201_v4 = vld [vmem:[%s2621_s0 + $0xc8] sm:$0xff] (!%p132_p3) }
   0xd   : > { %v204_v3 = vld [vmem:[%s2621_s0 + $0xe0] sm:$0xff] (!%p132_p3)  ;;  %v205_v5 = vld [vmem:[%s2621_s0 + $0xe8] sm:$0xff] (!%p132_p3) }
   0xe   : > { %s2629_s9 = smov (!%p159_p4, %s2203_s9), 1 }
   0xf   : > { %s1827_s21 = sshll.u32 %s2629_s9, 9 }
  0x10   : > { %s2276_s24 = scalar_lea.vmem %s2622_s1, %s1827_s21 }
  0x11   : > { %v2125_v6 = vld [vmem:[%s2276_s24 + $0x40] sm:$0xff]   ;;  %v2129_v10 = vld [vmem:[%s2276_s24 + $0x48] sm:$0xff]   ;;  %v2133_v14 = vld [vmem:[%s2276_s24 + $0x50] sm:$0xff]  }
  0x12   : > { %v2126_v7 = vld [vmem:[%s2276_s24 + $0xc0] sm:$0xff]   ;;  %1845 = vmatprep.subr.bf16.mxu0 %v2125_v6  ;;  %v2130_v11 = vld [vmem:[%s2276_s24 + $0xc8] sm:$0xff]   ;;  %v2134_v15 = vld [vmem:[%s2276_s24 + $0xd0] sm:$0xff]  }
  0x13   : > { %v2127_v8 = vld [vmem:[%s2276_s24] sm:$0xff]   ;;  %1909 = vmatprep.subr.bf16.mxu1 %v2126_v7  ;;  %v2131_v12 = vld [vmem:[%s2276_s24 + $0x8] sm:$0xff]   ;;  %v2135_v16 = vld [vmem:[%s2276_s24 + $0x10] sm:$0xff]  }
  0x14   : > { %v2128_v9 = vld [vmem:[%s2276_s24 + $0x80] sm:$0xff]   ;;  %1846 = vmatpush3.bf16.msra.mxu0 %v2127_v8  ;;  %v2132_v13 = vld [vmem:[%s2276_s24 + $0x88] sm:$0xff]   ;;  %v2136_v17 = vld [vmem:[%s2276_s24 + $0x90] sm:$0xff]  }
  0x15   : > { %1910 = vmatpush3.bf16.msra.mxu1 %v2128_v9  ;;  %1847 = vmatprep.subr.bf16.mxu0 %v2129_v10  ;;  %v2137_v18 = vld [vmem:[%s2276_s24 + $0x58] sm:$0xff]   ;;  %v2141_v22 = vld [vmem:[%s2276_s24 + $0x60] sm:$0xff]   ;;  %v2145_v26 = vld [vmem:[%s2276_s24 + $0x68] sm:$0xff]   ;;  %v1697_v9 = vcombine.low %v192_v50, %v196_v51 }
  0x16   : > { %1911 = vmatprep.subr.bf16.mxu1 %v2130_v11  ;;  %v2138_v19 = vld [vmem:[%s2276_s24 + $0xd8] sm:$0xff]   ;;  %v2142_v23 = vld [vmem:[%s2276_s24 + $0xe0] sm:$0xff]   ;;  %v2146_v27 = vld [vmem:[%s2276_s24 + $0xe8] sm:$0xff]   ;;  %v1699_v11 = vcombine.low %v193_v53, %v197_v54 }
  0x17   : > { %v2139_v20 = vld [vmem:[%s2276_s24 + $0x18] sm:$0xff]   ;;  %v2143_v24 = vld [vmem:[%s2276_s24 + $0x20] sm:$0xff]   ;;  %v2147_v28 = vld [vmem:[%s2276_s24 + $0x28] sm:$0xff]  }
  0x18   : > { %1848 = vmatpush3.bf16.msra.mxu0 %v2131_v12  ;;  %v2140_v21 = vld [vmem:[%s2276_s24 + $0x98] sm:$0xff]   ;;  %v2144_v25 = vld [vmem:[%s2276_s24 + $0xa0] sm:$0xff]   ;;  %v2148_v29 = vld [vmem:[%s2276_s24 + $0xa8] sm:$0xff]   ;;  %v1706_v12 = vcombine.high %v200_v2, %v204_v3 }
  0x19   : > { %1912 = vmatpush3.bf16.msra.mxu1 %v2132_v13  ;;  %1849 = vmatprep.subr.bf16.mxu0 %v2133_v14  ;;  %v2149_v30 = vld [vmem:[%s2276_s24 + $0x70] sm:$0xff]   ;;  %v2153_v34 = vld [vmem:[%s2276_s24 + $0x78] sm:$0xff]   ;;  %v2157_v44 = vld [vmem:[%s2276_s24 + $0x140] sm:$0xff]   ;;  %v1708_v13 = vcombine.high %v201_v4, %v205_v5 }
  0x1a   : > { %1913 = vmatprep.subr.bf16.mxu1 %v2134_v15  ;;  %v2150_v31 = vld [vmem:[%s2276_s24 + $0xf0] sm:$0xff]   ;;  %v2154_v37 = vld [vmem:[%s2276_s24 + $0xf8] sm:$0xff]   ;;  %v2158_v45 = vld [vmem:[%s2276_s24 + $0x100] sm:$0xff]  }
  0x1b   : > { %v2151_v32 = vld [vmem:[%s2276_s24 + $0x30] sm:$0xff]   ;;  %v2155_v40 = vld [vmem:[%s2276_s24 + $0x38] sm:$0xff]   ;;  %v2159_v47 = vld [vmem:[%s2276_s24 + $0x1c0] sm:$0xff]  }
  0x1c   : > { %1850 = vmatpush3.bf16.msra.mxu0 %v2135_v16  ;;  %v2152_v33 = vld [vmem:[%s2276_s24 + $0xb0] sm:$0xff]   ;;  %v2156_v41 = vld [vmem:[%s2276_s24 + $0xb8] sm:$0xff]   ;;  %v2160_v49 = vld [vmem:[%s2276_s24 + $0x180] sm:$0xff]  }
  0x1d   : > { %1914 = vmatpush3.bf16.msra.mxu1 %v2136_v17  ;;  %1851 = vmatprep.subr.bf16.mxu0 %v2137_v18  ;;  %v2161_v52 = vld [vmem:[%s2276_s24 + $0x148] sm:$0xff]   ;;  %v2165_v61 = vld [vmem:[%s2276_s24 + $0x150] sm:$0xff]   ;;  %v2169_v6 = vld [vmem:[%s2276_s24 + $0x158] sm:$0xff]  }
  0x1e   : > { %1915 = vmatprep.subr.bf16.mxu1 %v2138_v19  ;;  %v2162_v55 = vld [vmem:[%s2276_s24 + $0x108] sm:$0xff]   ;;  %v2166_v63 = vld [vmem:[%s2276_s24 + $0x110] sm:$0xff]   ;;  %v2170_v7 = vld [vmem:[%s2276_s24 + $0x118] sm:$0xff]  }
  0x1f   : > { %v2163_v56 = vld [vmem:[%s2276_s24 + $0x1c8] sm:$0xff]   ;;  %v2167_v0 = vld [vmem:[%s2276_s24 + $0x1d0] sm:$0xff]   ;;  %v2171_v8 = vld [vmem:[%s2276_s24 + $0x1d8] sm:$0xff]  }
  0x20   : > { %1852 = vmatpush3.bf16.msra.mxu0 %v2139_v20  ;;  %v2164_v58 = vld [vmem:[%s2276_s24 + $0x188] sm:$0xff]   ;;  %v2168_v1 = vld [vmem:[%s2276_s24 + $0x190] sm:$0xff]   ;;  %v2172_v10 = vld [vmem:[%s2276_s24 + $0x198] sm:$0xff]  }
  0x21   : > { %1916 = vmatpush3.bf16.msra.mxu1 %v2140_v21  ;;  %1853 = vmatprep.subr.bf16.mxu0 %v2141_v22  ;;  %v2173_v14 = vld [vmem:[%s2276_s24 + $0x160] sm:$0xff]   ;;  %v209_v20 = vld [vmem:[%s2621_s0 + $0x108] sm:$0xff]  ;;  %v2182_v35 = vld [vmem:[%s2276_s24 + $0x130] sm:$0xff]  }
  0x22   : > { %1917 = vmatprep.subr.bf16.mxu1 %v2142_v23  ;;  %v2174_v15 = vld [vmem:[%s2276_s24 + $0x120] sm:$0xff]   ;;  %v213_v21 = vld [vmem:[%s2621_s0 + $0x128] sm:$0xff]  ;;  %v1705_v23 = vcombine.low %v200_v2, %v204_v3  ;;  %v2183_v36 = vld [vmem:[%s2276_s24 + $0x1f0] sm:$0xff]  }
  0x23   : > { %v2175_v16 = vld [vmem:[%s2276_s24 + $0x1e0] sm:$0xff]   ;;  %v2177_v22 = vld [vmem:[%s2276_s24 + $0x168] sm:$0xff]   ;;  %v2184_v38 = vld [vmem:[%s2276_s24 + $0x1b0] sm:$0xff]   ;;  %v1715_v39 = vcombine.low %v209_v20, %v213_v21 }
  0x24   : > { %1854 = vmatpush3.bf16.msra.mxu0 %v2143_v24  ;;  %v208_v17 = vld [vmem:[%s2621_s0 + $0x100] sm:$0xff]  ;;  %v2178_v24 = vld [vmem:[%s2276_s24 + $0x128] sm:$0xff]  }
  0x25   : > { %1918 = vmatpush3.bf16.msra.mxu1 %v2144_v25  ;;  %1855 = vmatprep.subr.bf16.mxu0 %v2145_v26  ;;  %v2176_v18 = vld [vmem:[%s2276_s24 + $0x1a0] sm:$0xff]   ;;  %v1707_v25 = vcombine.low %v201_v4, %v205_v5 }
  0x26   : > { %1919 = vmatprep.subr.bf16.mxu1 %v2146_v27  ;;  %v212_v19 = vld [vmem:[%s2621_s0 + $0x120] sm:$0xff]  ;;  %v2179_v27 = vld [vmem:[%s2276_s24 + $0x1e8] sm:$0xff]  }
  0x27   : > { %v1714_v26 = vcombine.high %v208_v17, %v212_v19  ;;  %v232_v54 = vld [vmem:[%s2621_s0 + $0x1c0] sm:$0xff] }
  0x28   : > { %1856 = vmatpush3.bf16.msra.mxu0 %v2147_v28  ;;  %v1716_v28 = vcombine.high %v209_v20, %v213_v21 }
  0x29   : > { %1920 = vmatpush3.bf16.msra.mxu1 %v2148_v29  ;;  %1857 = vmatprep.subr.bf16.mxu0 %v2149_v30  ;;  %v2180_v29 = vld [vmem:[%s2276_s24 + $0x1a8] sm:$0xff]   ;;  %v216_v30 = vld [vmem:[%s2621_s0 + $0x140] sm:$0xff] }
  0x2a   : > { %1921 = vmatprep.subr.bf16.mxu1 %v2150_v31  ;;  %v220_v31 = vld [vmem:[%s2621_s0 + $0x160] sm:$0xff] }
  0x2b   : > { %v1721_v50 = vcombine.low %v216_v30, %v220_v31 }
  0x2c   : > { %1858 = vmatpush3.bf16.msra.mxu0 %v2151_v32  ;;  %v217_v32 = vld [vmem:[%s2621_s0 + $0x148] sm:$0xff] }
  0x2d   : > { %1922 = vmatpush3.bf16.msra.mxu1 %v2152_v33  ;;  %1859 = vmatprep.subr.bf16.mxu0 %v2153_v34  ;;  %v221_v33 = vld [vmem:[%s2621_s0 + $0x168] sm:$0xff]  ;;  %v2181_v34 = vld [vmem:[%s2276_s24 + $0x170] sm:$0xff]  }
  0x2e   : > { %1923 = vmatprep.subr.bf16.mxu1 %v2154_v37  ;;  %v1713_v37 = vcombine.low %v208_v17, %v212_v19  ;;  %v1723_v51 = vcombine.low %v217_v32, %v221_v33  ;;  %v199_v17 = vld [vmem:[%s2621_s0 + $0xb8] sm:$0xff] }
  0x30   : > { %1860 = vmatpush3.bf16.msra.mxu0 %v2155_v40  ;;  %v1722_v40 = vcombine.high %v216_v30, %v220_v31  ;;  %v210_v30 = vld [vmem:[%s2621_s0 + $0x110] sm:$0xff] }
  0x31   : > { %1924 = vmatpush3.bf16.msra.mxu1 %v2156_v41  ;;  %1973 = vmatprep.subr.bf16.mxu0 %v2157_v44  ;;  %v1724_v41 = vcombine.high %v217_v32, %v221_v33  ;;  %v2187_v44 = vld [vmem:[%s2276_s24 + $0x1f8] sm:$0xff]   ;;  %v214_v31 = vld [vmem:[%s2621_s0 + $0x130] sm:$0xff] }
  0x32   : > { %2037 = vmatprep.subr.bf16.mxu1 %v2159_v47  ;;  %v228_v47 = vld [vmem:[%s2621_s0 + $0x1a0] sm:$0xff]  ;;  %v211_v32 = vld [vmem:[%s2621_s0 + $0x118] sm:$0xff] }
  0x33   : > { %1105 = vmatmul.mubr.bf16.vlgmr.msra.gmra.mrb[0].mxu0 %v1681_v42  ;;  %v2185_v42 = vld [vmem:[%s2276_s24 + $0x178] sm:$0xff]  }
  0x34   : > { %1202 = vmatmul.mubr.bf16.vlgmr.msra.gmra.mrb[0].mxu1 %v1683_v43  ;;  %1974 = vmatpush3.bf16.msra.mxu0 %v2158_v45  ;;  %v2186_v43 = vld [vmem:[%s2276_s24 + $0x138] sm:$0xff]  }
  0x35   : > { %1112 = vmatprep.mubr.bf16.mxu0 %v1690_v46  ;;  %2038 = vmatpush3.bf16.msra.mxu1 %v2160_v49  ;;  %v2188_v45 = vld [vmem:[%s2276_s24 + $0x1b8] sm:$0xff]   ;;  %v224_v46 = vld [vmem:[%s2621_s0 + $0x180] sm:$0xff]  ;;  %v229_v49 = vld [vmem:[%s2621_s0 + $0x1a8] sm:$0xff]  ;;  %s1828_s24 = sshll.u32 %s2629_s9, 6 }
  0x36   : > { %1209 = vmatprep.mubr.bf16.mxu1 %v1692_v48  ;;  %1975 = vmatprep.subr.bf16.mxu0 %v2161_v52  ;;  %v225_v48 = vld [vmem:[%s2621_s0 + $0x188] sm:$0xff]  ;;  %v1730_v52 = vcombine.high %v224_v46, %v228_v47  ;;  %v215_v33 = vld [vmem:[%s2621_s0 + $0x138] sm:$0xff]  ;;  %s2564_s29 = scalar_lea.vmem %s2623_s2, %s1828_s24 }
  0x37   : > { %2039 = vmatprep.subr.bf16.mxu1 %v2163_v56  ;;  %v1732_v53 = vcombine.high %v225_v48, %v229_v49  ;;  %v233_v56 = vld [vmem:[%s2621_s0 + $0x1c8] sm:$0xff] }
  0x38   : > { %1976 = vmatpush3.bf16.msra.mxu0 %v2162_v55  ;;  %v236_v55 = vld [vmem:[%s2621_s0 + $0x1e0] sm:$0xff] }
  0x39   : > { %2040 = vmatpush3.bf16.msra.mxu1 %v2164_v58  ;;  %1977 = vmatprep.subr.bf16.mxu0 %v2165_v61  ;;  %v1729_v58 = vcombine.low %v224_v46, %v228_v47  ;;  %v1737_v2 = vcombine.low %v232_v54, %v236_v55  ;;  %v226_v46 = vld [vmem:[%s2621_s0 + $0x190] sm:$0xff] }
  0x3a   : > { %2041 = vmatprep.subr.bf16.mxu1 %v2167_v0  ;;  %v179_v0 = vld [vmem:[%s2621_s0 + $0x18] sm:$0xff]  ;;  %v230_v47 = vld [vmem:[%s2621_s0 + $0x1b0] sm:$0xff] }
  0x3b   : > { %1113 = vmatmul.mubr.bf16.gmra.mrb[4].mxu0 %v1689_v57  ;;  %v237_v57 = vld [vmem:[%s2621_s0 + $0x1e8] sm:$0xff] }
  0x3c   : > { %1210 = vmatmul.mubr.bf16.gmra.mrb[4].mxu1 %v1691_v59  ;;  %1120 = vmatprep.mubr.bf16.mxu0 %v1698_v60  ;;  %v1731_v59 = vcombine.low %v225_v48, %v229_v49  ;;  %v1738_v60 = vcombine.high %v232_v54, %v236_v55  ;;  %v1740_v61 = vcombine.high %v233_v56, %v237_v57  ;;  %v227_v48 = vld [vmem:[%s2621_s0 + $0x198] sm:$0xff]  ;;  %v234_v54 = vld [vmem:[%s2621_s0 + $0x1d0] sm:$0xff] }
  0x3d   : > { %1217 = vmatprep.mubr.bf16.mxu1 %v1700_v62  ;;  %1978 = vmatpush3.bf16.msra.mxu0 %v2166_v63  ;;  %v178_v62 = vld [vmem:[%s2621_s0 + $0x10] sm:$0xff]  ;;  %v1739_v3 = vcombine.low %v233_v56, %v237_v57  ;;  %v231_v49 = vld [vmem:[%s2621_s0 + $0x1b8] sm:$0xff] }
  0x3e   : > { %1979 = vmatprep.subr.bf16.mxu0 %v2169_v6  ;;  %2042 = vmatpush3.bf16.msra.mxu1 %v2168_v1  ;;  %v182_v63 = vld [vmem:[%s2621_s0 + $0x30] sm:$0xff]  ;;  %v183_v1 = vld [vmem:[%s2621_s0 + $0x38] sm:$0xff] }
  0x3f   : > { %2043 = vmatprep.subr.bf16.mxu1 %v2171_v8  ;;  %v1686_v4 = vcombine.high %v178_v62, %v182_v63  ;;  %v1688_v5 = vcombine.high %v179_v0, %v183_v1  ;;  %v186_v6 = vld [vmem:[%s2621_s0 + $0x50] sm:$0xff]  ;;  %v187_v8 = vld [vmem:[%s2621_s0 + $0x58] sm:$0xff] }
  0x40   : > { %v238_v55 = vld [vmem:[%s2621_s0 + $0x1f0] sm:$0xff]  ;;  %v235_v56 = vld [vmem:[%s2621_s0 + $0x1d8] sm:$0xff] }
  0x41   : > { %1980 = vmatpush3.bf16.msra.mxu0 %v2170_v7  ;;  %v190_v7 = vld [vmem:[%s2621_s0 + $0x70] sm:$0xff]  ;;  %v239_v57 = vld [vmem:[%s2621_s0 + $0x1f8] sm:$0xff] }
  0x42   : > { %2044 = vmatpush3.bf16.msra.mxu1 %v2172_v10  ;;  %1981 = vmatprep.subr.bf16.mxu0 %v2173_v14  ;;  %v1685_v10 = vcombine.low %v178_v62, %v182_v63  ;;  %v194_v14 = vld [vmem:[%s2621_s0 + $0x90] sm:$0xff]  ;;  %v1741_v62 = vcombine.low %v234_v54, %v238_v55  ;;  %v1743_v63 = vcombine.low %v235_v56, %v239_v57 }
  0x43   : > { %1121 = vmatmul.mubr.bf16.gmra.mrb[8].mxu0 %v1697_v9  ;;  %2045 = vmatprep.subr.bf16.mxu1 %v2175_v16  ;;  %v191_v9 = vld [vmem:[%s2621_s0 + $0x78] sm:$0xff] }
  0x44   : > { %1218 = vmatmul.mubr.bf16.gmra.mrb[8].mxu1 %v1699_v11  ;;  %1128 = vmatprep.mubr.bf16.mxu0 %v1706_v12  ;;  %v1687_v11 = vcombine.low %v179_v0, %v183_v1  ;;  %v1694_v12 = vcombine.high %v186_v6, %v190_v7  ;;  %v195_v16 = vld [vmem:[%s2621_s0 + $0x98] sm:$0xff]  ;;  %v1695_v19 = vcombine.low %v187_v8, %v191_v9 }
  0x45   : > { %1225 = vmatprep.mubr.bf16.mxu1 %v1708_v13  ;;  %1982 = vmatpush3.bf16.msra.mxu0 %v2174_v15  ;;  %v1696_v13 = vcombine.high %v187_v8, %v191_v9  ;;  %v198_v15 = vld [vmem:[%s2621_s0 + $0xb0] sm:$0xff]  ;;  %v1704_v21 = vcombine.high %v195_v16, %v199_v17 }
  0x46   : > { %2046 = vmatpush3.bf16.msra.mxu1 %v2176_v18  ;;  %1983 = vmatprep.subr.bf16.mxu0 %v2177_v22  ;;  %v1693_v18 = vcombine.low %v186_v6, %v190_v7  ;;  %v1702_v20 = vcombine.high %v194_v14, %v198_v15  ;;  %v202_v22 = vld [vmem:[%s2621_s0 + $0xd0] sm:$0xff] }
  0x47   : > { %2047 = vmatprep.subr.bf16.mxu1 %v2179_v27  ;;  %v1703_v27 = vcombine.low %v195_v16, %v199_v17 }
  0x49   : > { %1984 = vmatpush3.bf16.msra.mxu0 %v2178_v24  ;;  %v203_v24 = vld [vmem:[%s2621_s0 + $0xd8] sm:$0xff] }
  0x4a   : > { %2048 = vmatpush3.bf16.msra.mxu1 %v2180_v29  ;;  %1985 = vmatprep.subr.bf16.mxu0 %v2181_v34 }
  0x4b   : > { %1129 = vmatmul.mubr.bf16.gmra.mrb[12].mxu0 %v1705_v23  ;;  %2049 = vmatprep.subr.bf16.mxu1 %v2183_v36  ;;  %v206_v23 = vld [vmem:[%s2621_s0 + $0xf0] sm:$0xff]  ;;  %v1718_v36 = vcombine.high %v210_v30, %v214_v31 }
  0x4c   : > { %1226 = vmatmul.mubr.bf16.gmra.mrb[12].mxu1 %v1707_v25  ;;  %1136 = vmatprep.mubr.bf16.mxu0 %v1714_v26  ;;  %v207_v25 = vld [vmem:[%s2621_s0 + $0xf8] sm:$0xff]  ;;  %v1701_v26 = vcombine.low %v194_v14, %v198_v15  ;;  %v1709_v34 = vcombine.low %v202_v22, %v206_v23 }
  0x4d   : > { %1233 = vmatprep.mubr.bf16.mxu1 %v1716_v28  ;;  %1986 = vmatpush3.bf16.msra.mxu0 %v2182_v35  ;;  %v1710_v28 = vcombine.high %v202_v22, %v206_v23  ;;  %v1712_v29 = vcombine.high %v203_v24, %v207_v25  ;;  %v1711_v35 = vcombine.low %v203_v24, %v207_v25 }
  0x4e   : > { %2050 = vmatpush3.bf16.msra.mxu1 %v2184_v38  ;;  %1987 = vmatprep.subr.bf16.mxu0 %v2185_v42  ;;  %v218_v38 = vld [vmem:[%s2621_s0 + $0x150] sm:$0xff]  ;;  %v1717_v42 = vcombine.low %v210_v30, %v214_v31 }
  0x4f   : > { %2051 = vmatprep.subr.bf16.mxu1 %v2187_v44 }
  0x51   : > { %1988 = vmatpush3.bf16.msra.mxu0 %v2186_v43  ;;  %v1719_v43 = vcombine.low %v211_v32, %v215_v33 }
  0x52   : > { %2052 = vmatpush3.bf16.msra.mxu1 %v2188_v45 }
  0x53   : > { %1137 = vmatmul.mubr.bf16.gmra.mrb[16].mxu0 %v1713_v37  ;;  %v1720_v37 = vcombine.high %v211_v32, %v215_v33 }
  0x54   : > { %1234 = vmatmul.mubr.bf16.gmra.mrb[16].mxu1 %v1715_v39  ;;  %1144 = vmatprep.mubr.bf16.mxu0 %v1722_v40  ;;  %v222_v39 = vld [vmem:[%s2621_s0 + $0x170] sm:$0xff]  ;;  %v219_v40 = vld [vmem:[%s2621_s0 + $0x158] sm:$0xff] }
  0x55   : > { %1241 = vmatprep.mubr.bf16.mxu1 %v1724_v41  ;;  %v223_v41 = vld [vmem:[%s2621_s0 + $0x178] sm:$0xff]  ;;  %v1726_v44 = vcombine.high %v218_v38, %v222_v39 }
  0x56   : > { %v1728_v45 = vcombine.high %v219_v40, %v223_v41 }
  0x5b   : > { %1145 = vmatmul.mubr.bf16.gmra.mrb[20].mxu0 %v1721_v50  ;;  %v1725_v50 = vcombine.low %v218_v38, %v222_v39 }
  0x5c   : > { %1242 = vmatmul.mubr.bf16.gmra.mrb[20].mxu1 %v1723_v51  ;;  %1152 = vmatprep.mubr.bf16.mxu0 %v1730_v52  ;;  %v1727_v51 = vcombine.low %v219_v40, %v223_v41  ;;  %v1734_v52 = vcombine.high %v226_v46, %v230_v47 }
  0x5d   : > { %1249 = vmatprep.mubr.bf16.mxu1 %v1732_v53  ;;  %v1736_v53 = vcombine.high %v227_v48, %v231_v49 }
  0x63   : > { %1153 = vmatmul.mubr.bf16.gmra.mrb[24].mxu0 %v1729_v58  ;;  %v1733_v58 = vcombine.low %v226_v46, %v230_v47 }
  0x64   : > { %1250 = vmatmul.mubr.bf16.gmra.mrb[24].mxu1 %v1731_v59  ;;  %1160 = vmatprep.mubr.bf16.mxu0 %v1738_v60  ;;  %v1735_v59 = vcombine.low %v227_v48, %v231_v49  ;;  %v1742_v60 = vcombine.high %v234_v54, %v238_v55 }
  0x65   : > { %1257 = vmatprep.mubr.bf16.mxu1 %v1740_v61  ;;  %v1744_v61 = vcombine.high %v235_v56, %v239_v57 }
  0x6b   : > { %1161 = vmatmul.mubr.bf16.gmra.mrb[28].mxu0 %v1737_v2 }
  0x6c   : > { %1258 = vmatmul.mubr.bf16.gmra.mrb[28].mxu1 %v1739_v3  ;;  %1298 = vmatprep.mubr.bf16.mxu0 %v1686_v4 }
  0x6d   : > { %1395 = vmatprep.mubr.bf16.mxu1 %v1688_v5 }
  0x73   : > { %1299 = vmatmul.mubr.bf16.vlgmr.msra.gmra.mrb[32].mxu0 %v1685_v10 }
  0x74   : > { %1396 = vmatmul.mubr.bf16.vlgmr.msra.gmra.mrb[32].mxu1 %v1687_v11  ;;  %1306 = vmatprep.mubr.bf16.mxu0 %v1694_v12 }
  0x75   : > { %1403 = vmatprep.mubr.bf16.mxu1 %v1696_v13 }
  0x7b   : > { %1307 = vmatmul.mubr.bf16.gmra.mrb[36].mxu0 %v1693_v18 }
  0x7c   : > { %1404 = vmatmul.mubr.bf16.gmra.mrb[36].mxu1 %v1695_v19  ;;  %1314 = vmatprep.mubr.bf16.mxu0 %v1702_v20 }
  0x7d   : > { %1411 = vmatprep.mubr.bf16.mxu1 %v1704_v21 }
  0x83   : > { %1315 = vmatmul.mubr.bf16.gmra.mrb[40].mxu0 %v1701_v26 }
  0x84   : > { %1412 = vmatmul.mubr.bf16.gmra.mrb[40].mxu1 %v1703_v27  ;;  %1322 = vmatprep.mubr.bf16.mxu0 %v1710_v28 }
  0x85   : > { %1419 = vmatprep.mubr.bf16.mxu1 %v1712_v29 }
  0x8b   : > { %1323 = vmatmul.mubr.bf16.gmra.mrb[44].mxu0 %v1709_v34 }
  0x8c   : > { %1420 = vmatmul.mubr.bf16.gmra.mrb[44].mxu1 %v1711_v35  ;;  %1330 = vmatprep.mubr.bf16.mxu0 %v1718_v36 }
  0x8d   : > { %1427 = vmatprep.mubr.bf16.mxu1 %v1720_v37 }
  0x93   : > { %1331 = vmatmul.mubr.bf16.gmra.mrb[48].mxu0 %v1717_v42 }
  0x94   : > { %1428 = vmatmul.mubr.bf16.gmra.mrb[48].mxu1 %v1719_v43  ;;  %1338 = vmatprep.mubr.bf16.mxu0 %v1726_v44 }
  0x95   : > { %1435 = vmatprep.mubr.bf16.mxu1 %v1728_v45 }
  0x9b   : > { %1339 = vmatmul.mubr.bf16.gmra.mrb[52].mxu0 %v1725_v50 }
  0x9c   : > { %1436 = vmatmul.mubr.bf16.gmra.mrb[52].mxu1 %v1727_v51  ;;  %1346 = vmatprep.mubr.bf16.mxu0 %v1734_v52 }
  0x9d   : > { %1443 = vmatprep.mubr.bf16.mxu1 %v1736_v53 }
  0xa3   : > { %1347 = vmatmul.mubr.bf16.gmra.mrb[56].mxu0 %v1733_v58 }
  0xa4   : > { %1444 = vmatmul.mubr.bf16.gmra.mrb[56].mxu1 %v1735_v59  ;;  %1354 = vmatprep.mubr.bf16.mxu0 %v1742_v60 }
  0xa5   : > { %1451 = vmatprep.mubr.bf16.mxu1 %v1744_v61 }
  0xab   : > { %1355 = vmatmul.mubr.bf16.gmra.mrb[60].mxu0 %v1741_v62 }
  0xac   : > { %1452 = vmatmul.mubr.bf16.gmra.mrb[60].mxu1 %v1743_v63 }
 0x106   : > { %v1861_v0 = vpop.f32.mrb[0].mxu0 }
 0x107   : > { %v1925_v1 = vpop.f32.mrb[0].mxu1  ;;  %v1862_v2 = vpop.f32.mrb[1].mxu0 }
 0x108   : > { %v1863_v3 = vadd.f32 %v1862_v2, %v1861_v0  ;;  %v1926_v4 = vpop.f32.mrb[1].mxu1  ;;  %v1864_v5 = vpop.f32.mrb[2].mxu0 }
 0x109   : > { %v1927_v6 = vadd.f32 %v1926_v4, %v1925_v1  ;;  %v1928_v7 = vpop.f32.mrb[2].mxu1  ;;  %v1865_v8 = vpop.f32.mrb[3].mxu0 }
 0x10a   : > { %v1866_v9 = vadd.f32 %v1865_v8, %v1864_v5  ;;  %v1929_v10 = vpop.f32.mrb[3].mxu1 }
 0x10b   : > { %v2526_v11 = vadd.f32 %v1927_v6, %v1863_v3  ;;  %v1930_v12 = vadd.f32 %v1929_v10, %v1928_v7 }
 0x10d   : > { %v2528_v13 = vadd.f32 %v1930_v12, %v1866_v9 }
 0x10e   : > { %v1867_v14 = vpop.f32.mrb[4].mxu0 }
 0x10f   : > { %v1931_v15 = vpop.f32.mrb[4].mxu1  ;;  %v1868_v16 = vpop.f32.mrb[5].mxu0 }
 0x110   : > { %v1869_v17 = vadd.f32 %v1868_v16, %v1867_v14  ;;  %v1932_v18 = vpop.f32.mrb[5].mxu1  ;;  %v1870_v19 = vpop.f32.mrb[6].mxu0 }
 0x111   : > { %v1933_v20 = vadd.f32 %v1932_v18, %v1931_v15  ;;  %v1934_v21 = vpop.f32.mrb[6].mxu1  ;;  %v1871_v22 = vpop.f32.mrb[7].mxu0 }
 0x112   : > { %v1872_v23 = vadd.f32 %v1871_v22, %v1870_v19  ;;  %v1935_v24 = vpop.f32.mrb[7].mxu1 }
 0x113   : > { %v2530_v25 = vadd.f32 %v1933_v20, %v1869_v17  ;;  %v1936_v26 = vadd.f32 %v1935_v24, %v1934_v21 }
 0x115   : > { %v2532_v27 = vadd.f32 %v1936_v26, %v1872_v23 }
 0x116   : > { %v1873_v28 = vpop.f32.mrb[8].mxu0 }
 0x117   : > { %v1937_v29 = vpop.f32.mrb[8].mxu1  ;;  %v1874_v30 = vpop.f32.mrb[9].mxu0 }
 0x118   : > { %v1875_v31 = vadd.f32 %v1874_v30, %v1873_v28  ;;  %v1938_v32 = vpop.f32.mrb[9].mxu1  ;;  %v1876_v33 = vpop.f32.mrb[10].mxu0 }
 0x119   : > { %v1939_v34 = vadd.f32 %v1938_v32, %v1937_v29  ;;  %v1940_v35 = vpop.f32.mrb[10].mxu1  ;;  %v1877_v36 = vpop.f32.mrb[11].mxu0 }
 0x11a   : > { %v1878_v37 = vadd.f32 %v1877_v36, %v1876_v33  ;;  %v1941_v38 = vpop.f32.mrb[11].mxu1 }
 0x11b   : > { %v2534_v39 = vadd.f32 %v1939_v34, %v1875_v31  ;;  %v1942_v40 = vadd.f32 %v1941_v38, %v1940_v35 }
 0x11d   : > { %v2536_v41 = vadd.f32 %v1942_v40, %v1878_v37 }
 0x11e   : > { %v1879_v42 = vpop.f32.mrb[12].mxu0 }
 0x11f   : > { %v1943_v43 = vpop.f32.mrb[12].mxu1  ;;  %v1880_v44 = vpop.f32.mrb[13].mxu0 }
 0x120   : > { %v1881_v45 = vadd.f32 %v1880_v44, %v1879_v42  ;;  %v1944_v46 = vpop.f32.mrb[13].mxu1  ;;  %v1882_v47 = vpop.f32.mrb[14].mxu0 }
 0x121   : > { %v1945_v48 = vadd.f32 %v1944_v46, %v1943_v43  ;;  %v1946_v49 = vpop.f32.mrb[14].mxu1  ;;  %v1883_v50 = vpop.f32.mrb[15].mxu0 }
 0x122   : > { %v1884_v51 = vadd.f32 %v1883_v50, %v1882_v47  ;;  %v1947_v52 = vpop.f32.mrb[15].mxu1 }
 0x123   : > { %v2538_v53 = vadd.f32 %v1945_v48, %v1881_v45  ;;  %v1948_v54 = vadd.f32 %v1947_v52, %v1946_v49 }
 0x125   : > { %v2540_v55 = vadd.f32 %v1948_v54, %v1884_v51 }
 0x126   : > { %v1885_v56 = vpop.f32.mrb[16].mxu0 }
 0x127   : > { %v1949_v57 = vpop.f32.mrb[16].mxu1  ;;  %v1886_v58 = vpop.f32.mrb[17].mxu0 }
 0x128   : > { %v1887_v59 = vadd.f32 %v1886_v58, %v1885_v56  ;;  %v1950_v60 = vpop.f32.mrb[17].mxu1  ;;  %v1888_v61 = vpop.f32.mrb[18].mxu0 }
 0x129   : > { %v1951_v62 = vadd.f32 %v1950_v60, %v1949_v57  ;;  %v1952_v63 = vpop.f32.mrb[18].mxu1  ;;  %v1889_v0 = vpop.f32.mrb[19].mxu0 }
 0x12a   : > { %v1890_v1 = vadd.f32 %v1889_v0, %v1888_v61  ;;  %v1953_v2 = vpop.f32.mrb[19].mxu1 }
 0x12b   : > { %v2542_v3 = vadd.f32 %v1951_v62, %v1887_v59  ;;  %v1954_v4 = vadd.f32 %v1953_v2, %v1952_v63 }
 0x12d   : > { %v2544_v5 = vadd.f32 %v1954_v4, %v1890_v1 }
 0x12e   : > { %v1891_v6 = vpop.f32.mrb[20].mxu0 }
 0x12f   : > { %v1955_v7 = vpop.f32.mrb[20].mxu1  ;;  %v1892_v8 = vpop.f32.mrb[21].mxu0 }
 0x130   : > { %v1893_v9 = vadd.f32 %v1892_v8, %v1891_v6  ;;  %v1956_v10 = vpop.f32.mrb[21].mxu1  ;;  %v1894_v12 = vpop.f32.mrb[22].mxu0 }
 0x131   : > { %v1957_v14 = vadd.f32 %v1956_v10, %v1955_v7  ;;  %v1958_v15 = vpop.f32.mrb[22].mxu1  ;;  %v1895_v16 = vpop.f32.mrb[23].mxu0 }
 0x132   : > { %v1896_v17 = vadd.f32 %v1895_v16, %v1894_v12  ;;  %v1959_v18 = vpop.f32.mrb[23].mxu1 }
 0x133   : > { %v2546_v19 = vadd.f32 %v1957_v14, %v1893_v9  ;;  %v1960_v20 = vadd.f32 %v1959_v18, %v1958_v15 }
 0x135   : > { %v2548_v21 = vadd.f32 %v1960_v20, %v1896_v17 }
 0x136   : > { %v1897_v22 = vpop.f32.mrb[24].mxu0 }
 0x137   : > { %v1961_v23 = vpop.f32.mrb[24].mxu1  ;;  %v1898_v24 = vpop.f32.mrb[25].mxu0 }
 0x138   : > { %v1899_v26 = vadd.f32 %v1898_v24, %v1897_v22  ;;  %v1962_v28 = vpop.f32.mrb[25].mxu1  ;;  %v1900_v29 = vpop.f32.mrb[26].mxu0 }
 0x139   : > { %v1963_v30 = vadd.f32 %v1962_v28, %v1961_v23  ;;  %v1964_v31 = vpop.f32.mrb[26].mxu1  ;;  %v1901_v32 = vpop.f32.mrb[27].mxu0 }
 0x13a   : > { %v1902_v33 = vadd.f32 %v1901_v32, %v1900_v29  ;;  %v1965_v34 = vpop.f32.mrb[27].mxu1 }
 0x13b   : > { %v2550_v35 = vadd.f32 %v1963_v30, %v1899_v26  ;;  %v1966_v36 = vadd.f32 %v1965_v34, %v1964_v31 }
 0x13d   : > { %v2552_v37 = vadd.f32 %v1966_v36, %v1902_v33 }
 0x13e   : > { %v1903_v38 = vpop.f32.mrb[28].mxu0 }
 0x13f   : > { %v1967_v40 = vpop.f32.mrb[28].mxu1  ;;  %v1904_v42 = vpop.f32.mrb[29].mxu0 }
 0x140   : > { %v1905_v43 = vadd.f32 %v1904_v42, %v1903_v38  ;;  %v1968_v44 = vpop.f32.mrb[29].mxu1  ;;  %v1906_v45 = vpop.f32.mrb[30].mxu0 }
 0x141   : > { %v1969_v46 = vadd.f32 %v1968_v44, %v1967_v40  ;;  %v1970_v47 = vpop.f32.mrb[30].mxu1  ;;  %v1907_v48 = vpop.f32.mrb[31].mxu0 }
 0x142   : > { %v1908_v49 = vadd.f32 %v1907_v48, %v1906_v45  ;;  %v1971_v50 = vpop.f32.mrb[31].mxu1 }
 0x143   : > { %v2554_v51 = vadd.f32 %v1969_v46, %v1905_v43  ;;  %v1972_v52 = vadd.f32 %v1971_v50, %v1970_v47 }
 0x145   : > { %v2556_v54 = vadd.f32 %v1972_v52, %v1908_v49 }
 0x146   : > { %v1989_v56 = vpop.f32.mrb[32].mxu0 }
 0x147   : > { %v2053_v57 = vpop.f32.mrb[32].mxu1  ;;  %v1990_v58 = vpop.f32.mrb[33].mxu0 }
 0x148   : > { %v1991_v59 = vadd.f32 %v1990_v58, %v1989_v56  ;;  %v2054_v60 = vpop.f32.mrb[33].mxu1  ;;  %v1992_v61 = vpop.f32.mrb[34].mxu0 }
 0x149   : > { %v2055_v62 = vadd.f32 %v2054_v60, %v2053_v57  ;;  %v2056_v63 = vpop.f32.mrb[34].mxu1  ;;  %v1993_v0 = vpop.f32.mrb[35].mxu0 }
 0x14a   : > { %v1301_v1 = vadd.f32 %v1991_v59, %v2526_v11  ;;  %v1994_v2 = vadd.f32 %v1993_v0, %v1992_v61  ;;  %v2057_v4 = vpop.f32.mrb[35].mxu1 }
 0x14b   : > { %v2058_v6 = vadd.f32 %v2057_v4, %v2056_v63 }
 0x14c   : > { %v1398_v7 = vadd.f32 %v2055_v62, %v1301_v1  ;;  %v1304_v8 = vadd.f32 %v1994_v2, %v2528_v13 }
 0x14e   : > { %vm1460_vm0 = vcmp.gt.f32.partialorder %v1398_v7, 0.0  ;;  %v1476_v9 = vmul.f32 0.2, %v1398_v7  ;;  %v1401_v10 = vadd.f32 %v2058_v6, %v1304_v8  ;;  %v1995_v12 = vpop.f32.mrb[36].mxu0 }
 0x14f   : > { %v2059_v14 = vpop.f32.mrb[36].mxu1  ;;  %v1996_v15 = vpop.f32.mrb[37].mxu0 }
 0x150   : > { %v1492_v11 = vsel %vm1460_vm0, %v1398_v7, %v1476_v9  ;;  %vm1461_vm2 = vcmp.gt.f32.partialorder %v1401_v10, 0.0  ;;  %v1477_v16 = vmul.f32 0.2, %v1401_v10  ;;  %v1997_v17 = vadd.f32 %v1996_v15, %v1995_v12  ;;  %v2060_v13 = vpop.f32.mrb[37].mxu1  ;;  %v1998_v18 = vpop.f32.mrb[38].mxu0 }
 0x151   : > { %v1829_v20 = vpack.c.bf16 %v1492_v11, %v1492_v11  ;;  %v2061_v22 = vadd.f32 %v2060_v13, %v2059_v14  ;;  %v2062_v23 = vpop.f32.mrb[38].mxu1  ;;  %v1999_v24 = vpop.f32.mrb[39].mxu0 }
 0x152   : > { %v1493_v26 = vsel %vm1461_vm2, %v1401_v10, %v1477_v16  ;;  %v1309_v28 = vadd.f32 %v1997_v17, %v2530_v25  ;;  %v2000_v29 = vadd.f32 %v1999_v24, %v1998_v18  ;;  %v2063_v30 = vpop.f32.mrb[39].mxu1 }
 0x153   : > { %1573 = vst.msk [vmem:[%s2564_s29] sm:$0xf] %vm1572_vm1, %v1829_v20  ;;  %v1830_v31 = vpack.c.bf16 %v1493_v26, %v1493_v26  ;;  %v2064_v32 = vadd.f32 %v2063_v30, %v2062_v23 }
 0x154   : > { %v1406_v33 = vadd.f32 %v2061_v22, %v1309_v28  ;;  %v1312_v34 = vadd.f32 %v2000_v29, %v2532_v27 }
 0x155   : > { %1574 = vst.msk [vmem:[%s2564_s29 + $0x4] sm:$0xf] %vm1572_vm1, %v1830_v31 }
 0x156   : > { %vm1462_vm3 = vcmp.gt.f32.partialorder %v1406_v33, 0.0  ;;  %v1478_v36 = vmul.f32 0.2, %v1406_v33  ;;  %v1409_v38 = vadd.f32 %v2064_v32, %v1312_v34  ;;  %v2001_v40 = vpop.f32.mrb[40].mxu0 }
 0x157   : > { %v2065_v42 = vpop.f32.mrb[40].mxu1  ;;  %v2002_v43 = vpop.f32.mrb[41].mxu0 }
 0x158   : > { %v1494_v44 = vsel %vm1462_vm3, %v1406_v33, %v1478_v36  ;;  %vm1463_vm4 = vcmp.gt.f32.partialorder %v1409_v38, 0.0  ;;  %v1479_v25 = vmul.f32 0.2, %v1409_v38  ;;  %v2003_v45 = vadd.f32 %v2002_v43, %v2001_v40  ;;  %v2066_v46 = vpop.f32.mrb[41].mxu1  ;;  %v2004_v47 = vpop.f32.mrb[42].mxu0 }
 0x159   : > { %v1831_v48 = vpack.c.bf16 %v1494_v44, %v1494_v44  ;;  %v2067_v49 = vadd.f32 %v2066_v46, %v2065_v42  ;;  %v2068_v50 = vpop.f32.mrb[42].mxu1  ;;  %v2005_v27 = vpop.f32.mrb[43].mxu0 }
 0x15a   : > { %v1495_v52 = vsel %vm1463_vm4, %v1409_v38, %v1479_v25  ;;  %v1317_v56 = vadd.f32 %v2003_v45, %v2534_v39  ;;  %v2006_v57 = vadd.f32 %v2005_v27, %v2004_v47  ;;  %v2069_v58 = vpop.f32.mrb[43].mxu1 }
 0x15b   : > { %1575 = vst.msk [vmem:[%s2564_s29 + $0x8] sm:$0xf] %vm1572_vm1, %v1831_v48  ;;  %v1832_v59 = vpack.c.bf16 %v1495_v52, %v1495_v52  ;;  %v2070_v60 = vadd.f32 %v2069_v58, %v2068_v50 }
 0x15c   : > { %v1414_v61 = vadd.f32 %v2067_v49, %v1317_v56  ;;  %v1320_v62 = vadd.f32 %v2006_v57, %v2536_v41 }
 0x15d   : > { %1576 = vst.msk [vmem:[%s2564_s29 + $0xc] sm:$0xf] %vm1572_vm1, %v1832_v59 }
 0x15e   : > { %vm1464_vm5 = vcmp.gt.f32.partialorder %v1414_v61, 0.0  ;;  %v1480_v63 = vmul.f32 0.2, %v1414_v61  ;;  %v1417_v0 = vadd.f32 %v2070_v60, %v1320_v62  ;;  %v2007_v1 = vpop.f32.mrb[44].mxu0 }
 0x15f   : > { %v2071_v2 = vpop.f32.mrb[44].mxu1  ;;  %v2008_v4 = vpop.f32.mrb[45].mxu0 }
 0x160   : > { %v1496_v6 = vsel %vm1464_vm5, %v1414_v61, %v1480_v63  ;;  %vm1465_vm6 = vcmp.gt.f32.partialorder %v1417_v0, 0.0  ;;  %v1481_v39 = vmul.f32 0.2, %v1417_v0  ;;  %v2009_v7 = vadd.f32 %v2008_v4, %v2007_v1  ;;  %v2072_v8 = vpop.f32.mrb[45].mxu1  ;;  %v2010_v9 = vpop.f32.mrb[46].mxu0 }
 0x161   : > { %v1833_v10 = vpack.c.bf16 %v1496_v6, %v1496_v6  ;;  %v2073_v12 = vadd.f32 %v2072_v8, %v2071_v2  ;;  %v2074_v14 = vpop.f32.mrb[46].mxu1  ;;  %v2011_v41 = vpop.f32.mrb[47].mxu0 }
 0x162   : > { %v1497_v15 = vsel %vm1465_vm6, %v1417_v0, %v1481_v39  ;;  %v1325_v11 = vadd.f32 %v2009_v7, %v2538_v53  ;;  %v2012_v16 = vadd.f32 %v2011_v41, %v2010_v9  ;;  %v2075_v17 = vpop.f32.mrb[47].mxu1 }
 0x163   : > { %1577 = vst.msk [vmem:[%s2564_s29 + $0x10] sm:$0xf] %vm1572_vm1, %v1833_v10  ;;  %v1834_v13 = vpack.c.bf16 %v1497_v15, %v1497_v15  ;;  %v2076_v18 = vadd.f32 %v2075_v17, %v2074_v14 }
 0x164   : > { %v1422_v20 = vadd.f32 %v2073_v12, %v1325_v11  ;;  %v1328_v22 = vadd.f32 %v2012_v16, %v2540_v55 }
 0x165   : > { %1578 = vst.msk [vmem:[%s2564_s29 + $0x14] sm:$0xf] %vm1572_vm1, %v1834_v13 }
 0x166   : > { %vm1466_vm7 = vcmp.gt.f32.partialorder %v1422_v20, 0.0  ;;  %v1482_v23 = vmul.f32 0.2, %v1422_v20  ;;  %v1425_v24 = vadd.f32 %v2076_v18, %v1328_v22  ;;  %v2013_v26 = vpop.f32.mrb[48].mxu0 }
 0x167   : > { %v2077_v28 = vpop.f32.mrb[48].mxu1  ;;  %v2014_v29 = vpop.f32.mrb[49].mxu0 }
 0x168   : > { %v1498_v30 = vsel %vm1466_vm7, %v1422_v20, %v1482_v23  ;;  %vm1467_vm8 = vcmp.gt.f32.partialorder %v1425_v24, 0.0  ;;  %v1483_v53 = vmul.f32 0.2, %v1425_v24  ;;  %v2015_v31 = vadd.f32 %v2014_v29, %v2013_v26  ;;  %v2078_v32 = vpop.f32.mrb[49].mxu1  ;;  %v2016_v33 = vpop.f32.mrb[50].mxu0 }
 0x169   : > { %v1835_v34 = vpack.c.bf16 %v1498_v30, %v1498_v30  ;;  %v2079_v36 = vadd.f32 %v2078_v32, %v2077_v28  ;;  %v2080_v38 = vpop.f32.mrb[50].mxu1  ;;  %v2017_v55 = vpop.f32.mrb[51].mxu0 }
 0x16a   : > { %v1499_v40 = vsel %vm1467_vm8, %v1425_v24, %v1483_v53  ;;  %v1333_v42 = vadd.f32 %v2015_v31, %v2542_v3  ;;  %v2018_v43 = vadd.f32 %v2017_v55, %v2016_v33  ;;  %v2081_v44 = vpop.f32.mrb[51].mxu1 }
 0x16b   : > { %1579 = vst.msk [vmem:[%s2564_s29 + $0x18] sm:$0xf] %vm1572_vm1, %v1835_v34  ;;  %v1836_v25 = vpack.c.bf16 %v1499_v40, %v1499_v40  ;;  %v2082_v45 = vadd.f32 %v2081_v44, %v2080_v38 }
 0x16c   : > { %v1430_v46 = vadd.f32 %v2079_v36, %v1333_v42  ;;  %v1336_v47 = vadd.f32 %v2018_v43, %v2544_v5 }
 0x16d   : > { %1580 = vst.msk [vmem:[%s2564_s29 + $0x1c] sm:$0xf] %vm1572_vm1, %v1836_v25 }
 0x16e   : > { %vm1468_vm9 = vcmp.gt.f32.partialorder %v1430_v46, 0.0  ;;  %v1484_v48 = vmul.f32 0.2, %v1430_v46  ;;  %v1433_v49 = vadd.f32 %v2082_v45, %v1336_v47  ;;  %v2019_v50 = vpop.f32.mrb[52].mxu0 }
 0x16f   : > { %v2083_v27 = vpop.f32.mrb[52].mxu1  ;;  %v2020_v52 = vpop.f32.mrb[53].mxu0 }
 0x170   : > { %v1500_v56 = vsel %vm1468_vm9, %v1430_v46, %v1484_v48  ;;  %vm1469_vm10 = vcmp.gt.f32.partialorder %v1433_v49, 0.0  ;;  %v1485_v3 = vmul.f32 0.2, %v1433_v49  ;;  %v2021_v57 = vadd.f32 %v2020_v52, %v2019_v50  ;;  %v2084_v58 = vpop.f32.mrb[53].mxu1  ;;  %v2022_v59 = vpop.f32.mrb[54].mxu0 }
 0x171   : > { %v1837_v60 = vpack.c.bf16 %v1500_v56, %v1500_v56  ;;  %v2085_v61 = vadd.f32 %v2084_v58, %v2083_v27  ;;  %v2086_v62 = vpop.f32.mrb[54].mxu1  ;;  %v2023_v5 = vpop.f32.mrb[55].mxu0 }
 0x172   : > { %v1501_v63 = vsel %vm1469_vm10, %v1433_v49, %v1485_v3  ;;  %v1341_v0 = vadd.f32 %v2021_v57, %v2546_v19  ;;  %v2024_v1 = vadd.f32 %v2023_v5, %v2022_v59  ;;  %v2087_v2 = vpop.f32.mrb[55].mxu1 }
 0x173   : > { %1581 = vst.msk [vmem:[%s2564_s29 + $0x20] sm:$0xf] %vm1572_vm1, %v1837_v60  ;;  %v1838_v4 = vpack.c.bf16 %v1501_v63, %v1501_v63  ;;  %v2088_v6 = vadd.f32 %v2087_v2, %v2086_v62 }
 0x174   : > { %v1438_v39 = vadd.f32 %v2085_v61, %v1341_v0  ;;  %v1344_v7 = vadd.f32 %v2024_v1, %v2548_v21 }
 0x175   : > { %1582 = vst.msk [vmem:[%s2564_s29 + $0x24] sm:$0xf] %vm1572_vm1, %v1838_v4 }
 0x176   : > { %vm1470_vm11 = vcmp.gt.f32.partialorder %v1438_v39, 0.0  ;;  %v1486_v8 = vmul.f32 0.2, %v1438_v39  ;;  %v1441_v9 = vadd.f32 %v2088_v6, %v1344_v7  ;;  %v2025_v10 = vpop.f32.mrb[56].mxu0 }
 0x177   : > { %v2089_v12 = vpop.f32.mrb[56].mxu1  ;;  %v2026_v14 = vpop.f32.mrb[57].mxu0 }
 0x178   : > { %v1502_v41 = vsel %vm1470_vm11, %v1438_v39, %v1486_v8  ;;  %vm1471_vm12 = vcmp.gt.f32.partialorder %v1441_v9, 0.0  ;;  %v1487_v19 = vmul.f32 0.2, %v1441_v9  ;;  %v2027_v15 = vadd.f32 %v2026_v14, %v2025_v10  ;;  %v2090_v11 = vpop.f32.mrb[57].mxu1  ;;  %v2028_v16 = vpop.f32.mrb[58].mxu0 }
 0x179   : > { %v1839_v17 = vpack.c.bf16 %v1502_v41, %v1502_v41  ;;  %v2091_v13 = vadd.f32 %v2090_v11, %v2089_v12  ;;  %v2092_v18 = vpop.f32.mrb[58].mxu1  ;;  %v2029_v21 = vpop.f32.mrb[59].mxu0 }
 0x17a   : > { %v1503_v20 = vsel %vm1471_vm12, %v1441_v9, %v1487_v19  ;;  %v1349_v22 = vadd.f32 %v2027_v15, %v2550_v35  ;;  %v2030_v23 = vadd.f32 %v2029_v21, %v2028_v16  ;;  %v2093_v24 = vpop.f32.mrb[59].mxu1 }
 0x17b   : > { %1583 = vst.msk [vmem:[%s2564_s29 + $0x28] sm:$0xf] %vm1572_vm1, %v1839_v17  ;;  %v1840_v26 = vpack.c.bf16 %v1503_v20, %v1503_v20  ;;  %v2094_v28 = vadd.f32 %v2093_v24, %v2092_v18 }
 0x17c   : > { %v1446_v29 = vadd.f32 %v2091_v13, %v1349_v22  ;;  %v1352_v30 = vadd.f32 %v2030_v23, %v2552_v37 }
 0x17d   : > { %1584 = vst.msk [vmem:[%s2564_s29 + $0x2c] sm:$0xf] %vm1572_vm1, %v1840_v26 }
 0x17e   : > { %vm1472_vm13 = vcmp.gt.f32.partialorder %v1446_v29, 0.0  ;;  %v1488_v53 = vmul.f32 0.2, %v1446_v29  ;;  %v1449_v31 = vadd.f32 %v2094_v28, %v1352_v30  ;;  %v2031_v32 = vpop.f32.mrb[60].mxu0 }
 0x17f   : > { %v2095_v33 = vpop.f32.mrb[60].mxu1  ;;  %v2032_v34 = vpop.f32.mrb[61].mxu0 }
 0x180   : > { %v1504_v36 = vsel %vm1472_vm13, %v1446_v29, %v1488_v53  ;;  %vm1473_vm14 = vcmp.gt.f32.partialorder %v1449_v31, 0.0  ;;  %v1489_v35 = vmul.f32 0.2, %v1449_v31  ;;  %v2033_v38 = vadd.f32 %v2032_v34, %v2031_v32  ;;  %v2096_v55 = vpop.f32.mrb[61].mxu1  ;;  %v2034_v40 = vpop.f32.mrb[62].mxu0 }
 0x181   : > { %v1841_v42 = vpack.c.bf16 %v1504_v36, %v1504_v36  ;;  %v2097_v43 = vadd.f32 %v2096_v55, %v2095_v33  ;;  %v2098_v44 = vpop.f32.mrb[62].mxu1  ;;  %v2035_v37 = vpop.f32.mrb[63].mxu0 }
 0x182   : > { %v1505_v25 = vsel %vm1473_vm14, %v1449_v31, %v1489_v35  ;;  %v1357_v45 = vadd.f32 %v2033_v38, %v2554_v51  ;;  %v2036_v46 = vadd.f32 %v2035_v37, %v2034_v40  ;;  %v2099_v47 = vpop.f32.mrb[63].mxu1 }
 0x183   : > { %1585 = vst.msk [vmem:[%s2564_s29 + $0x30] sm:$0xf] %vm1572_vm1, %v1841_v42  ;;  %v1842_v48 = vpack.c.bf16 %v1505_v25, %v1505_v25  ;;  %v2100_v49 = vadd.f32 %v2099_v47, %v2098_v44 }
 0x184   : > { %v1454_v50 = vadd.f32 %v2097_v43, %v1357_v45  ;;  %v1360_v27 = vadd.f32 %v2036_v46, %v2556_v54 }
 0x185   : > { %1586 = vst.msk [vmem:[%s2564_s29 + $0x34] sm:$0xf] %vm1572_vm1, %v1842_v48 }
 0x186   : > { %vm1474_vm15 = vcmp.gt.f32.partialorder %v1454_v50, 0.0  ;;  %v1490_v52 = vmul.f32 0.2, %v1454_v50  ;;  %v1457_v56 = vadd.f32 %v2100_v49, %v1360_v27 }
 0x188   : > { %v1506_v3 = vsel %vm1474_vm15, %v1454_v50, %v1490_v52  ;;  %vm1475_vm0 = vcmp.gt.f32.partialorder %v1457_v56, 0.0  ;;  %v1491_v57 = vmul.f32 0.2, %v1457_v56 }
 0x189   : > { %v1843_v51 = vpack.c.bf16 %v1506_v3, %v1506_v3 }
 0x18a   : > { %v1507_v58 = vsel %vm1475_vm0, %v1457_v56, %v1491_v57 }
 0x18b   : > { %1587 = vst.msk [vmem:[%s2564_s29 + $0x38] sm:$0xf] %vm1572_vm1, %v1843_v51  ;;  %v1844_v59 = vpack.c.bf16 %v1507_v58, %v1507_v58 }
 0x18d   : > { %1588 = vst.msk [vmem:[%s2564_s29 + $0x3c] sm:$0xf] %vm1572_vm1, %v1844_v59 }
 0x18e PF: > { %s12_s11 = sadd.s32 1, %s2211_s11   ;;  %s2624_s9 = smov %s2207_s10 }
 0x18f   : > { %p9_p5 = scmp.ge.s32.totalorder %s12_s11, 4   ;;  %s2625_s10 = smov %s2627_s12 }
 0x191   :  { %11 = sbr.rel (!%p9_p5) target bundleno = 2 (0x2), region = 58 }

</bundles_post_ra>
